<compile_context>
chip_gen: v5e
topology: v5e:2x2
jax: 0.10.0
libtpu: 0.0.40
codegen_flags: <defaults>
</compile_context>

<pallas_src>
import functools
import math

import jax
import jax.numpy as jnp
from jax import lax
from jax.experimental import pallas as pl
from jax.experimental.pallas import tpu as pltpu


# --------------------------- in-kernel helpers ------------------------------

def _layer_norm(z, g, b):
    mu = jnp.mean(z, axis=-1, keepdims=True)
    var = jnp.mean((z - mu) ** 2, axis=-1, keepdims=True)
    return (z - mu) * lax.rsqrt(var + 1e-5) * g + b


def _erf(x):
    # Abramowitz & Stegun 7.1.26 (max abs err ~1.5e-7) — erf-exact at f32 level,
    # matches PyTorch F.gelu (default exact erf-GELU) instead of tanh approx.
    a1, a2, a3, a4, a5 = 0.254829592, -0.284496736, 1.421413741, -1.453152027, 1.061405429
    p = 0.3275911
    ax = jnp.abs(x)
    t = 1.0 / (1.0 + p * ax)
    poly = ((((a5 * t + a4) * t + a3) * t + a2) * t + a1) * t
    y = 1.0 - poly * jnp.exp(-ax * ax)
    return jnp.where(x >= 0.0, y, -y)


def _gelu(x):
    return 0.5 * x * (1.0 + _erf(x * 0.7071067811865476))


def _mha(xq, xkv, wq, bq, wkv, bkv, wo, bo, attn_ref, n_heads):
    """Multi-head attention for one batch slice (all heads in one grid step).

    wq/bq are pre-scaled by 1/sqrt(d_head); wkv is [Wk | Wv] concatenated.
    Writes attention probabilities to attn_ref[0, h]; returns (lq, d_model).
    """
    d = wq.shape[1]
    dh = d // n_heads
    q = jnp.dot(xq, wq, preferred_element_type=jnp.float32) + bq        # (lq, d)   pre-scaled
    kv = jnp.dot(xkv, wkv, preferred_element_type=jnp.float32) + bkv    # (lk, 2d)  one matmul
    k, v = kv[:, :d], kv[:, d:]
    out = jnp.zeros((xq.shape[0], wo.shape[1]), jnp.float32) + bo       # accumulate per-head Wo
    for h in range(n_heads):                                            # static unroll, tiny
        sl = slice(h * dh, (h + 1) * dh)
        s = lax.dot_general(q[:, sl], k[:, sl], (((1,), (1,)), ((), ())),
                            preferred_element_type=jnp.float32)          # (lq, lk)
        s = s - jnp.max(s, axis=-1, keepdims=True)
        e = jnp.exp(s)
        p = e * pl.reciprocal(jnp.sum(e, axis=-1, keepdims=True), approx=True)
        attn_ref[0, h] = p.astype(attn_ref.dtype)
        oh = jnp.dot(p, v[:, sl], preferred_element_type=jnp.float32)    # (lq, dh)
        out = out + jnp.dot(oh, wo[sl, :], preferred_element_type=jnp.float32)
    return out


# ------------------------------- kernels ------------------------------------

def _embedding_kernel(xc_ref, xm_ref, pe_ref, wc_ref, wt_ref, o_ref):
    # value embedding (circular Conv1d k=3 as one matmul over [x[t-1]|x[t]|x[t+1]])
    # + temporal embedding (Linear, no bias) + positional encoding, fused.
    val = jnp.dot(xc_ref[...], wc_ref[...], preferred_element_type=jnp.float32)
    tem = jnp.dot(xm_ref[...], wt_ref[...], preferred_element_type=jnp.float32)
    o_ref[...] = (val + tem + pe_ref[...]).astype(o_ref.dtype)


def _encoder_layer_kernel(x_ref, wq_ref, bq_ref, wkv_ref, bkv_ref, wo_ref, bo_ref,
                          g1_ref, bn1_ref, w1_ref, b1_ref, w2_ref, b2_ref,
                          g2_ref, bn2_ref, o_ref, attn_ref, *, n_heads):
    x = x_ref[0].astype(jnp.float32)                                     # (l, d)
    new_x = _mha(x, x, wq_ref[...], bq_ref[...], wkv_ref[...], bkv_ref[...],
                 wo_ref[...], bo_ref[...], attn_ref, n_heads)
    x1 = _layer_norm(x + new_x, g1_ref[...], bn1_ref[...])
    h = _gelu(jnp.dot(x1, w1_ref[...], preferred_element_type=jnp.float32) + b1_ref[...])
    y = jnp.dot(h, w2_ref[...], preferred_element_type=jnp.float32) + b2_ref[...]
    o_ref[0] = _layer_norm(x1 + y, g2_ref[...], bn2_ref[...]).astype(o_ref.dtype)


def _decoder_layer_kernel(x_ref, cr_ref,
                          s_wq, s_bq, s_wkv, s_bkv, s_wo, s_bo,
                          c_wq, c_bq, c_wkv, c_bkv, c_wo, c_bo,
                          g1_ref, bn1_ref, g2_ref, bn2_ref,
                          w1_ref, b1_ref, w2_ref, b2_ref, g3_ref, bn3_ref,
                          o_ref, sattn_ref, cattn_ref, *, n_heads):
    # TODO(synk): no causal mask — matches the reference Attention API (no mask argument).
    x = x_ref[0].astype(jnp.float32)                                     # (l_dec, d)
    cross = cr_ref[0].astype(jnp.float32)                                # (l_enc, d)
    sa = _mha(x, x, s_wq[...], s_bq[...], s_wkv[...], s_bkv[...],
              s_wo[...], s_bo[...], sattn_ref, n_heads)
    x1 = _layer_norm(x + sa, g1_ref[...], bn1_ref[...])
    ca = _mha(x1, cross, c_wq[...], c_bq[...], c_wkv[...], c_bkv[...],
              c_wo[...], c_bo[...], cattn_ref, n_heads)
    x2 = _layer_norm(x1 + ca, g2_ref[...], bn2_ref[...])
    h = _gelu(jnp.dot(x2, w1_ref[...], preferred_element_type=jnp.float32) + b1_ref[...])
    y = jnp.dot(h, w2_ref[...], preferred_element_type=jnp.float32) + b2_ref[...]
    o_ref[0] = _layer_norm(x2 + y, g3_ref[...], bn3_ref[...]).astype(o_ref.dtype)


def _layernorm_kernel(x_ref, g_ref, b_ref, o_ref):
    o_ref[...] = _layer_norm(x_ref[...].astype(jnp.float32),
                             g_ref[...], b_ref[...]).astype(o_ref.dtype)


def _norm_proj_kernel(x_ref, g_ref, b_ref, w_ref, bp_ref, o_ref):
    z = _layer_norm(x_ref[...].astype(jnp.float32), g_ref[...], b_ref[...])
    o_ref[...] = (jnp.dot(z, w_ref[...], preferred_element_type=jnp.float32)
                  + bp_ref[...]).astype(o_ref.dtype)


# ----------------------------- pallas wrappers -------------------------------

_VMEM = pl.BlockSpec(memory_space=pltpu.MemorySpace.VMEM)


def pallas_embedding(xcat, xmark, pe, wc, wt):
    n, d = xcat.shape[0], wc.shape[1]
    return pl.pallas_call(
        _embedding_kernel,
        out_shape=jax.ShapeDtypeStruct((n, d), jnp.float32),
        in_specs=[_VMEM] * 5,
        out_specs=_VMEM,
    )(xcat, xmark, pe, wc, wt)


def pallas_encoder_layer(x, p, n_heads):
    b, l, d = x.shape
    weights = (p['wq'], p['bq'], p['wkv'], p['bkv'], p['wo'], p['bo'],
               p['g1'], p['bn1'], p['w1'], p['b1'], p['w2'], p['b2'],
               p['g2'], p['bn2'])
    in_specs = [pl.BlockSpec((1, l, d), lambda i: (i, 0, 0))]
    # constant block index -> weights stay VMEM-resident across grid steps
    in_specs += [pl.BlockSpec(w.shape, lambda i: (0, 0)) for w in weights]
    out, attn = pl.pallas_call(
        functools.partial(_encoder_layer_kernel, n_heads=n_heads),
        grid=(b,),
        in_specs=in_specs,
        out_specs=[pl.BlockSpec((1, l, d), lambda i: (i, 0, 0)),
                   pl.BlockSpec((1, n_heads, l, l), lambda i: (i, 0, 0, 0))],
        out_shape=[jax.ShapeDtypeStruct((b, l, d), jnp.float32),
                   jax.ShapeDtypeStruct((b, n_heads, l, l), jnp.float32)],
        compiler_params=pltpu.CompilerParams(dimension_semantics=("parallel",)),
    )(x, *weights)
    return out, attn


def pallas_decoder_layer(x, cross, p, n_heads):
    b, ld, d = x.shape
    le = cross.shape[1]
    sa, ca = p['sa'], p['ca']
    weights = (sa['wq'], sa['bq'], sa['wkv'], sa['bkv'], sa['wo'], sa['bo'],
               ca['wq'], ca['bq'], ca['wkv'], ca['bkv'], ca['wo'], ca['bo'],
               p['g1'], p['bn1'], p['g2'], p['bn2'],
               p['w1'], p['b1'], p['w2'], p['b2'], p['g3'], p['bn3'])
    in_specs = [pl.BlockSpec((1, ld, d), lambda i: (i, 0, 0)),
                pl.BlockSpec((1, le, d), lambda i: (i, 0, 0))]
    in_specs += [pl.BlockSpec(w.shape, lambda i: (0, 0)) for w in weights]
    out, sattn, cattn = pl.pallas_call(
        functools.partial(_decoder_layer_kernel, n_heads=n_heads),
        grid=(b,),
        in_specs=in_specs,
        out_specs=[pl.BlockSpec((1, ld, d), lambda i: (i, 0, 0)),
                   pl.BlockSpec((1, n_heads, ld, ld), lambda i: (i, 0, 0, 0)),
                   pl.BlockSpec((1, n_heads, ld, le), lambda i: (i, 0, 0, 0))],
        out_shape=[jax.ShapeDtypeStruct((b, ld, d), jnp.float32),
                   jax.ShapeDtypeStruct((b, n_heads, ld, ld), jnp.float32),
                   jax.ShapeDtypeStruct((b, n_heads, ld, le), jnp.float32)],
        compiler_params=pltpu.CompilerParams(dimension_semantics=("parallel",)),
    )(x, cross, *weights)
    return out, sattn, cattn


def pallas_layernorm(x2d, g, b):
    return pl.pallas_call(
        _layernorm_kernel,
        out_shape=jax.ShapeDtypeStruct(x2d.shape, jnp.float32),
        in_specs=[_VMEM] * 3, out_specs=_VMEM,
    )(x2d, g, b)


def pallas_norm_proj(x2d, g, b, w, bp):
    return pl.pallas_call(
        _norm_proj_kernel,
        out_shape=jax.ShapeDtypeStruct((x2d.shape[0], w.shape[1]), jnp.float32),
        in_specs=[_VMEM] * 5, out_specs=_VMEM,
    )(x2d, g, b, w, bp)


# ----------------------------- model pieces ----------------------------------

def positional_encoding(length, d_model):
    pos = jnp.arange(length, dtype=jnp.float32)[:, None]
    div = jnp.exp(jnp.arange(0, d_model, 2, dtype=jnp.float32)
                  * (-math.log(10000.0) / d_model))
    pe = jnp.zeros((length, d_model), jnp.float32)
    pe = pe.at[:, 0::2].set(jnp.sin(pos * div))
    pe = pe.at[:, 1::2].set(jnp.cos(pos * div))
    return pe


def data_embedding(p, x, x_mark, d_model):
    # TODO(synk): circular neighbor gather kept in XLA (jnp.roll); an in-kernel
    # pltpu.roll would need sublane rolls on non-8-aligned seq lengths (L_dec=12).
    b, l, c = x.shape
    xcat = jnp.concatenate([jnp.roll(x, 1, axis=1), x, jnp.roll(x, -1, axis=1)],
                           axis=-1).reshape(b * l, 3 * c)
    xm = x_mark.reshape(b * l, -1)
    pe = jnp.tile(positional_encoding(l, d_model), (b, 1))
    # dropout omitted (eval mode)
    return pallas_embedding(xcat, xm, pe, p['w_conv_flat'], p['w_time']).reshape(b, l, d_model)


def transformer_forward(params, cfg, past_values, past_time_features,
                        future_values, future_time_features):
    d_model, n_heads = cfg['d_model'], cfg['n_heads']

    # ---- encoder ----
    x = data_embedding(params['enc_emb'], past_values, past_time_features, d_model)
    enc_attns = []
    for _ in range(cfg['num_enc_layers']):   # PyTorch reuses ONE layer object -> shared weights
        x, a = pallas_encoder_layer(x, params['enc_layer'], n_heads)
        enc_attns.append(a)
    b, l, d = x.shape
    enc_out = pallas_layernorm(x.reshape(b * l, d),
                               params['enc_norm']['g'],
                               params['enc_norm']['b']).reshape(b, l, d)

    # ---- decoder ----
    y = data_embedding(params['dec_emb'], future_values, future_time_features, d_model)
    dec_attns, cross_attns = [], []
    for _ in range(cfg['num_dec_layers']):
        y, sa, ca = pallas_decoder_layer(y, enc_out, params['dec_layer'], n_heads)
        dec_attns.append(sa)
        cross_attns.append(ca)
    b2, l2, _ = y.shape
    dec_out = pallas_norm_proj(y.reshape(b2 * l2, d),
                               params['dec_norm']['g'], params['dec_norm']['b'],
                               params['proj']['w'], params['proj']['b']
                               ).reshape(b2, l2, cfg['c_out'])

    return {'last_hidden_states': dec_out,
            'encoder_attentions': enc_attns,
            'decoder_attentions': dec_attns,
            'cross_attentions': cross_attns}


# --------------------------- parameter handling -------------------------------

def init_params(key, cfg):
    """Raw parameters in PyTorch-like layout."""
    d, f = cfg['d_model'], cfg['d_ff']
    keys = iter(jax.random.split(key, 64))

    def dense(din, dout):
        return {'w': jax.random.normal(next(keys), (din, dout), jnp.float32) * 0.02,
                'b': jnp.zeros((dout,), jnp.float32)}

    def norm():
        return {'g': jnp.ones((d,), jnp.float32), 'b': jnp.zeros((d,), jnp.float32)}

    def attn():
        return {'wq': dense(d, d), 'wk': dense(d, d), 'wv': dense(d, d), 'wo': dense(d, d)}

    def ffn():
        return {'w1': dense(d, f), 'w2': dense(f, d)}

    def embedding(c_in):
        # PyTorch Conv1d weight layout: (out_ch=d_model, in_ch=c_in, k=3), no bias.
        wc = jax.random.normal(next(keys), (d, c_in, 3), jnp.float32) * 0.02
        w_time = jax.random.normal(next(keys), (cfg['time_feat_dim'], d), jnp.float32) * 0.02
        return {'w_conv': wc, 'w_time': w_time}

    return {
        'enc_emb': embedding(cfg['enc_in']),
        'dec_emb': embedding(cfg['dec_in']),
        'enc_layer': {'attn': attn(), 'norm1': norm(), 'ffn': ffn(), 'norm2': norm()},
        'enc_norm': norm(),
        'dec_layer': {'self_attn': attn(), 'cross_attn': attn(),
                      'norm1': norm(), 'norm2': norm(), 'norm3': norm(), 'ffn': ffn()},
        'dec_norm': norm(),
        'proj': dense(d, cfg['c_out']),
    }


def prepare_params(raw, cfg):
    """Convert raw params to the fused kernel layout:
       - Conv1d weight (d, c, 3) -> (3c, d), rows ordered [x[t-1] | x[t] | x[t+1]]
       - Wk|Wv concatenated into (d, 2d); 1/sqrt(d_head) folded into Wq/bq
       - biases and norm params stored as (1, dim) rows."""
    d, h = cfg['d_model'], cfg['n_heads']
    scale = 1.0 / math.sqrt(d // h)   # reference scale=None -> 1/sqrt(d_keys)

    def row(v):
        return v.reshape(1, -1)

    def attn(a):
        return {'wq': a['wq']['w'] * scale, 'bq': row(a['wq']['b'] * scale),
                'wkv': jnp.concatenate([a['wk']['w'], a['wv']['w']], axis=1),
                'bkv': row(jnp.concatenate([a['wk']['b'], a['wv']['b']])),
                'wo': a['wo']['w'], 'bo': row(a['wo']['b'])}

    def norm(n):
        return {'g': row(n['g']), 'b': row(n['b'])}

    def emb(e):
        c_in = e['w_conv'].shape[1]
        w_flat = jnp.transpose(e['w_conv'], (2, 1, 0)).reshape(3 * c_in, d)
        return {'w_conv_flat': w_flat, 'w_time': e['w_time']}

    enc, dec = raw['enc_layer'], raw['dec_layer']
    return {
        'enc_emb': emb(raw['enc_emb']),
        'dec_emb': emb(raw['dec_emb']),
        'enc_layer': {**attn(enc['attn']),
                      'g1': row(enc['norm1']['g']), 'bn1': row(enc['norm1']['b']),
                      'w1': enc['ffn']['w1']['w'], 'b1': row(enc['ffn']['w1']['b']),
                      'w2': enc['ffn']['w2']['w'], 'b2': row(enc['ffn']['w2']['b']),
                      'g2': row(enc['norm2']['g']), 'bn2': row(enc['norm2']['b'])},
        'enc_norm': norm(raw['enc_norm']),
        'dec_layer': {'sa': attn(dec['self_attn']), 'ca': attn(dec['cross_attn']),
                      'g1': row(dec['norm1']['g']), 'bn1': row(dec['norm1']['b']),
                      'g2': row(dec['norm2']['g']), 'bn2': row(dec['norm2']['b']),
                      'w1': dec['ffn']['w1']['w'], 'b1': row(dec['ffn']['w1']['b']),
                      'w2': dec['ffn']['w2']['w'], 'b2': row(dec['ffn']['w2']['b']),
                      'g3': row(dec['norm3']['g']), 'bn3': row(dec['norm3']['b'])},
        'dec_norm': norm(raw['dec_norm']),
        'proj': {'w': raw['proj']['w'], 'b': row(raw['proj']['b'])},
    }


# ----------------------------------- main -------------------------------------

if __name__ == "__main__":
    cfg = dict(d_model=32, n_heads=4, d_ff=64, enc_in=7, dec_in=7, c_out=7,
               num_enc_layers=2, num_dec_layers=1, time_feat_dim=4)  # freq='h' -> 4 time feats

    key = jax.random.PRNGKey(0)
    k_params, k1, k2, k3, k4 = jax.random.split(key, 5)
    params = prepare_params(init_params(k_params, cfg), cfg)

    B, L_ENC, L_DEC = 2, 16, 12
    past_values = jax.random.normal(k1, (B, L_ENC, cfg['enc_in']), jnp.float32)
    past_time_features = jax.random.normal(k2, (B, L_ENC, cfg['time_feat_dim']), jnp.float32)
    future_values = jax.random.normal(k3, (B, L_DEC, cfg['dec_in']), jnp.float32)
    future_time_features = jax.random.normal(k4, (B, L_DEC, cfg['time_feat_dim']), jnp.float32)

    @jax.jit
    def run(p, pv, ptf, fv, ftf):
        return transformer_forward(p, cfg, pv, ptf, fv, ftf)

    out = run(params, past_values, past_time_features, future_values, future_time_features)
    jax.block_until_ready(out)

    assert out['last_hidden_states'].shape == (B, L_DEC, cfg['c_out'])
    assert out['encoder_attentions'][0].shape == (B, cfg['n_heads'], L_ENC, L_ENC)
    assert out['decoder_attentions'][0].shape == (B, cfg['n_heads'], L_DEC, L_DEC)
    assert out['cross_attentions'][0].shape == (B, cfg['n_heads'], L_DEC, L_ENC)
    print("KERNEL_OK")
</pallas_src>

<mosaic_0001>
module attributes {stable_mosaic.version = 11 : i64} {
  func.func @_embedding_kernel(%arg0: memref<32x21xf32, #tpu.memory_space<vmem>>, %arg1: memref<32x4xf32, #tpu.memory_space<vmem>>, %arg2: memref<32x32xf32, #tpu.memory_space<vmem>>, %arg3: memref<21x32xf32, #tpu.memory_space<vmem>>, %arg4: memref<4x32xf32, #tpu.memory_space<vmem>>, %arg5: memref<32x32xf32, #tpu.memory_space<vmem>>) attributes {dimension_semantics = [], scalar_prefetch = 0 : i64, scratch_operands = 0 : i64, tpu.core_type = #tpu.core_type<tc>} {
    %c0 = arith.constant 0 : index
    %c0_0 = arith.constant 0 : index
    %0 = vector.load %arg0[%c0, %c0_0] : memref<32x21xf32, #tpu.memory_space<vmem>>, vector<32x21xf32>
    %c0_1 = arith.constant 0 : index
    %c0_2 = arith.constant 0 : index
    %1 = vector.load %arg3[%c0_1, %c0_2] : memref<21x32xf32, #tpu.memory_space<vmem>>, vector<21x32xf32>
    %cst = arith.constant dense<0.000000e+00> : vector<32x32xf32>
    %2 = tpu.matmul %0, %1, %cst {dimension_numbers = #tpu.dot_dimension_numbers<[1], [0], [0], [1], [0, 0, 1, 1], [], []>} : vector<32x21xf32>, vector<21x32xf32>, vector<32x32xf32> -> vector<32x32xf32>
    %c0_3 = arith.constant 0 : index
    %c0_4 = arith.constant 0 : index
    %3 = vector.load %arg1[%c0_3, %c0_4] : memref<32x4xf32, #tpu.memory_space<vmem>>, vector<32x4xf32>
    %c0_5 = arith.constant 0 : index
    %c0_6 = arith.constant 0 : index
    %4 = vector.load %arg4[%c0_5, %c0_6] : memref<4x32xf32, #tpu.memory_space<vmem>>, vector<4x32xf32>
    %cst_7 = arith.constant dense<0.000000e+00> : vector<32x32xf32>
    %5 = tpu.matmul %3, %4, %cst_7 {dimension_numbers = #tpu.dot_dimension_numbers<[1], [0], [0], [1], [0, 0, 1, 1], [], []>} : vector<32x4xf32>, vector<4x32xf32>, vector<32x32xf32> -> vector<32x32xf32>
    %6 = arith.addf %2, %5 : vector<32x32xf32>
    %c0_8 = arith.constant 0 : index
    %c0_9 = arith.constant 0 : index
    %7 = vector.load %arg2[%c0_8, %c0_9] : memref<32x32xf32, #tpu.memory_space<vmem>>, vector<32x32xf32>
    %8 = arith.addf %6, %7 : vector<32x32xf32>
    %c0_10 = arith.constant 0 : index
    %c0_11 = arith.constant 0 : index
    %9 = vector.load %arg5[%c0_10, %c0_11] : memref<32x32xf32, #tpu.memory_space<vmem>>, vector<32x32xf32>
    tpu.vector_store %arg5[%c0_10, %c0_11], %8 {strides = array<i32>} : memref<32x32xf32, #tpu.memory_space<vmem>>, vector<32x32xf32>,
    return
  }
}

module attributes {stable_mosaic.version = 11 : i64} {
  func.func @_layernorm_kernel(%arg0: memref<32x32xf32, #tpu.memory_space<vmem>>, %arg1: memref<1x32xf32, #tpu.memory_space<vmem>>, %arg2: memref<1x32xf32, #tpu.memory_space<vmem>>, %arg3: memref<32x32xf32, #tpu.memory_space<vmem>>) attributes {dimension_semantics = [], scalar_prefetch = 0 : i64, scratch_operands = 0 : i64, tpu.core_type = #tpu.core_type<tc>} {
    %c0 = arith.constant 0 : index
    %c0_0 = arith.constant 0 : index
    %0 = vector.load %arg0[%c0, %c0_0] : memref<32x32xf32, #tpu.memory_space<vmem>>, vector<32x32xf32>
    %c0_1 = arith.constant 0 : index
    %c0_2 = arith.constant 0 : index
    %1 = vector.load %arg1[%c0_1, %c0_2] : memref<1x32xf32, #tpu.memory_space<vmem>>, vector<1x32xf32>
    %c0_3 = arith.constant 0 : index
    %c0_4 = arith.constant 0 : index
    %2 = vector.load %arg2[%c0_3, %c0_4] : memref<1x32xf32, #tpu.memory_space<vmem>>, vector<1x32xf32>
    %cst = arith.constant dense<0.000000e+00> : vector<32xf32>
    %3 = vector.multi_reduction <add>, %0, %cst [1] : vector<32x32xf32> to vector<32xf32>
    %4 = vector.shape_cast %3 : vector<32xf32> to vector<32x1xf32>
    %cst_5 = arith.constant 3.200000e+01 : f32
    %5 = vector.broadcast %cst_5 : f32 to vector<32x1xf32>
    %6 = arith.divf %4, %5 : vector<32x1xf32>
    %7 = vector.broadcast %6 : vector<32x1xf32> to vector<32x32xf32>
    %8 = arith.subf %0, %7 : vector<32x32xf32>
    %9 = arith.mulf %8, %8 : vector<32x32xf32>
    %cst_6 = arith.constant dense<0.000000e+00> : vector<32xf32>
    %10 = vector.multi_reduction <add>, %9, %cst_6 [1] : vector<32x32xf32> to vector<32xf32>
    %11 = vector.shape_cast %10 : vector<32xf32> to vector<32x1xf32>
    %cst_7 = arith.constant 3.200000e+01 : f32
    %12 = vector.broadcast %cst_7 : f32 to vector<32x1xf32>
    %13 = arith.divf %11, %12 : vector<32x1xf32>
    %14 = vector.broadcast %6 : vector<32x1xf32> to vector<32x32xf32>
    %15 = arith.subf %0, %14 : vector<32x32xf32>
    %cst_8 = arith.constant 9.99999974E-6 : f32
    %16 = vector.broadcast %cst_8 : f32 to vector<32x1xf32>
    %17 = arith.addf %13, %16 : vector<32x1xf32>
    %18 = math.rsqrt %17 : vector<32x1xf32>
    %19 = vector.broadcast %18 : vector<32x1xf32> to vector<32x32xf32>
    %20 = arith.mulf %15, %19 : vector<32x32xf32>
    %21 = vector.broadcast %1 : vector<1x32xf32> to vector<32x32xf32>
    %22 = arith.mulf %20, %21 : vector<32x32xf32>
    %23 = vector.broadcast %2 : vector<1x32xf32> to vector<32x32xf32>
    %24 = arith.addf %22, %23 : vector<32x32xf32>
    %c0_9 = arith.constant 0 : index
    %c0_10 = arith.constant 0 : index
    %25 = vector.load %arg3[%c0_9, %c0_10] : memref<32x32xf32, #tpu.memory_space<vmem>>, vector<32x32xf32>
    tpu.vector_store %arg3[%c0_9, %c0_10], %24 {strides = array<i32>} : memref<32x32xf32, #tpu.memory_space<vmem>>, vector<32x32xf32>,
    return
  }
}

module attributes {stable_mosaic.version = 11 : i64} {
  func.func @_encoder_layer_kernel(%arg0: i32, %arg1: memref<1x16x32xf32, #tpu.memory_space<vmem>>, %arg2: memref<32x32xf32, #tpu.memory_space<vmem>>, %arg3: memref<1x32xf32, #tpu.memory_space<vmem>>, %arg4: memref<32x64xf32, #tpu.memory_space<vmem>>, %arg5: memref<1x64xf32, #tpu.memory_space<vmem>>, %arg6: memref<32x32xf32, #tpu.memory_space<vmem>>, %arg7: memref<1x32xf32, #tpu.memory_space<vmem>>, %arg8: memref<1x32xf32, #tpu.memory_space<vmem>>, %arg9: memref<1x32xf32, #tpu.memory_space<vmem>>, %arg10: memref<32x64xf32, #tpu.memory_space<vmem>>, %arg11: memref<1x64xf32, #tpu.memory_space<vmem>>, %arg12: memref<64x32xf32, #tpu.memory_space<vmem>>, %arg13: memref<1x32xf32, #tpu.memory_space<vmem>>, %arg14: memref<1x32xf32, #tpu.memory_space<vmem>>, %arg15: memref<1x32xf32, #tpu.memory_space<vmem>>, %arg16: memref<1x16x32xf32, #tpu.memory_space<vmem>>, %arg17: memref<1x4x16x16xf32, #tpu.memory_space<vmem>>) attributes {dimension_semantics = [#tpu.dimension_semantics<parallel>], iteration_bounds = array<i64: 2>, scalar_prefetch = 0 : i64, scratch_operands = 0 : i64, tpu.core_type = #tpu.core_type<tc>, window_params = [{transform_indices = @transform_0, window_bounds = array<i64: 1, 16, 32>}, {pipeline_mode = #tpu.pipeline_mode<synchronous>, transform_indices = @transform_1, window_bounds = array<i64: 32, 32>}, {pipeline_mode = #tpu.pipeline_mode<synchronous>, transform_indices = @transform_2, window_bounds = array<i64: 1, 32>}, {pipeline_mode = #tpu.pipeline_mode<synchronous>, transform_indices = @transform_3, window_bounds = array<i64: 32, 64>}, {pipeline_mode = #tpu.pipeline_mode<synchronous>, transform_indices = @transform_4, window_bounds = array<i64: 1, 64>}, {pipeline_mode = #tpu.pipeline_mode<synchronous>, transform_indices = @transform_5, window_bounds = array<i64: 32, 32>}, {pipeline_mode = #tpu.pipeline_mode<synchronous>, transform_indices = @transform_6, window_bounds = array<i64: 1, 32>}, {pipeline_mode = #tpu.pipeline_mode<synchronous>, transform_indices = @transform_7, window_bounds = array<i64: 1, 32>}, {pipeline_mode = #tpu.pipeline_mode<synchronous>, transform_indices = @transform_8, window_bounds = array<i64: 1, 32>}, {pipeline_mode = #tpu.pipeline_mode<synchronous>, transform_indices = @transform_9, window_bounds = array<i64: 32, 64>}, {pipeline_mode = #tpu.pipeline_mode<synchronous>, transform_indices = @transform_10, window_bounds = array<i64: 1, 64>}, {pipeline_mode = #tpu.pipeline_mode<synchronous>, transform_indices = @transform_11, window_bounds = array<i64: 64, 32>}, {pipeline_mode = #tpu.pipeline_mode<synchronous>, transform_indices = @transform_12, window_bounds = array<i64: 1, 32>}, {pipeline_mode = #tpu.pipeline_mode<synchronous>, transform_indices = @transform_13, window_bounds = array<i64: 1, 32>}, {pipeline_mode = #tpu.pipeline_mode<synchronous>, transform_indices = @transform_14, window_bounds = array<i64: 1, 32>}, {transform_indices = @transform_15, window_bounds = array<i64: 1, 16, 32>}, {transform_indices = @transform_16, window_bounds = array<i64: 1, 4, 16, 16>}]} {
    %c0 = arith.constant 0 : index
    %c0_0 = arith.constant 0 : index
    %c0_1 = arith.constant 0 : index
    %0 = vector.load %arg1[%c0, %c0_0, %c0_1] : memref<1x16x32xf32, #tpu.memory_space<vmem>>, vector<1x16x32xf32>
    %1 = vector.shape_cast %0 : vector<1x16x32xf32> to vector<16x32xf32>
    %c0_2 = arith.constant 0 : index
    %c0_3 = arith.constant 0 : index
    %2 = vector.load %arg2[%c0_2, %c0_3] : memref<32x32xf32, #tpu.memory_space<vmem>>, vector<32x32xf32>
    %c0_4 = arith.constant 0 : index
    %c0_5 = arith.constant 0 : index
    %3 = vector.load %arg3[%c0_4, %c0_5] : memref<1x32xf32, #tpu.memory_space<vmem>>, vector<1x32xf32>
    %c0_6 = arith.constant 0 : index
    %c0_7 = arith.constant 0 : index
    %4 = vector.load %arg4[%c0_6, %c0_7] : memref<32x64xf32, #tpu.memory_space<vmem>>, vector<32x64xf32>
    %c0_8 = arith.constant 0 : index
    %c0_9 = arith.constant 0 : index
    %5 = vector.load %arg5[%c0_8, %c0_9] : memref<1x64xf32, #tpu.memory_space<vmem>>, vector<1x64xf32>
    %c0_10 = arith.constant 0 : index
    %c0_11 = arith.constant 0 : index
    %6 = vector.load %arg6[%c0_10, %c0_11] : memref<32x32xf32, #tpu.memory_space<vmem>>, vector<32x32xf32>
    %c0_12 = arith.constant 0 : index
    %c0_13 = arith.constant 0 : index
    %7 = vector.load %arg7[%c0_12, %c0_13] : memref<1x32xf32, #tpu.memory_space<vmem>>, vector<1x32xf32>
    %cst = arith.constant dense<0.000000e+00> : vector<16x32xf32>
    %8 = tpu.matmul %1, %2, %cst {dimension_numbers = #tpu.dot_dimension_numbers<[1], [0], [0], [1], [0, 0, 1, 1], [], []>} : vector<16x32xf32>, vector<32x32xf32>, vector<16x32xf32> -> vector<16x32xf32>
    %9 = vector.broadcast %3 : vector<1x32xf32> to vector<16x32xf32>
    %10 = arith.addf %8, %9 : vector<16x32xf32>
    %cst_14 = arith.constant dense<0.000000e+00> : vector<16x64xf32>
    %11 = tpu.matmul %1, %4, %cst_14 {dimension_numbers = #tpu.dot_dimension_numbers<[1], [0], [0], [1], [0, 0, 1, 1], [], []>} : vector<16x32xf32>, vector<32x64xf32>, vector<16x64xf32> -> vector<16x64xf32>
    %12 = vector.broadcast %5 : vector<1x64xf32> to vector<16x64xf32>
    %13 = arith.addf %11, %12 : vector<16x64xf32>
    %14 = vector.extract_strided_slice %13 {offsets = [0, 0], sizes = [16, 32], strides = [1, 1]} : vector<16x64xf32> to vector<16x32xf32>
    %15 = vector.extract_strided_slice %13 {offsets = [0, 32], sizes = [16, 32], strides = [1, 1]} : vector<16x64xf32> to vector<16x32xf32>
    %cst_15 = arith.constant 0.000000e+00 : f32
    %16 = vector.broadcast %cst_15 : f32 to vector<16x32xf32>
    %17 = vector.broadcast %7 : vector<1x32xf32> to vector<16x32xf32>
    %18 = arith.addf %16, %17 : vector<16x32xf32>
    %19 = vector.extract_strided_slice %10 {offsets = [0, 0], sizes = [16, 8], strides = [1, 1]} : vector<16x32xf32> to vector<16x8xf32>
    %20 = vector.extract_strided_slice %14 {offsets = [0, 0], sizes = [16, 8], strides = [1, 1]} : vector<16x32xf32> to vector<16x8xf32>
    %cst_16 = arith.constant dense<0.000000e+00> : vector<16x16xf32>
    %21 = tpu.matmul %19, %20, %cst_16 {dimension_numbers = #tpu.dot_dimension_numbers<[1], [1], [0], [0], [0, 0, 1, 0], [], []>} : vector<16x8xf32>, vector<16x8xf32>, vector<16x16xf32> -> vector<16x16xf32>
    %cst_17 = arith.constant dense<0xFF800000> : vector<16xf32>
    %22 = vector.multi_reduction <maximumf>, %21, %cst_17 [1] : vector<16x16xf32> to vector<16xf32>
    %23 = vector.shape_cast %22 : vector<16xf32> to vector<16x1xf32>
    %24 = vector.broadcast %23 : vector<16x1xf32> to vector<16x16xf32>
    %25 = arith.subf %21, %24 : vector<16x16xf32>
    %26 = math.exp %25 : vector<16x16xf32>
    %cst_18 = arith.constant dense<0.000000e+00> : vector<16xf32>
    %27 = vector.multi_reduction <add>, %26, %cst_18 [1] : vector<16x16xf32> to vector<16xf32>
    %28 = vector.shape_cast %27 : vector<16xf32> to vector<16x1xf32>
    %29 = tpu.reciprocal %28 {approx = true} : vector<16x1xf32> -> vector<16x1xf32>
    %30 = vector.broadcast %29 : vector<16x1xf32> to vector<16x16xf32>
    %31 = arith.mulf %26, %30 : vector<16x16xf32>
    %c0_19 = arith.constant 0 : index
    %c0_20 = arith.constant 0 : index
    %c0_21 = arith.constant 0 : index
    %c0_22 = arith.constant 0 : index
    %32 = vector.load %arg17[%c0_19, %c0_20, %c0_21, %c0_22] : memref<1x4x16x16xf32, #tpu.memory_space<vmem>>, vector<1x1x16x16xf32>
    %33 = vector.shape_cast %32 : vector<1x1x16x16xf32> to vector<16x16xf32>
    %34 = vector.shape_cast %31 : vector<16x16xf32> to vector<1x1x16x16xf32>
    tpu.vector_store %arg17[%c0_19, %c0_20, %c0_21, %c0_22], %34 {strides = array<i32>} : memref<1x4x16x16xf32, #tpu.memory_space<vmem>>, vector<1x1x16x16xf32>,
    %35 = vector.extract_strided_slice %15 {offsets = [0, 0], sizes = [16, 8], strides = [1, 1]} : vector<16x32xf32> to vector<16x8xf32>
    %cst_23 = arith.constant dense<0.000000e+00> : vector<16x8xf32>
    %36 = tpu.matmul %31, %35, %cst_23 {dimension_numbers = #tpu.dot_dimension_numbers<[1], [0], [0], [1], [0, 0, 1, 1], [], []>} : vector<16x16xf32>, vector<16x8xf32>, vector<16x8xf32> -> vector<16x8xf32>
    %37 = vector.extract_strided_slice %6 {offsets = [0, 0], sizes = [8, 32], strides = [1, 1]} : vector<32x32xf32> to vector<8x32xf32>
    %cst_24 = arith.constant dense<0.000000e+00> : vector<16x32xf32>
    %38 = tpu.matmul %36, %37, %cst_24 {dimension_numbers = #tpu.dot_dimension_numbers<[1], [0], [0], [1], [0, 0, 1, 1], [], []>} : vector<16x8xf32>, vector<8x32xf32>, vector<16x32xf32> -> vector<16x32xf32>
    %39 = arith.addf %18, %38 : vector<16x32xf32>
    %40 = vector.extract_strided_slice %10 {offsets = [0, 8], sizes = [16, 8], strides = [1, 1]} : vector<16x32xf32> to vector<16x8xf32>
    %41 = vector.extract_strided_slice %14 {offsets = [0, 8], sizes = [16, 8], strides = [1, 1]} : vector<16x32xf32> to vector<16x8xf32>
    %cst_25 = arith.constant dense<0.000000e+00> : vector<16x16xf32>
    %42 = tpu.matmul %40, %41, %cst_25 {dimension_numbers = #tpu.dot_dimension_numbers<[1], [1], [0], [0], [0, 0, 1, 0], [], []>} : vector<16x8xf32>, vector<16x8xf32>, vector<16x16xf32> -> vector<16x16xf32>
    %cst_26 = arith.constant dense<0xFF800000> : vector<16xf32>
    %43 = vector.multi_reduction <maximumf>, %42, %cst_26 [1] : vector<16x16xf32> to vector<16xf32>
    %44 = vector.shape_cast %43 : vector<16xf32> to vector<16x1xf32>
    %45 = vector.broadcast %44 : vector<16x1xf32> to vector<16x16xf32>
    %46 = arith.subf %42, %45 : vector<16x16xf32>
    %47 = math.exp %46 : vector<16x16xf32>
    %cst_27 = arith.constant dense<0.000000e+00> : vector<16xf32>
    %48 = vector.multi_reduction <add>, %47, %cst_27 [1] : vector<16x16xf32> to vector<16xf32>
    %49 = vector.shape_cast %48 : vector<16xf32> to vector<16x1xf32>
    %50 = tpu.reciprocal %49 {approx = true} : vector<16x1xf32> -> vector<16x1xf32>
    %51 = vector.broadcast %50 : vector<16x1xf32> to vector<16x16xf32>
    %52 = arith.mulf %47, %51 : vector<16x16xf32>
    %c0_28 = arith.constant 0 : index
    %c1 = arith.constant 1 : index
    %c0_29 = arith.constant 0 : index
    %c0_30 = arith.constant 0 : index
    %53 = vector.load %arg17[%c0_28, %c1, %c0_29, %c0_30] : memref<1x4x16x16xf32, #tpu.memory_space<vmem>>, vector<1x1x16x16xf32>
    %54 = vector.shape_cast %53 : vector<1x1x16x16xf32> to vector<16x16xf32>
    %55 = vector.shape_cast %52 : vector<16x16xf32> to vector<1x1x16x16xf32>
    tpu.vector_store %arg17[%c0_28, %c1, %c0_29, %c0_30], %55 {strides = array<i32>} : memref<1x4x16x16xf32, #tpu.memory_space<vmem>>, vector<1x1x16x16xf32>,
    %56 = vector.extract_strided_slice %15 {offsets = [0, 8], sizes = [16, 8], strides = [1, 1]} : vector<16x32xf32> to vector<16x8xf32>
    %cst_31 = arith.constant dense<0.000000e+00> : vector<16x8xf32>
    %57 = tpu.matmul %52, %56, %cst_31 {dimension_numbers = #tpu.dot_dimension_numbers<[1], [0], [0], [1], [0, 0, 1, 1], [], []>} : vector<16x16xf32>, vector<16x8xf32>, vector<16x8xf32> -> vector<16x8xf32>
    %58 = vector.extract_strided_slice %6 {offsets = [8, 0], sizes = [8, 32], strides = [1, 1]} : vector<32x32xf32> to vector<8x32xf32>
    %cst_32 = arith.constant dense<0.000000e+00> : vector<16x32xf32>
    %59 = tpu.matmul %57, %58, %cst_32 {dimension_numbers = #tpu.dot_dimension_numbers<[1], [0], [0], [1], [0, 0, 1, 1], [], []>} : vector<16x8xf32>, vector<8x32xf32>, vector<16x32xf32> -> vector<16x32xf32>
    %60 = arith.addf %39, %59 : vector<16x32xf32>
    %61 = vector.extract_strided_slice %10 {offsets = [0, 16], sizes = [16, 8], strides = [1, 1]} : vector<16x32xf32> to vector<16x8xf32>
    %62 = vector.extract_strided_slice %14 {offsets = [0, 16], sizes = [16, 8], strides = [1, 1]} : vector<16x32xf32> to vector<16x8xf32>
    %cst_33 = arith.constant dense<0.000000e+00> : vector<16x16xf32>
    %63 = tpu.matmul %61, %62, %cst_33 {dimension_numbers = #tpu.dot_dimension_numbers<[1], [1], [0], [0], [0, 0, 1, 0], [], []>} : vector<16x8xf32>, vector<16x8xf32>, vector<16x16xf32> -> vector<16x16xf32>
    %cst_34 = arith.constant dense<0xFF800000> : vector<16xf32>
    %64 = vector.multi_reduction <maximumf>, %63, %cst_34 [1] : vector<16x16xf32> to vector<16xf32>
    %65 = vector.shape_cast %64 : vector<16xf32> to vector<16x1xf32>
    %66 = vector.broadcast %65 : vector<16x1xf32> to vector<16x16xf32>
    %67 = arith.subf %63, %66 : vector<16x16xf32>
    %68 = math.exp %67 : vector<16x16xf32>
    %cst_35 = arith.constant dense<0.000000e+00> : vector<16xf32>
    %69 = vector.multi_reduction <add>, %68, %cst_35 [1] : vector<16x16xf32> to vector<16xf32>
    %70 = vector.shape_cast %69 : vector<16xf32> to vector<16x1xf32>
    %71 = tpu.reciprocal %70 {approx = true} : vector<16x1xf32> -> vector<16x1xf32>
    %72 = vector.broadcast %71 : vector<16x1xf32> to vector<16x16xf32>
    %73 = arith.mulf %68, %72 : vector<16x16xf32>
    %c0_36 = arith.constant 0 : index
    %c2 = arith.constant 2 : index
    %c0_37 = arith.constant 0 : index
    %c0_38 = arith.constant 0 : index
    %74 = vector.load %arg17[%c0_36, %c2, %c0_37, %c0_38] : memref<1x4x16x16xf32, #tpu.memory_space<vmem>>, vector<1x1x16x16xf32>
    %75 = vector.shape_cast %74 : vector<1x1x16x16xf32> to vector<16x16xf32>
    %76 = vector.shape_cast %73 : vector<16x16xf32> to vector<1x1x16x16xf32>
    tpu.vector_store %arg17[%c0_36, %c2, %c0_37, %c0_38], %76 {strides = array<i32>} : memref<1x4x16x16xf32, #tpu.memory_space<vmem>>, vector<1x1x16x16xf32>,
    %77 = vector.extract_strided_slice %15 {offsets = [0, 16], sizes = [16, 8], strides = [1, 1]} : vector<16x32xf32> to vector<16x8xf32>
    %cst_39 = arith.constant dense<0.000000e+00> : vector<16x8xf32>
    %78 = tpu.matmul %73, %77, %cst_39 {dimension_numbers = #tpu.dot_dimension_numbers<[1], [0], [0], [1], [0, 0, 1, 1], [], []>} : vector<16x16xf32>, vector<16x8xf32>, vector<16x8xf32> -> vector<16x8xf32>
    %79 = vector.extract_strided_slice %6 {offsets = [16, 0], sizes = [8, 32], strides = [1, 1]} : vector<32x32xf32> to vector<8x32xf32>
    %cst_40 = arith.constant dense<0.000000e+00> : vector<16x32xf32>
    %80 = tpu.matmul %78, %79, %cst_40 {dimension_numbers = #tpu.dot_dimension_numbers<[1], [0], [0], [1], [0, 0, 1, 1], [], []>} : vector<16x8xf32>, vector<8x32xf32>, vector<16x32xf32> -> vector<16x32xf32>
    %81 = arith.addf %60, %80 : vector<16x32xf32>
    %82 = vector.extract_strided_slice %10 {offsets = [0, 24], sizes = [16, 8], strides = [1, 1]} : vector<16x32xf32> to vector<16x8xf32>
    %83 = vector.extract_strided_slice %14 {offsets = [0, 24], sizes = [16, 8], strides = [1, 1]} : vector<16x32xf32> to vector<16x8xf32>
    %cst_41 = arith.constant dense<0.000000e+00> : vector<16x16xf32>
    %84 = tpu.matmul %82, %83, %cst_41 {dimension_numbers = #tpu.dot_dimension_numbers<[1], [1], [0], [0], [0, 0, 1, 0], [], []>} : vector<16x8xf32>, vector<16x8xf32>, vector<16x16xf32> -> vector<16x16xf32>
    %cst_42 = arith.constant dense<0xFF800000> : vector<16xf32>
    %85 = vector.multi_reduction <maximumf>, %84, %cst_42 [1] : vector<16x16xf32> to vector<16xf32>
    %86 = vector.shape_cast %85 : vector<16xf32> to vector<16x1xf32>
    %87 = vector.broadcast %86 : vector<16x1xf32> to vector<16x16xf32>
    %88 = arith.subf %84, %87 : vector<16x16xf32>
    %89 = math.exp %88 : vector<16x16xf32>
    %cst_43 = arith.constant dense<0.000000e+00> : vector<16xf32>
    %90 = vector.multi_reduction <add>, %89, %cst_43 [1] : vector<16x16xf32> to vector<16xf32>
    %91 = vector.shape_cast %90 : vector<16xf32> to vector<16x1xf32>
    %92 = tpu.reciprocal %91 {approx = true} : vector<16x1xf32> -> vector<16x1xf32>
    %93 = vector.broadcast %92 : vector<16x1xf32> to vector<16x16xf32>
    %94 = arith.mulf %89, %93 : vector<16x16xf32>
    %c0_44 = arith.constant 0 : index
    %c3 = arith.constant 3 : index
    %c0_45 = arith.constant 0 : index
    %c0_46 = arith.constant 0 : index
    %95 = vector.load %arg17[%c0_44, %c3, %c0_45, %c0_46] : memref<1x4x16x16xf32, #tpu.memory_space<vmem>>, vector<1x1x16x16xf32>
    %96 = vector.shape_cast %95 : vector<1x1x16x16xf32> to vector<16x16xf32>
    %97 = vector.shape_cast %94 : vector<16x16xf32> to vector<1x1x16x16xf32>
    tpu.vector_store %arg17[%c0_44, %c3, %c0_45, %c0_46], %97 {strides = array<i32>} : memref<1x4x16x16xf32, #tpu.memory_space<vmem>>, vector<1x1x16x16xf32>,
    %98 = vector.extract_strided_slice %15 {offsets = [0, 24], sizes = [16, 8], strides = [1, 1]} : vector<16x32xf32> to vector<16x8xf32>
    %cst_47 = arith.constant dense<0.000000e+00> : vector<16x8xf32>
    %99 = tpu.matmul %94, %98, %cst_47 {dimension_numbers = #tpu.dot_dimension_numbers<[1], [0], [0], [1], [0, 0, 1, 1], [], []>} : vector<16x16xf32>, vector<16x8xf32>, vector<16x8xf32> -> vector<16x8xf32>
    %100 = vector.extract_strided_slice %6 {offsets = [24, 0], sizes = [8, 32], strides = [1, 1]} : vector<32x32xf32> to vector<8x32xf32>
    %cst_48 = arith.constant dense<0.000000e+00> : vector<16x32xf32>
    %101 = tpu.matmul %99, %100, %cst_48 {dimension_numbers = #tpu.dot_dimension_numbers<[1], [0], [0], [1], [0, 0, 1, 1], [], []>} : vector<16x8xf32>, vector<8x32xf32>, vector<16x32xf32> -> vector<16x32xf32>
    %102 = arith.addf %81, %101 : vector<16x32xf32>
    %103 = arith.addf %1, %102 : vector<16x32xf32>
    %c0_49 = arith.constant 0 : index
    %c0_50 = arith.constant 0 : index
    %104 = vector.load %arg8[%c0_49, %c0_50] : memref<1x32xf32, #tpu.memory_space<vmem>>, vector<1x32xf32>
    %c0_51 = arith.constant 0 : index
    %c0_52 = arith.constant 0 : index
    %105 = vector.load %arg9[%c0_51, %c0_52] : memref<1x32xf32, #tpu.memory_space<vmem>>, vector<1x32xf32>
    %cst_53 = arith.constant dense<0.000000e+00> : vector<16xf32>
    %106 = vector.multi_reduction <add>, %103, %cst_53 [1] : vector<16x32xf32> to vector<16xf32>
    %107 = vector.shape_cast %106 : vector<16xf32> to vector<16x1xf32>
    %cst_54 = arith.constant 3.200000e+01 : f32
    %108 = vector.broadcast %cst_54 : f32 to vector<16x1xf32>
    %109 = arith.divf %107, %108 : vector<16x1xf32>
    %110 = vector.broadcast %109 : vector<16x1xf32> to vector<16x32xf32>
    %111 = arith.subf %103, %110 : vector<16x32xf32>
    %112 = arith.mulf %111, %111 : vector<16x32xf32>
    %cst_55 = arith.constant dense<0.000000e+00> : vector<16xf32>
    %113 = vector.multi_reduction <add>, %112, %cst_55 [1] : vector<16x32xf32> to vector<16xf32>
    %114 = vector.shape_cast %113 : vector<16xf32> to vector<16x1xf32>
    %cst_56 = arith.constant 3.200000e+01 : f32
    %115 = vector.broadcast %cst_56 : f32 to vector<16x1xf32>
    %116 = arith.divf %114, %115 : vector<16x1xf32>
    %117 = vector.broadcast %109 : vector<16x1xf32> to vector<16x32xf32>
    %118 = arith.subf %103, %117 : vector<16x32xf32>
    %cst_57 = arith.constant 9.99999974E-6 : f32
    %119 = vector.broadcast %cst_57 : f32 to vector<16x1xf32>
    %120 = arith.addf %116, %119 : vector<16x1xf32>
    %121 = math.rsqrt %120 : vector<16x1xf32>
    %122 = vector.broadcast %121 : vector<16x1xf32> to vector<16x32xf32>
    %123 = arith.mulf %118, %122 : vector<16x32xf32>
    %124 = vector.broadcast %104 : vector<1x32xf32> to vector<16x32xf32>
    %125 = arith.mulf %123, %124 : vector<16x32xf32>
    %126 = vector.broadcast %105 : vector<1x32xf32> to vector<16x32xf32>
    %127 = arith.addf %125, %126 : vector<16x32xf32>
    %c0_58 = arith.constant 0 : index
    %c0_59 = arith.constant 0 : index
    %128 = vector.load %arg10[%c0_58, %c0_59] : memref<32x64xf32, #tpu.memory_space<vmem>>, vector<32x64xf32>
    %cst_60 = arith.constant dense<0.000000e+00> : vector<16x64xf32>
    %129 = tpu.matmul %127, %128, %cst_60 {dimension_numbers = #tpu.dot_dimension_numbers<[1], [0], [0], [1], [0, 0, 1, 1], [], []>} : vector<16x32xf32>, vector<32x64xf32>, vector<16x64xf32> -> vector<16x64xf32>
    %c0_61 = arith.constant 0 : index
    %c0_62 = arith.constant 0 : index
    %130 = vector.load %arg11[%c0_61, %c0_62] : memref<1x64xf32, #tpu.memory_space<vmem>>, vector<1x64xf32>
    %131 = vector.broadcast %130 : vector<1x64xf32> to vector<16x64xf32>
    %132 = arith.addf %129, %131 : vector<16x64xf32>
    %cst_63 = arith.constant 5.000000e-01 : f32
    %133 = vector.broadcast %cst_63 : f32 to vector<16x64xf32>
    %134 = arith.mulf %133, %132 : vector<16x64xf32>
    %cst_64 = arith.constant 0.707106769 : f32
    %135 = vector.broadcast %cst_64 : f32 to vector<16x64xf32>
    %136 = arith.mulf %132, %135 : vector<16x64xf32>
    %137 = math.absf %136 : vector<16x64xf32>
    %cst_65 = arith.constant 0.327591091 : f32
    %138 = vector.broadcast %cst_65 : f32 to vector<16x64xf32>
    %139 = arith.mulf %138, %137 : vector<16x64xf32>
    %cst_66 = arith.constant 1.000000e+00 : f32
    %140 = vector.broadcast %cst_66 : f32 to vector<16x64xf32>
    %141 = arith.addf %140, %139 : vector<16x64xf32>
    %cst_67 = arith.constant 1.000000e+00 : f32
    %142 = vector.broadcast %cst_67 : f32 to vector<16x64xf32>
    %143 = arith.divf %142, %141 : vector<16x64xf32>
    %cst_68 = arith.constant 1.06140542 : f32
    %144 = vector.broadcast %cst_68 : f32 to vector<16x64xf32>
    %145 = arith.mulf %144, %143 : vector<16x64xf32>
    %cst_69 = arith.constant -1.45315206 : f32
    %146 = vector.broadcast %cst_69 : f32 to vector<16x64xf32>
    %147 = arith.addf %145, %146 : vector<16x64xf32>
    %148 = arith.mulf %147, %143 : vector<16x64xf32>
    %cst_70 = arith.constant 1.42141378 : f32
    %149 = vector.broadcast %cst_70 : f32 to vector<16x64xf32>
    %150 = arith.addf %148, %149 : vector<16x64xf32>
    %151 = arith.mulf %150, %143 : vector<16x64xf32>
    %cst_71 = arith.constant -0.284496725 : f32
    %152 = vector.broadcast %cst_71 : f32 to vector<16x64xf32>
    %153 = arith.addf %151, %152 : vector<16x64xf32>
    %154 = arith.mulf %153, %143 : vector<16x64xf32>
    %cst_72 = arith.constant 0.254829586 : f32
    %155 = vector.broadcast %cst_72 : f32 to vector<16x64xf32>
    %156 = arith.addf %154, %155 : vector<16x64xf32>
    %157 = arith.mulf %156, %143 : vector<16x64xf32>
    %cst_73 = arith.constant 0.000000e+00 : f32
    %158 = vector.broadcast %cst_73 : f32 to vector<16x64xf32>
    %159 = arith.subf %158, %137 : vector<16x64xf32>
    %160 = arith.mulf %159, %137 : vector<16x64xf32>
    %161 = math.exp %160 : vector<16x64xf32>
    %162 = arith.mulf %157, %161 : vector<16x64xf32>
    %cst_74 = arith.constant 1.000000e+00 : f32
    %163 = vector.broadcast %cst_74 : f32 to vector<16x64xf32>
    %164 = arith.subf %163, %162 : vector<16x64xf32>
    %cst_75 = arith.constant 0.000000e+00 : f32
    %165 = vector.broadcast %cst_75 : f32 to vector<16x64xf32>
    %166 = arith.cmpf oge, %136, %165 : vector<16x64xf32>
    %cst_76 = arith.constant 0.000000e+00 : f32
    %167 = vector.broadcast %cst_76 : f32 to vector<16x64xf32>
    %168 = arith.subf %167, %164 : vector<16x64xf32>
    %169 = arith.select %166, %164, %168 : vector<16x64xi1>, vector<16x64xf32>
    %cst_77 = arith.constant 1.000000e+00 : f32
    %170 = vector.broadcast %cst_77 : f32 to vector<16x64xf32>
    %171 = arith.addf %170, %169 : vector<16x64xf32>
    %172 = arith.mulf %134, %171 : vector<16x64xf32>
    %c0_78 = arith.constant 0 : index
    %c0_79 = arith.constant 0 : index
    %173 = vector.load %arg12[%c0_78, %c0_79] : memref<64x32xf32, #tpu.memory_space<vmem>>, vector<64x32xf32>
    %cst_80 = arith.constant dense<0.000000e+00> : vector<16x32xf32>
    %174 = tpu.matmul %172, %173, %cst_80 {dimension_numbers = #tpu.dot_dimension_numbers<[1], [0], [0], [1], [0, 0, 1, 1], [], []>} : vector<16x64xf32>, vector<64x32xf32>, vector<16x32xf32> -> vector<16x32xf32>
    %c0_81 = arith.constant 0 : index
    %c0_82 = arith.constant 0 : index
    %175 = vector.load %arg13[%c0_81, %c0_82] : memref<1x32xf32, #tpu.memory_space<vmem>>, vector<1x32xf32>
    %176 = vector.broadcast %175 : vector<1x32xf32> to vector<16x32xf32>
    %177 = arith.addf %174, %176 : vector<16x32xf32>
    %178 = arith.addf %127, %177 : vector<16x32xf32>
    %c0_83 = arith.constant 0 : index
    %c0_84 = arith.constant 0 : index
    %179 = vector.load %arg14[%c0_83, %c0_84] : memref<1x32xf32, #tpu.memory_space<vmem>>, vector<1x32xf32>
    %c0_85 = arith.constant 0 : index
    %c0_86 = arith.constant 0 : index
    %180 = vector.load %arg15[%c0_85, %c0_86] : memref<1x32xf32, #tpu.memory_space<vmem>>, vector<1x32xf32>
    %cst_87 = arith.constant dense<0.000000e+00> : vector<16xf32>
    %181 = vector.multi_reduction <add>, %178, %cst_87 [1] : vector<16x32xf32> to vector<16xf32>
    %182 = vector.shape_cast %181 : vector<16xf32> to vector<16x1xf32>
    %cst_88 = arith.constant 3.200000e+01 : f32
    %183 = vector.broadcast %cst_88 : f32 to vector<16x1xf32>
    %184 = arith.divf %182, %183 : vector<16x1xf32>
    %185 = vector.broadcast %184 : vector<16x1xf32> to vector<16x32xf32>
    %186 = arith.subf %178, %185 : vector<16x32xf32>
    %187 = arith.mulf %186, %186 : vector<16x32xf32>
    %cst_89 = arith.constant dense<0.000000e+00> : vector<16xf32>
    %188 = vector.multi_reduction <add>, %187, %cst_89 [1] : vector<16x32xf32> to vector<16xf32>
    %189 = vector.shape_cast %188 : vector<16xf32> to vector<16x1xf32>
    %cst_90 = arith.constant 3.200000e+01 : f32
    %190 = vector.broadcast %cst_90 : f32 to vector<16x1xf32>
    %191 = arith.divf %189, %190 : vector<16x1xf32>
    %192 = vector.broadcast %184 : vector<16x1xf32> to vector<16x32xf32>
    %193 = arith.subf %178, %192 : vector<16x32xf32>
    %cst_91 = arith.constant 9.99999974E-6 : f32
    %194 = vector.broadcast %cst_91 : f32 to vector<16x1xf32>
    %195 = arith.addf %191, %194 : vector<16x1xf32>
    %196 = math.rsqrt %195 : vector<16x1xf32>
    %197 = vector.broadcast %196 : vector<16x1xf32> to vector<16x32xf32>
    %198 = arith.mulf %193, %197 : vector<16x32xf32>
    %199 = vector.broadcast %179 : vector<1x32xf32> to vector<16x32xf32>
    %200 = arith.mulf %198, %199 : vector<16x32xf32>
    %201 = vector.broadcast %180 : vector<1x32xf32> to vector<16x32xf32>
    %202 = arith.addf %200, %201 : vector<16x32xf32>
    %c0_92 = arith.constant 0 : index
    %c0_93 = arith.constant 0 : index
    %c0_94 = arith.constant 0 : index
    %203 = vector.load %arg16[%c0_92, %c0_93, %c0_94] : memref<1x16x32xf32, #tpu.memory_space<vmem>>, vector<1x16x32xf32>
    %204 = vector.shape_cast %203 : vector<1x16x32xf32> to vector<16x32xf32>
    %205 = vector.shape_cast %202 : vector<16x32xf32> to vector<1x16x32xf32>
    tpu.vector_store %arg16[%c0_92, %c0_93, %c0_94], %205 {strides = array<i32>} : memref<1x16x32xf32, #tpu.memory_space<vmem>>, vector<1x16x32xf32>,
    return
  }
  func.func @transform_0(%arg0: i32) -> (i32, i32, i32) {
    %c0_i32 = arith.constant 0 : i32
    %c0_i32_0 = arith.constant 0 : i32
    %c0_i32_1 = arith.constant 0 : i32
    return %arg0, %c0_i32, %c0_i32_0 : i32, i32, i32
  }
  func.func @transform_1(%arg0: i32) -> (i32, i32) {
    %c0_i32 = arith.constant 0 : i32
    %c0_i32_0 = arith.constant 0 : i32
    %c0_i32_1 = arith.constant 0 : i32
    return %c0_i32, %c0_i32_0 : i32, i32
  }
  func.func @transform_2(%arg0: i32) -> (i32, i32) {
    %c0_i32 = arith.constant 0 : i32
    %c0_i32_0 = arith.constant 0 : i32
    %c0_i32_1 = arith.constant 0 : i32
    return %c0_i32, %c0_i32_0 : i32, i32
  }
  func.func @transform_3(%arg0: i32) -> (i32, i32) {
    %c0_i32 = arith.constant 0 : i32
    %c0_i32_0 = arith.constant 0 : i32
    %c0_i32_1 = arith.constant 0 : i32
    return %c0_i32, %c0_i32_0 : i32, i32
  }
  func.func @transform_4(%arg0: i32) -> (i32, i32) {
    %c0_i32 = arith.constant 0 : i32
    %c0_i32_0 = arith.constant 0 : i32
    %c0_i32_1 = arith.constant 0 : i32
    return %c0_i32, %c0_i32_0 : i32, i32
  }
  func.func @transform_5(%arg0: i32) -> (i32, i32) {
    %c0_i32 = arith.constant 0 : i32
    %c0_i32_0 = arith.constant 0 : i32
    %c0_i32_1 = arith.constant 0 : i32
    return %c0_i32, %c0_i32_0 : i32, i32
  }
  func.func @transform_6(%arg0: i32) -> (i32, i32) {
    %c0_i32 = arith.constant 0 : i32
    %c0_i32_0 = arith.constant 0 : i32
    %c0_i32_1 = arith.constant 0 : i32
    return %c0_i32, %c0_i32_0 : i32, i32
  }
  func.func @transform_7(%arg0: i32) -> (i32, i32) {
    %c0_i32 = arith.constant 0 : i32
    %c0_i32_0 = arith.constant 0 : i32
    %c0_i32_1 = arith.constant 0 : i32
    return %c0_i32, %c0_i32_0 : i32, i32
  }
  func.func @transform_8(%arg0: i32) -> (i32, i32) {
    %c0_i32 = arith.constant 0 : i32
    %c0_i32_0 = arith.constant 0 : i32
    %c0_i32_1 = arith.constant 0 : i32
    return %c0_i32, %c0_i32_0 : i32, i32
  }
  func.func @transform_9(%arg0: i32) -> (i32, i32) {
    %c0_i32 = arith.constant 0 : i32
    %c0_i32_0 = arith.constant 0 : i32
    %c0_i32_1 = arith.constant 0 : i32
    return %c0_i32, %c0_i32_0 : i32, i32
  }
  func.func @transform_10(%arg0: i32) -> (i32, i32) {
    %c0_i32 = arith.constant 0 : i32
    %c0_i32_0 = arith.constant 0 : i32
    %c0_i32_1 = arith.constant 0 : i32
    return %c0_i32, %c0_i32_0 : i32, i32
  }
  func.func @transform_11(%arg0: i32) -> (i32, i32) {
    %c0_i32 = arith.constant 0 : i32
    %c0_i32_0 = arith.constant 0 : i32
    %c0_i32_1 = arith.constant 0 : i32
    return %c0_i32, %c0_i32_0 : i32, i32
  }
  func.func @transform_12(%arg0: i32) -> (i32, i32) {
    %c0_i32 = arith.constant 0 : i32
    %c0_i32_0 = arith.constant 0 : i32
    %c0_i32_1 = arith.constant 0 : i32
    return %c0_i32, %c0_i32_0 : i32, i32
  }
  func.func @transform_13(%arg0: i32) -> (i32, i32) {
    %c0_i32 = arith.constant 0 : i32
    %c0_i32_0 = arith.constant 0 : i32
    %c0_i32_1 = arith.constant 0 : i32
    return %c0_i32, %c0_i32_0 : i32, i32
  }
  func.func @transform_14(%arg0: i32) -> (i32, i32) {
    %c0_i32 = arith.constant 0 : i32
    %c0_i32_0 = arith.constant 0 : i32
    %c0_i32_1 = arith.constant 0 : i32
    return %c0_i32, %c0_i32_0 : i32, i32
  }
  func.func @transform_15(%arg0: i32) -> (i32, i32, i32) {
    %c0_i32 = arith.constant 0 : i32
    %c0_i32_0 = arith.constant 0 : i32
    %c0_i32_1 = arith.constant 0 : i32
    return %arg0, %c0_i32, %c0_i32_0 : i32, i32, i32
  }
  func.func @transform_16(%arg0: i32) -> (i32, i32, i32, i32) {
    %c0_i32 = arith.constant 0 : i32
    %c0_i32_0 = arith.constant 0 : i32
    %c0_i32_1 = arith.constant 0 : i32
    %c0_i32_2 = arith.constant 0 : i32
    return %arg0, %c0_i32, %c0_i32_0, %c0_i32_1 : i32, i32, i32, i32
  }
}

module attributes {stable_mosaic.version = 11 : i64} {
  func.func @_embedding_kernel(%arg0: memref<24x21xf32, #tpu.memory_space<vmem>>, %arg1: memref<24x4xf32, #tpu.memory_space<vmem>>, %arg2: memref<24x32xf32, #tpu.memory_space<vmem>>, %arg3: memref<21x32xf32, #tpu.memory_space<vmem>>, %arg4: memref<4x32xf32, #tpu.memory_space<vmem>>, %arg5: memref<24x32xf32, #tpu.memory_space<vmem>>) attributes {dimension_semantics = [], scalar_prefetch = 0 : i64, scratch_operands = 0 : i64, tpu.core_type = #tpu.core_type<tc>} {
    %c0 = arith.constant 0 : index
    %c0_0 = arith.constant 0 : index
    %0 = vector.load %arg0[%c0, %c0_0] : memref<24x21xf32, #tpu.memory_space<vmem>>, vector<24x21xf32>
    %c0_1 = arith.constant 0 : index
    %c0_2 = arith.constant 0 : index
    %1 = vector.load %arg3[%c0_1, %c0_2] : memref<21x32xf32, #tpu.memory_space<vmem>>, vector<21x32xf32>
    %cst = arith.constant dense<0.000000e+00> : vector<24x32xf32>
    %2 = tpu.matmul %0, %1, %cst {dimension_numbers = #tpu.dot_dimension_numbers<[1], [0], [0], [1], [0, 0, 1, 1], [], []>} : vector<24x21xf32>, vector<21x32xf32>, vector<24x32xf32> -> vector<24x32xf32>
    %c0_3 = arith.constant 0 : index
    %c0_4 = arith.constant 0 : index
    %3 = vector.load %arg1[%c0_3, %c0_4] : memref<24x4xf32, #tpu.memory_space<vmem>>, vector<24x4xf32>
    %c0_5 = arith.constant 0 : index
    %c0_6 = arith.constant 0 : index
    %4 = vector.load %arg4[%c0_5, %c0_6] : memref<4x32xf32, #tpu.memory_space<vmem>>, vector<4x32xf32>
    %cst_7 = arith.constant dense<0.000000e+00> : vector<24x32xf32>
    %5 = tpu.matmul %3, %4, %cst_7 {dimension_numbers = #tpu.dot_dimension_numbers<[1], [0], [0], [1], [0, 0, 1, 1], [], []>} : vector<24x4xf32>, vector<4x32xf32>, vector<24x32xf32> -> vector<24x32xf32>
    %6 = arith.addf %2, %5 : vector<24x32xf32>
    %c0_8 = arith.constant 0 : index
    %c0_9 = arith.constant 0 : index
    %7 = vector.load %arg2[%c0_8, %c0_9] : memref<24x32xf32, #tpu.memory_space<vmem>>, vector<24x32xf32>
    %8 = arith.addf %6, %7 : vector<24x32xf32>
    %c0_10 = arith.constant 0 : index
    %c0_11 = arith.constant 0 : index
    %9 = vector.load %arg5[%c0_10, %c0_11] : memref<24x32xf32, #tpu.memory_space<vmem>>, vector<24x32xf32>
    tpu.vector_store %arg5[%c0_10, %c0_11], %8 {strides = array<i32>} : memref<24x32xf32, #tpu.memory_space<vmem>>, vector<24x32xf32>,
    return
  }
}

module attributes {stable_mosaic.version = 11 : i64} {
  func.func @_norm_proj_kernel(%arg0: memref<24x32xf32, #tpu.memory_space<vmem>>, %arg1: memref<1x32xf32, #tpu.memory_space<vmem>>, %arg2: memref<1x32xf32, #tpu.memory_space<vmem>>, %arg3: memref<32x7xf32, #tpu.memory_space<vmem>>, %arg4: memref<1x7xf32, #tpu.memory_space<vmem>>, %arg5: memref<24x7xf32, #tpu.memory_space<vmem>>) attributes {dimension_semantics = [], scalar_prefetch = 0 : i64, scratch_operands = 0 : i64, tpu.core_type = #tpu.core_type<tc>} {
    %c0 = arith.constant 0 : index
    %c0_0 = arith.constant 0 : index
    %0 = vector.load %arg0[%c0, %c0_0] : memref<24x32xf32, #tpu.memory_space<vmem>>, vector<24x32xf32>
    %c0_1 = arith.constant 0 : index
    %c0_2 = arith.constant 0 : index
    %1 = vector.load %arg1[%c0_1, %c0_2] : memref<1x32xf32, #tpu.memory_space<vmem>>, vector<1x32xf32>
    %c0_3 = arith.constant 0 : index
    %c0_4 = arith.constant 0 : index
    %2 = vector.load %arg2[%c0_3, %c0_4] : memref<1x32xf32, #tpu.memory_space<vmem>>, vector<1x32xf32>
    %cst = arith.constant dense<0.000000e+00> : vector<24xf32>
    %3 = vector.multi_reduction <add>, %0, %cst [1] : vector<24x32xf32> to vector<24xf32>
    %4 = vector.shape_cast %3 : vector<24xf32> to vector<24x1xf32>
    %cst_5 = arith.constant 3.200000e+01 : f32
    %5 = vector.broadcast %cst_5 : f32 to vector<24x1xf32>
    %6 = arith.divf %4, %5 : vector<24x1xf32>
    %7 = vector.broadcast %6 : vector<24x1xf32> to vector<24x32xf32>
    %8 = arith.subf %0, %7 : vector<24x32xf32>
    %9 = arith.mulf %8, %8 : vector<24x32xf32>
    %cst_6 = arith.constant dense<0.000000e+00> : vector<24xf32>
    %10 = vector.multi_reduction <add>, %9, %cst_6 [1] : vector<24x32xf32> to vector<24xf32>
    %11 = vector.shape_cast %10 : vector<24xf32> to vector<24x1xf32>
    %cst_7 = arith.constant 3.200000e+01 : f32
    %12 = vector.broadcast %cst_7 : f32 to vector<24x1xf32>
    %13 = arith.divf %11, %12 : vector<24x1xf32>
    %14 = vector.broadcast %6 : vector<24x1xf32> to vector<24x32xf32>
    %15 = arith.subf %0, %14 : vector<24x32xf32>
    %cst_8 = arith.constant 9.99999974E-6 : f32
    %16 = vector.broadcast %cst_8 : f32 to vector<24x1xf32>
    %17 = arith.addf %13, %16 : vector<24x1xf32>
    %18 = math.rsqrt %17 : vector<24x1xf32>
    %19 = vector.broadcast %18 : vector<24x1xf32> to vector<24x32xf32>
    %20 = arith.mulf %15, %19 : vector<24x32xf32>
    %21 = vector.broadcast %1 : vector<1x32xf32> to vector<24x32xf32>
    %22 = arith.mulf %20, %21 : vector<24x32xf32>
    %23 = vector.broadcast %2 : vector<1x32xf32> to vector<24x32xf32>
    %24 = arith.addf %22, %23 : vector<24x32xf32>
    %c0_9 = arith.constant 0 : index
    %c0_10 = arith.constant 0 : index
    %25 = vector.load %arg3[%c0_9, %c0_10] : memref<32x7xf32, #tpu.memory_space<vmem>>, vector<32x7xf32>
    %cst_11 = arith.constant dense<0.000000e+00> : vector<24x7xf32>
    %26 = tpu.matmul %24, %25, %cst_11 {dimension_numbers = #tpu.dot_dimension_numbers<[1], [0], [0], [1], [0, 0, 1, 1], [], []>} : vector<24x32xf32>, vector<32x7xf32>, vector<24x7xf32> -> vector<24x7xf32>
    %c0_12 = arith.constant 0 : index
    %c0_13 = arith.constant 0 : index
    %27 = vector.load %arg4[%c0_12, %c0_13] : memref<1x7xf32, #tpu.memory_space<vmem>>, vector<1x7xf32>
    %28 = vector.broadcast %27 : vector<1x7xf32> to vector<24x7xf32>
    %29 = arith.addf %26, %28 : vector<24x7xf32>
    %c0_14 = arith.constant 0 : index
    %c0_15 = arith.constant 0 : index
    %30 = vector.load %arg5[%c0_14, %c0_15] : memref<24x7xf32, #tpu.memory_space<vmem>>, vector<24x7xf32>
    tpu.vector_store %arg5[%c0_14, %c0_15], %29 {strides = array<i32>} : memref<24x7xf32, #tpu.memory_space<vmem>>, vector<24x7xf32>,
    return
  }
}

module attributes {stable_mosaic.version = 11 : i64} {
  func.func @_decoder_layer_kernel(%arg0: i32, %arg1: memref<1x12x32xf32, #tpu.memory_space<vmem>>, %arg2: memref<1x16x32xf32, #tpu.memory_space<vmem>>, %arg3: memref<32x32xf32, #tpu.memory_space<vmem>>, %arg4: memref<1x32xf32, #tpu.memory_space<vmem>>, %arg5: memref<32x64xf32, #tpu.memory_space<vmem>>, %arg6: memref<1x64xf32, #tpu.memory_space<vmem>>, %arg7: memref<32x32xf32, #tpu.memory_space<vmem>>, %arg8: memref<1x32xf32, #tpu.memory_space<vmem>>, %arg9: memref<32x32xf32, #tpu.memory_space<vmem>>, %arg10: memref<1x32xf32, #tpu.memory_space<vmem>>, %arg11: memref<32x64xf32, #tpu.memory_space<vmem>>, %arg12: memref<1x64xf32, #tpu.memory_space<vmem>>, %arg13: memref<32x32xf32, #tpu.memory_space<vmem>>, %arg14: memref<1x32xf32, #tpu.memory_space<vmem>>, %arg15: memref<1x32xf32, #tpu.memory_space<vmem>>, %arg16: memref<1x32xf32, #tpu.memory_space<vmem>>, %arg17: memref<1x32xf32, #tpu.memory_space<vmem>>, %arg18: memref<1x32xf32, #tpu.memory_space<vmem>>, %arg19: memref<32x64xf32, #tpu.memory_space<vmem>>, %arg20: memref<1x64xf32, #tpu.memory_space<vmem>>, %arg21: memref<64x32xf32, #tpu.memory_space<vmem>>, %arg22: memref<1x32xf32, #tpu.memory_space<vmem>>, %arg23: memref<1x32xf32, #tpu.memory_space<vmem>>, %arg24: memref<1x32xf32, #tpu.memory_space<vmem>>, %arg25: memref<1x12x32xf32, #tpu.memory_space<vmem>>, %arg26: memref<1x4x12x12xf32, #tpu.memory_space<vmem>>, %arg27: memref<1x4x12x16xf32, #tpu.memory_space<vmem>>) attributes {dimension_semantics = [#tpu.dimension_semantics<parallel>], iteration_bounds = array<i64: 2>, scalar_prefetch = 0 : i64, scratch_operands = 0 : i64, tpu.core_type = #tpu.core_type<tc>, window_params = [{transform_indices = @transform_0, window_bounds = array<i64: 1, 12, 32>}, {transform_indices = @transform_1, window_bounds = array<i64: 1, 16, 32>}, {pipeline_mode = #tpu.pipeline_mode<synchronous>, transform_indices = @transform_2, window_bounds = array<i64: 32, 32>}, {pipeline_mode = #tpu.pipeline_mode<synchronous>, transform_indices = @transform_3, window_bounds = array<i64: 1, 32>}, {pipeline_mode = #tpu.pipeline_mode<synchronous>, transform_indices = @transform_4, window_bounds = array<i64: 32, 64>}, {pipeline_mode = #tpu.pipeline_mode<synchronous>, transform_indices = @transform_5, window_bounds = array<i64: 1, 64>}, {pipeline_mode = #tpu.pipeline_mode<synchronous>, transform_indices = @transform_6, window_bounds = array<i64: 32, 32>}, {pipeline_mode = #tpu.pipeline_mode<synchronous>, transform_indices = @transform_7, window_bounds = array<i64: 1, 32>}, {pipeline_mode = #tpu.pipeline_mode<synchronous>, transform_indices = @transform_8, window_bounds = array<i64: 32, 32>}, {pipeline_mode = #tpu.pipeline_mode<synchronous>, transform_indices = @transform_9, window_bounds = array<i64: 1, 32>}, {pipeline_mode = #tpu.pipeline_mode<synchronous>, transform_indices = @transform_10, window_bounds = array<i64: 32, 64>}, {pipeline_mode = #tpu.pipeline_mode<synchronous>, transform_indices = @transform_11, window_bounds = array<i64: 1, 64>}, {pipeline_mode = #tpu.pipeline_mode<synchronous>, transform_indices = @transform_12, window_bounds = array<i64: 32, 32>}, {pipeline_mode = #tpu.pipeline_mode<synchronous>, transform_indices = @transform_13, window_bounds = array<i64: 1, 32>}, {pipeline_mode = #tpu.pipeline_mode<synchronous>, transform_indices = @transform_14, window_bounds = array<i64: 1, 32>}, {pipeline_mode = #tpu.pipeline_mode<synchronous>, transform_indices = @transform_15, window_bounds = array<i64: 1, 32>}, {pipeline_mode = #tpu.pipeline_mode<synchronous>, transform_indices = @transform_16, window_bounds = array<i64: 1, 32>}, {pipeline_mode = #tpu.pipeline_mode<synchronous>, transform_indices = @transform_17, window_bounds = array<i64: 1, 32>}, {pipeline_mode = #tpu.pipeline_mode<synchronous>, transform_indices = @transform_18, window_bounds = array<i64: 32, 64>}, {pipeline_mode = #tpu.pipeline_mode<synchronous>, transform_indices = @transform_19, window_bounds = array<i64: 1, 64>}, {pipeline_mode = #tpu.pipeline_mode<synchronous>, transform_indices = @transform_20, window_bounds = array<i64: 64, 32>}, {pipeline_mode = #tpu.pipeline_mode<synchronous>, transform_indices = @transform_21, window_bounds = array<i64: 1, 32>}, {pipeline_mode = #tpu.pipeline_mode<synchronous>, transform_indices = @transform_22, window_bounds = array<i64: 1, 32>}, {pipeline_mode = #tpu.pipeline_mode<synchronous>, transform_indices = @transform_23, window_bounds = array<i64: 1, 32>}, {transform_indices = @transform_24, window_bounds = array<i64: 1, 12, 32>}, {transform_indices = @transform_25, window_bounds = array<i64: 1, 4, 12, 12>}, {transform_indices = @transform_26, window_bounds = array<i64: 1, 4, 12, 16>}]} {
    %c0 = arith.constant 0 : index
    %c0_0 = arith.constant 0 : index
    %c0_1 = arith.constant 0 : index
    %0 = vector.load %arg1[%c0, %c0_0, %c0_1] : memref<1x12x32xf32, #tpu.memory_space<vmem>>, vector<1x12x32xf32>
    %1 = vector.shape_cast %0 : vector<1x12x32xf32> to vector<12x32xf32>
    %c0_2 = arith.constant 0 : index
    %c0_3 = arith.constant 0 : index
    %c0_4 = arith.constant 0 : index
    %2 = vector.load %arg2[%c0_2, %c0_3, %c0_4] : memref<1x16x32xf32, #tpu.memory_space<vmem>>, vector<1x16x32xf32>
    %3 = vector.shape_cast %2 : vector<1x16x32xf32> to vector<16x32xf32>
    %c0_5 = arith.constant 0 : index
    %c0_6 = arith.constant 0 : index
    %4 = vector.load %arg3[%c0_5, %c0_6] : memref<32x32xf32, #tpu.memory_space<vmem>>, vector<32x32xf32>
    %c0_7 = arith.constant 0 : index
    %c0_8 = arith.constant 0 : index
    %5 = vector.load %arg4[%c0_7, %c0_8] : memref<1x32xf32, #tpu.memory_space<vmem>>, vector<1x32xf32>
    %c0_9 = arith.constant 0 : index
    %c0_10 = arith.constant 0 : index
    %6 = vector.load %arg5[%c0_9, %c0_10] : memref<32x64xf32, #tpu.memory_space<vmem>>, vector<32x64xf32>
    %c0_11 = arith.constant 0 : index
    %c0_12 = arith.constant 0 : index
    %7 = vector.load %arg6[%c0_11, %c0_12] : memref<1x64xf32, #tpu.memory_space<vmem>>, vector<1x64xf32>
    %c0_13 = arith.constant 0 : index
    %c0_14 = arith.constant 0 : index
    %8 = vector.load %arg7[%c0_13, %c0_14] : memref<32x32xf32, #tpu.memory_space<vmem>>, vector<32x32xf32>
    %c0_15 = arith.constant 0 : index
    %c0_16 = arith.constant 0 : index
    %9 = vector.load %arg8[%c0_15, %c0_16] : memref<1x32xf32, #tpu.memory_space<vmem>>, vector<1x32xf32>
    %cst = arith.constant dense<0.000000e+00> : vector<12x32xf32>
    %10 = tpu.matmul %1, %4, %cst {dimension_numbers = #tpu.dot_dimension_numbers<[1], [0], [0], [1], [0, 0, 1, 1], [], []>} : vector<12x32xf32>, vector<32x32xf32>, vector<12x32xf32> -> vector<12x32xf32>
    %11 = vector.broadcast %5 : vector<1x32xf32> to vector<12x32xf32>
    %12 = arith.addf %10, %11 : vector<12x32xf32>
    %cst_17 = arith.constant dense<0.000000e+00> : vector<12x64xf32>
    %13 = tpu.matmul %1, %6, %cst_17 {dimension_numbers = #tpu.dot_dimension_numbers<[1], [0], [0], [1], [0, 0, 1, 1], [], []>} : vector<12x32xf32>, vector<32x64xf32>, vector<12x64xf32> -> vector<12x64xf32>
    %14 = vector.broadcast %7 : vector<1x64xf32> to vector<12x64xf32>
    %15 = arith.addf %13, %14 : vector<12x64xf32>
    %16 = vector.extract_strided_slice %15 {offsets = [0, 0], sizes = [12, 32], strides = [1, 1]} : vector<12x64xf32> to vector<12x32xf32>
    %17 = vector.extract_strided_slice %15 {offsets = [0, 32], sizes = [12, 32], strides = [1, 1]} : vector<12x64xf32> to vector<12x32xf32>
    %cst_18 = arith.constant 0.000000e+00 : f32
    %18 = vector.broadcast %cst_18 : f32 to vector<12x32xf32>
    %19 = vector.broadcast %9 : vector<1x32xf32> to vector<12x32xf32>
    %20 = arith.addf %18, %19 : vector<12x32xf32>
    %21 = vector.extract_strided_slice %12 {offsets = [0, 0], sizes = [12, 8], strides = [1, 1]} : vector<12x32xf32> to vector<12x8xf32>
    %22 = vector.extract_strided_slice %16 {offsets = [0, 0], sizes = [12, 8], strides = [1, 1]} : vector<12x32xf32> to vector<12x8xf32>
    %cst_19 = arith.constant dense<0.000000e+00> : vector<12x12xf32>
    %23 = tpu.matmul %21, %22, %cst_19 {dimension_numbers = #tpu.dot_dimension_numbers<[1], [1], [0], [0], [0, 0, 1, 0], [], []>} : vector<12x8xf32>, vector<12x8xf32>, vector<12x12xf32> -> vector<12x12xf32>
    %cst_20 = arith.constant dense<0xFF800000> : vector<12xf32>
    %24 = vector.multi_reduction <maximumf>, %23, %cst_20 [1] : vector<12x12xf32> to vector<12xf32>
    %25 = vector.shape_cast %24 : vector<12xf32> to vector<12x1xf32>
    %26 = vector.broadcast %25 : vector<12x1xf32> to vector<12x12xf32>
    %27 = arith.subf %23, %26 : vector<12x12xf32>
    %28 = math.exp %27 : vector<12x12xf32>
    %cst_21 = arith.constant dense<0.000000e+00> : vector<12xf32>
    %29 = vector.multi_reduction <add>, %28, %cst_21 [1] : vector<12x12xf32> to vector<12xf32>
    %30 = vector.shape_cast %29 : vector<12xf32> to vector<12x1xf32>
    %31 = tpu.reciprocal %30 {approx = true} : vector<12x1xf32> -> vector<12x1xf32>
    %32 = vector.broadcast %31 : vector<12x1xf32> to vector<12x12xf32>
    %33 = arith.mulf %28, %32 : vector<12x12xf32>
    %c0_22 = arith.constant 0 : index
    %c0_23 = arith.constant 0 : index
    %c0_24 = arith.constant 0 : index
    %c0_25 = arith.constant 0 : index
    %34 = vector.load %arg26[%c0_22, %c0_23, %c0_24, %c0_25] : memref<1x4x12x12xf32, #tpu.memory_space<vmem>>, vector<1x1x12x12xf32>
    %35 = vector.shape_cast %34 : vector<1x1x12x12xf32> to vector<12x12xf32>
    %36 = vector.shape_cast %33 : vector<12x12xf32> to vector<1x1x12x12xf32>
    tpu.vector_store %arg26[%c0_22, %c0_23, %c0_24, %c0_25], %36 {strides = array<i32>} : memref<1x4x12x12xf32, #tpu.memory_space<vmem>>, vector<1x1x12x12xf32>,
    %37 = vector.extract_strided_slice %17 {offsets = [0, 0], sizes = [12, 8], strides = [1, 1]} : vector<12x32xf32> to vector<12x8xf32>
    %cst_26 = arith.constant dense<0.000000e+00> : vector<12x8xf32>
    %38 = tpu.matmul %33, %37, %cst_26 {dimension_numbers = #tpu.dot_dimension_numbers<[1], [0], [0], [1], [0, 0, 1, 1], [], []>} : vector<12x12xf32>, vector<12x8xf32>, vector<12x8xf32> -> vector<12x8xf32>
    %39 = vector.extract_strided_slice %8 {offsets = [0, 0], sizes = [8, 32], strides = [1, 1]} : vector<32x32xf32> to vector<8x32xf32>
    %cst_27 = arith.constant dense<0.000000e+00> : vector<12x32xf32>
    %40 = tpu.matmul %38, %39, %cst_27 {dimension_numbers = #tpu.dot_dimension_numbers<[1], [0], [0], [1], [0, 0, 1, 1], [], []>} : vector<12x8xf32>, vector<8x32xf32>, vector<12x32xf32> -> vector<12x32xf32>
    %41 = arith.addf %20, %40 : vector<12x32xf32>
    %42 = vector.extract_strided_slice %12 {offsets = [0, 8], sizes = [12, 8], strides = [1, 1]} : vector<12x32xf32> to vector<12x8xf32>
    %43 = vector.extract_strided_slice %16 {offsets = [0, 8], sizes = [12, 8], strides = [1, 1]} : vector<12x32xf32> to vector<12x8xf32>
    %cst_28 = arith.constant dense<0.000000e+00> : vector<12x12xf32>
    %44 = tpu.matmul %42, %43, %cst_28 {dimension_numbers = #tpu.dot_dimension_numbers<[1], [1], [0], [0], [0, 0, 1, 0], [], []>} : vector<12x8xf32>, vector<12x8xf32>, vector<12x12xf32> -> vector<12x12xf32>
    %cst_29 = arith.constant dense<0xFF800000> : vector<12xf32>
    %45 = vector.multi_reduction <maximumf>, %44, %cst_29 [1] : vector<12x12xf32> to vector<12xf32>
    %46 = vector.shape_cast %45 : vector<12xf32> to vector<12x1xf32>
    %47 = vector.broadcast %46 : vector<12x1xf32> to vector<12x12xf32>
    %48 = arith.subf %44, %47 : vector<12x12xf32>
    %49 = math.exp %48 : vector<12x12xf32>
    %cst_30 = arith.constant dense<0.000000e+00> : vector<12xf32>
    %50 = vector.multi_reduction <add>, %49, %cst_30 [1] : vector<12x12xf32> to vector<12xf32>
    %51 = vector.shape_cast %50 : vector<12xf32> to vector<12x1xf32>
    %52 = tpu.reciprocal %51 {approx = true} : vector<12x1xf32> -> vector<12x1xf32>
    %53 = vector.broadcast %52 : vector<12x1xf32> to vector<12x12xf32>
    %54 = arith.mulf %49, %53 : vector<12x12xf32>
    %c0_31 = arith.constant 0 : index
    %c1 = arith.constant 1 : index
    %c0_32 = arith.constant 0 : index
    %c0_33 = arith.constant 0 : index
    %55 = vector.load %arg26[%c0_31, %c1, %c0_32, %c0_33] : memref<1x4x12x12xf32, #tpu.memory_space<vmem>>, vector<1x1x12x12xf32>
    %56 = vector.shape_cast %55 : vector<1x1x12x12xf32> to vector<12x12xf32>
    %57 = vector.shape_cast %54 : vector<12x12xf32> to vector<1x1x12x12xf32>
    tpu.vector_store %arg26[%c0_31, %c1, %c0_32, %c0_33], %57 {strides = array<i32>} : memref<1x4x12x12xf32, #tpu.memory_space<vmem>>, vector<1x1x12x12xf32>,
    %58 = vector.extract_strided_slice %17 {offsets = [0, 8], sizes = [12, 8], strides = [1, 1]} : vector<12x32xf32> to vector<12x8xf32>
    %cst_34 = arith.constant dense<0.000000e+00> : vector<12x8xf32>
    %59 = tpu.matmul %54, %58, %cst_34 {dimension_numbers = #tpu.dot_dimension_numbers<[1], [0], [0], [1], [0, 0, 1, 1], [], []>} : vector<12x12xf32>, vector<12x8xf32>, vector<12x8xf32> -> vector<12x8xf32>
    %60 = vector.extract_strided_slice %8 {offsets = [8, 0], sizes = [8, 32], strides = [1, 1]} : vector<32x32xf32> to vector<8x32xf32>
    %cst_35 = arith.constant dense<0.000000e+00> : vector<12x32xf32>
    %61 = tpu.matmul %59, %60, %cst_35 {dimension_numbers = #tpu.dot_dimension_numbers<[1], [0], [0], [1], [0, 0, 1, 1], [], []>} : vector<12x8xf32>, vector<8x32xf32>, vector<12x32xf32> -> vector<12x32xf32>
    %62 = arith.addf %41, %61 : vector<12x32xf32>
    %63 = vector.extract_strided_slice %12 {offsets = [0, 16], sizes = [12, 8], strides = [1, 1]} : vector<12x32xf32> to vector<12x8xf32>
    %64 = vector.extract_strided_slice %16 {offsets = [0, 16], sizes = [12, 8], strides = [1, 1]} : vector<12x32xf32> to vector<12x8xf32>
    %cst_36 = arith.constant dense<0.000000e+00> : vector<12x12xf32>
    %65 = tpu.matmul %63, %64, %cst_36 {dimension_numbers = #tpu.dot_dimension_numbers<[1], [1], [0], [0], [0, 0, 1, 0], [], []>} : vector<12x8xf32>, vector<12x8xf32>, vector<12x12xf32> -> vector<12x12xf32>
    %cst_37 = arith.constant dense<0xFF800000> : vector<12xf32>
    %66 = vector.multi_reduction <maximumf>, %65, %cst_37 [1] : vector<12x12xf32> to vector<12xf32>
    %67 = vector.shape_cast %66 : vector<12xf32> to vector<12x1xf32>
    %68 = vector.broadcast %67 : vector<12x1xf32> to vector<12x12xf32>
    %69 = arith.subf %65, %68 : vector<12x12xf32>
    %70 = math.exp %69 : vector<12x12xf32>
    %cst_38 = arith.constant dense<0.000000e+00> : vector<12xf32>
    %71 = vector.multi_reduction <add>, %70, %cst_38 [1] : vector<12x12xf32> to vector<12xf32>
    %72 = vector.shape_cast %71 : vector<12xf32> to vector<12x1xf32>
    %73 = tpu.reciprocal %72 {approx = true} : vector<12x1xf32> -> vector<12x1xf32>
    %74 = vector.broadcast %73 : vector<12x1xf32> to vector<12x12xf32>
    %75 = arith.mulf %70, %74 : vector<12x12xf32>
    %c0_39 = arith.constant 0 : index
    %c2 = arith.constant 2 : index
    %c0_40 = arith.constant 0 : index
    %c0_41 = arith.constant 0 : index
    %76 = vector.load %arg26[%c0_39, %c2, %c0_40, %c0_41] : memref<1x4x12x12xf32, #tpu.memory_space<vmem>>, vector<1x1x12x12xf32>
    %77 = vector.shape_cast %76 : vector<1x1x12x12xf32> to vector<12x12xf32>
    %78 = vector.shape_cast %75 : vector<12x12xf32> to vector<1x1x12x12xf32>
    tpu.vector_store %arg26[%c0_39, %c2, %c0_40, %c0_41], %78 {strides = array<i32>} : memref<1x4x12x12xf32, #tpu.memory_space<vmem>>, vector<1x1x12x12xf32>,
    %79 = vector.extract_strided_slice %17 {offsets = [0, 16], sizes = [12, 8], strides = [1, 1]} : vector<12x32xf32> to vector<12x8xf32>
    %cst_42 = arith.constant dense<0.000000e+00> : vector<12x8xf32>
    %80 = tpu.matmul %75, %79, %cst_42 {dimension_numbers = #tpu.dot_dimension_numbers<[1], [0], [0], [1], [0, 0, 1, 1], [], []>} : vector<12x12xf32>, vector<12x8xf32>, vector<12x8xf32> -> vector<12x8xf32>
    %81 = vector.extract_strided_slice %8 {offsets = [16, 0], sizes = [8, 32], strides = [1, 1]} : vector<32x32xf32> to vector<8x32xf32>
    %cst_43 = arith.constant dense<0.000000e+00> : vector<12x32xf32>
    %82 = tpu.matmul %80, %81, %cst_43 {dimension_numbers = #tpu.dot_dimension_numbers<[1], [0], [0], [1], [0, 0, 1, 1], [], []>} : vector<12x8xf32>, vector<8x32xf32>, vector<12x32xf32> -> vector<12x32xf32>
    %83 = arith.addf %62, %82 : vector<12x32xf32>
    %84 = vector.extract_strided_slice %12 {offsets = [0, 24], sizes = [12, 8], strides = [1, 1]} : vector<12x32xf32> to vector<12x8xf32>
    %85 = vector.extract_strided_slice %16 {offsets = [0, 24], sizes = [12, 8], strides = [1, 1]} : vector<12x32xf32> to vector<12x8xf32>
    %cst_44 = arith.constant dense<0.000000e+00> : vector<12x12xf32>
    %86 = tpu.matmul %84, %85, %cst_44 {dimension_numbers = #tpu.dot_dimension_numbers<[1], [1], [0], [0], [0, 0, 1, 0], [], []>} : vector<12x8xf32>, vector<12x8xf32>, vector<12x12xf32> -> vector<12x12xf32>
    %cst_45 = arith.constant dense<0xFF800000> : vector<12xf32>
    %87 = vector.multi_reduction <maximumf>, %86, %cst_45 [1] : vector<12x12xf32> to vector<12xf32>
    %88 = vector.shape_cast %87 : vector<12xf32> to vector<12x1xf32>
    %89 = vector.broadcast %88 : vector<12x1xf32> to vector<12x12xf32>
    %90 = arith.subf %86, %89 : vector<12x12xf32>
    %91 = math.exp %90 : vector<12x12xf32>
    %cst_46 = arith.constant dense<0.000000e+00> : vector<12xf32>
    %92 = vector.multi_reduction <add>, %91, %cst_46 [1] : vector<12x12xf32> to vector<12xf32>
    %93 = vector.shape_cast %92 : vector<12xf32> to vector<12x1xf32>
    %94 = tpu.reciprocal %93 {approx = true} : vector<12x1xf32> -> vector<12x1xf32>
    %95 = vector.broadcast %94 : vector<12x1xf32> to vector<12x12xf32>
    %96 = arith.mulf %91, %95 : vector<12x12xf32>
    %c0_47 = arith.constant 0 : index
    %c3 = arith.constant 3 : index
    %c0_48 = arith.constant 0 : index
    %c0_49 = arith.constant 0 : index
    %97 = vector.load %arg26[%c0_47, %c3, %c0_48, %c0_49] : memref<1x4x12x12xf32, #tpu.memory_space<vmem>>, vector<1x1x12x12xf32>
    %98 = vector.shape_cast %97 : vector<1x1x12x12xf32> to vector<12x12xf32>
    %99 = vector.shape_cast %96 : vector<12x12xf32> to vector<1x1x12x12xf32>
    tpu.vector_store %arg26[%c0_47, %c3, %c0_48, %c0_49], %99 {strides = array<i32>} : memref<1x4x12x12xf32, #tpu.memory_space<vmem>>, vector<1x1x12x12xf32>,
    %100 = vector.extract_strided_slice %17 {offsets = [0, 24], sizes = [12, 8], strides = [1, 1]} : vector<12x32xf32> to vector<12x8xf32>
    %cst_50 = arith.constant dense<0.000000e+00> : vector<12x8xf32>
    %101 = tpu.matmul %96, %100, %cst_50 {dimension_numbers = #tpu.dot_dimension_numbers<[1], [0], [0], [1], [0, 0, 1, 1], [], []>} : vector<12x12xf32>, vector<12x8xf32>, vector<12x8xf32> -> vector<12x8xf32>
    %102 = vector.extract_strided_slice %8 {offsets = [24, 0], sizes = [8, 32], strides = [1, 1]} : vector<32x32xf32> to vector<8x32xf32>
    %cst_51 = arith.constant dense<0.000000e+00> : vector<12x32xf32>
    %103 = tpu.matmul %101, %102, %cst_51 {dimension_numbers = #tpu.dot_dimension_numbers<[1], [0], [0], [1], [0, 0, 1, 1], [], []>} : vector<12x8xf32>, vector<8x32xf32>, vector<12x32xf32> -> vector<12x32xf32>
    %104 = arith.addf %83, %103 : vector<12x32xf32>
    %105 = arith.addf %1, %104 : vector<12x32xf32>
    %c0_52 = arith.constant 0 : index
    %c0_53 = arith.constant 0 : index
    %106 = vector.load %arg15[%c0_52, %c0_53] : memref<1x32xf32, #tpu.memory_space<vmem>>, vector<1x32xf32>
    %c0_54 = arith.constant 0 : index
    %c0_55 = arith.constant 0 : index
    %107 = vector.load %arg16[%c0_54, %c0_55] : memref<1x32xf32, #tpu.memory_space<vmem>>, vector<1x32xf32>
    %cst_56 = arith.constant dense<0.000000e+00> : vector<12xf32>
    %108 = vector.multi_reduction <add>, %105, %cst_56 [1] : vector<12x32xf32> to vector<12xf32>
    %109 = vector.shape_cast %108 : vector<12xf32> to vector<12x1xf32>
    %cst_57 = arith.constant 3.200000e+01 : f32
    %110 = vector.broadcast %cst_57 : f32 to vector<12x1xf32>
    %111 = arith.divf %109, %110 : vector<12x1xf32>
    %112 = vector.broadcast %111 : vector<12x1xf32> to vector<12x32xf32>
    %113 = arith.subf %105, %112 : vector<12x32xf32>
    %114 = arith.mulf %113, %113 : vector<12x32xf32>
    %cst_58 = arith.constant dense<0.000000e+00> : vector<12xf32>
    %115 = vector.multi_reduction <add>, %114, %cst_58 [1] : vector<12x32xf32> to vector<12xf32>
    %116 = vector.shape_cast %115 : vector<12xf32> to vector<12x1xf32>
    %cst_59 = arith.constant 3.200000e+01 : f32
    %117 = vector.broadcast %cst_59 : f32 to vector<12x1xf32>
    %118 = arith.divf %116, %117 : vector<12x1xf32>
    %119 = vector.broadcast %111 : vector<12x1xf32> to vector<12x32xf32>
    %120 = arith.subf %105, %119 : vector<12x32xf32>
    %cst_60 = arith.constant 9.99999974E-6 : f32
    %121 = vector.broadcast %cst_60 : f32 to vector<12x1xf32>
    %122 = arith.addf %118, %121 : vector<12x1xf32>
    %123 = math.rsqrt %122 : vector<12x1xf32>
    %124 = vector.broadcast %123 : vector<12x1xf32> to vector<12x32xf32>
    %125 = arith.mulf %120, %124 : vector<12x32xf32>
    %126 = vector.broadcast %106 : vector<1x32xf32> to vector<12x32xf32>
    %127 = arith.mulf %125, %126 : vector<12x32xf32>
    %128 = vector.broadcast %107 : vector<1x32xf32> to vector<12x32xf32>
    %129 = arith.addf %127, %128 : vector<12x32xf32>
    %c0_61 = arith.constant 0 : index
    %c0_62 = arith.constant 0 : index
    %130 = vector.load %arg9[%c0_61, %c0_62] : memref<32x32xf32, #tpu.memory_space<vmem>>, vector<32x32xf32>
    %c0_63 = arith.constant 0 : index
    %c0_64 = arith.constant 0 : index
    %131 = vector.load %arg10[%c0_63, %c0_64] : memref<1x32xf32, #tpu.memory_space<vmem>>, vector<1x32xf32>
    %c0_65 = arith.constant 0 : index
    %c0_66 = arith.constant 0 : index
    %132 = vector.load %arg11[%c0_65, %c0_66] : memref<32x64xf32, #tpu.memory_space<vmem>>, vector<32x64xf32>
    %c0_67 = arith.constant 0 : index
    %c0_68 = arith.constant 0 : index
    %133 = vector.load %arg12[%c0_67, %c0_68] : memref<1x64xf32, #tpu.memory_space<vmem>>, vector<1x64xf32>
    %c0_69 = arith.constant 0 : index
    %c0_70 = arith.constant 0 : index
    %134 = vector.load %arg13[%c0_69, %c0_70] : memref<32x32xf32, #tpu.memory_space<vmem>>, vector<32x32xf32>
    %c0_71 = arith.constant 0 : index
    %c0_72 = arith.constant 0 : index
    %135 = vector.load %arg14[%c0_71, %c0_72] : memref<1x32xf32, #tpu.memory_space<vmem>>, vector<1x32xf32>
    %cst_73 = arith.constant dense<0.000000e+00> : vector<12x32xf32>
    %136 = tpu.matmul %129, %130, %cst_73 {dimension_numbers = #tpu.dot_dimension_numbers<[1], [0], [0], [1], [0, 0, 1, 1], [], []>} : vector<12x32xf32>, vector<32x32xf32>, vector<12x32xf32> -> vector<12x32xf32>
    %137 = vector.broadcast %131 : vector<1x32xf32> to vector<12x32xf32>
    %138 = arith.addf %136, %137 : vector<12x32xf32>
    %cst_74 = arith.constant dense<0.000000e+00> : vector<16x64xf32>
    %139 = tpu.matmul %3, %132, %cst_74 {dimension_numbers = #tpu.dot_dimension_numbers<[1], [0], [0], [1], [0, 0, 1, 1], [], []>} : vector<16x32xf32>, vector<32x64xf32>, vector<16x64xf32> -> vector<16x64xf32>
    %140 = vector.broadcast %133 : vector<1x64xf32> to vector<16x64xf32>
    %141 = arith.addf %139, %140 : vector<16x64xf32>
    %142 = vector.extract_strided_slice %141 {offsets = [0, 0], sizes = [16, 32], strides = [1, 1]} : vector<16x64xf32> to vector<16x32xf32>
    %143 = vector.extract_strided_slice %141 {offsets = [0, 32], sizes = [16, 32], strides = [1, 1]} : vector<16x64xf32> to vector<16x32xf32>
    %cst_75 = arith.constant 0.000000e+00 : f32
    %144 = vector.broadcast %cst_75 : f32 to vector<12x32xf32>
    %145 = vector.broadcast %135 : vector<1x32xf32> to vector<12x32xf32>
    %146 = arith.addf %144, %145 : vector<12x32xf32>
    %147 = vector.extract_strided_slice %138 {offsets = [0, 0], sizes = [12, 8], strides = [1, 1]} : vector<12x32xf32> to vector<12x8xf32>
    %148 = vector.extract_strided_slice %142 {offsets = [0, 0], sizes = [16, 8], strides = [1, 1]} : vector<16x32xf32> to vector<16x8xf32>
    %cst_76 = arith.constant dense<0.000000e+00> : vector<12x16xf32>
    %149 = tpu.matmul %147, %148, %cst_76 {dimension_numbers = #tpu.dot_dimension_numbers<[1], [1], [0], [0], [0, 0, 1, 0], [], []>} : vector<12x8xf32>, vector<16x8xf32>, vector<12x16xf32> -> vector<12x16xf32>
    %cst_77 = arith.constant dense<0xFF800000> : vector<12xf32>
    %150 = vector.multi_reduction <maximumf>, %149, %cst_77 [1] : vector<12x16xf32> to vector<12xf32>
    %151 = vector.shape_cast %150 : vector<12xf32> to vector<12x1xf32>
    %152 = vector.broadcast %151 : vector<12x1xf32> to vector<12x16xf32>
    %153 = arith.subf %149, %152 : vector<12x16xf32>
    %154 = math.exp %153 : vector<12x16xf32>
    %cst_78 = arith.constant dense<0.000000e+00> : vector<12xf32>
    %155 = vector.multi_reduction <add>, %154, %cst_78 [1] : vector<12x16xf32> to vector<12xf32>
    %156 = vector.shape_cast %155 : vector<12xf32> to vector<12x1xf32>
    %157 = tpu.reciprocal %156 {approx = true} : vector<12x1xf32> -> vector<12x1xf32>
    %158 = vector.broadcast %157 : vector<12x1xf32> to vector<12x16xf32>
    %159 = arith.mulf %154, %158 : vector<12x16xf32>
    %c0_79 = arith.constant 0 : index
    %c0_80 = arith.constant 0 : index
    %c0_81 = arith.constant 0 : index
    %c0_82 = arith.constant 0 : index
    %160 = vector.load %arg27[%c0_79, %c0_80, %c0_81, %c0_82] : memref<1x4x12x16xf32, #tpu.memory_space<vmem>>, vector<1x1x12x16xf32>
    %161 = vector.shape_cast %160 : vector<1x1x12x16xf32> to vector<12x16xf32>
    %162 = vector.shape_cast %159 : vector<12x16xf32> to vector<1x1x12x16xf32>
    tpu.vector_store %arg27[%c0_79, %c0_80, %c0_81, %c0_82], %162 {strides = array<i32>} : memref<1x4x12x16xf32, #tpu.memory_space<vmem>>, vector<1x1x12x16xf32>,
    %163 = vector.extract_strided_slice %143 {offsets = [0, 0], sizes = [16, 8], strides = [1, 1]} : vector<16x32xf32> to vector<16x8xf32>
    %cst_83 = arith.constant dense<0.000000e+00> : vector<12x8xf32>
    %164 = tpu.matmul %159, %163, %cst_83 {dimension_numbers = #tpu.dot_dimension_numbers<[1], [0], [0], [1], [0, 0, 1, 1], [], []>} : vector<12x16xf32>, vector<16x8xf32>, vector<12x8xf32> -> vector<12x8xf32>
    %165 = vector.extract_strided_slice %134 {offsets = [0, 0], sizes = [8, 32], strides = [1, 1]} : vector<32x32xf32> to vector<8x32xf32>
    %cst_84 = arith.constant dense<0.000000e+00> : vector<12x32xf32>
    %166 = tpu.matmul %164, %165, %cst_84 {dimension_numbers = #tpu.dot_dimension_numbers<[1], [0], [0], [1], [0, 0, 1, 1], [], []>} : vector<12x8xf32>, vector<8x32xf32>, vector<12x32xf32> -> vector<12x32xf32>
    %167 = arith.addf %146, %166 : vector<12x32xf32>
    %168 = vector.extract_strided_slice %138 {offsets = [0, 8], sizes = [12, 8], strides = [1, 1]} : vector<12x32xf32> to vector<12x8xf32>
    %169 = vector.extract_strided_slice %142 {offsets = [0, 8], sizes = [16, 8], strides = [1, 1]} : vector<16x32xf32> to vector<16x8xf32>
    %cst_85 = arith.constant dense<0.000000e+00> : vector<12x16xf32>
    %170 = tpu.matmul %168, %169, %cst_85 {dimension_numbers = #tpu.dot_dimension_numbers<[1], [1], [0], [0], [0, 0, 1, 0], [], []>} : vector<12x8xf32>, vector<16x8xf32>, vector<12x16xf32> -> vector<12x16xf32>
    %cst_86 = arith.constant dense<0xFF800000> : vector<12xf32>
    %171 = vector.multi_reduction <maximumf>, %170, %cst_86 [1] : vector<12x16xf32> to vector<12xf32>
    %172 = vector.shape_cast %171 : vector<12xf32> to vector<12x1xf32>
    %173 = vector.broadcast %172 : vector<12x1xf32> to vector<12x16xf32>
    %174 = arith.subf %170, %173 : vector<12x16xf32>
    %175 = math.exp %174 : vector<12x16xf32>
    %cst_87 = arith.constant dense<0.000000e+00> : vector<12xf32>
    %176 = vector.multi_reduction <add>, %175, %cst_87 [1] : vector<12x16xf32> to vector<12xf32>
    %177 = vector.shape_cast %176 : vector<12xf32> to vector<12x1xf32>
    %178 = tpu.reciprocal %177 {approx = true} : vector<12x1xf32> -> vector<12x1xf32>
    %179 = vector.broadcast %178 : vector<12x1xf32> to vector<12x16xf32>
    %180 = arith.mulf %175, %179 : vector<12x16xf32>
    %c0_88 = arith.constant 0 : index
    %c1_89 = arith.constant 1 : index
    %c0_90 = arith.constant 0 : index
    %c0_91 = arith.constant 0 : index
    %181 = vector.load %arg27[%c0_88, %c1_89, %c0_90, %c0_91] : memref<1x4x12x16xf32, #tpu.memory_space<vmem>>, vector<1x1x12x16xf32>
    %182 = vector.shape_cast %181 : vector<1x1x12x16xf32> to vector<12x16xf32>
    %183 = vector.shape_cast %180 : vector<12x16xf32> to vector<1x1x12x16xf32>
    tpu.vector_store %arg27[%c0_88, %c1_89, %c0_90, %c0_91], %183 {strides = array<i32>} : memref<1x4x12x16xf32, #tpu.memory_space<vmem>>, vector<1x1x12x16xf32>,
    %184 = vector.extract_strided_slice %143 {offsets = [0, 8], sizes = [16, 8], strides = [1, 1]} : vector<16x32xf32> to vector<16x8xf32>
    %cst_92 = arith.constant dense<0.000000e+00> : vector<12x8xf32>
    %185 = tpu.matmul %180, %184, %cst_92 {dimension_numbers = #tpu.dot_dimension_numbers<[1], [0], [0], [1], [0, 0, 1, 1], [], []>} : vector<12x16xf32>, vector<16x8xf32>, vector<12x8xf32> -> vector<12x8xf32>
    %186 = vector.extract_strided_slice %134 {offsets = [8, 0], sizes = [8, 32], strides = [1, 1]} : vector<32x32xf32> to vector<8x32xf32>
    %cst_93 = arith.constant dense<0.000000e+00> : vector<12x32xf32>
    %187 = tpu.matmul %185, %186, %cst_93 {dimension_numbers = #tpu.dot_dimension_numbers<[1], [0], [0], [1], [0, 0, 1, 1], [], []>} : vector<12x8xf32>, vector<8x32xf32>, vector<12x32xf32> -> vector<12x32xf32>
    %188 = arith.addf %167, %187 : vector<12x32xf32>
    %189 = vector.extract_strided_slice %138 {offsets = [0, 16], sizes = [12, 8], strides = [1, 1]} : vector<12x32xf32> to vector<12x8xf32>
    %190 = vector.extract_strided_slice %142 {offsets = [0, 16], sizes = [16, 8], strides = [1, 1]} : vector<16x32xf32> to vector<16x8xf32>
    %cst_94 = arith.constant dense<0.000000e+00> : vector<12x16xf32>
    %191 = tpu.matmul %189, %190, %cst_94 {dimension_numbers = #tpu.dot_dimension_numbers<[1], [1], [0], [0], [0, 0, 1, 0], [], []>} : vector<12x8xf32>, vector<16x8xf32>, vector<12x16xf32> -> vector<12x16xf32>
    %cst_95 = arith.constant dense<0xFF800000> : vector<12xf32>
    %192 = vector.multi_reduction <maximumf>, %191, %cst_95 [1] : vector<12x16xf32> to vector<12xf32>
    %193 = vector.shape_cast %192 : vector<12xf32> to vector<12x1xf32>
    %194 = vector.broadcast %193 : vector<12x1xf32> to vector<12x16xf32>
    %195 = arith.subf %191, %194 : vector<12x16xf32>
    %196 = math.exp %195 : vector<12x16xf32>
    %cst_96 = arith.constant dense<0.000000e+00> : vector<12xf32>
    %197 = vector.multi_reduction <add>, %196, %cst_96 [1] : vector<12x16xf32> to vector<12xf32>
    %198 = vector.shape_cast %197 : vector<12xf32> to vector<12x1xf32>
    %199 = tpu.reciprocal %198 {approx = true} : vector<12x1xf32> -> vector<12x1xf32>
    %200 = vector.broadcast %199 : vector<12x1xf32> to vector<12x16xf32>
    %201 = arith.mulf %196, %200 : vector<12x16xf32>
    %c0_97 = arith.constant 0 : index
    %c2_98 = arith.constant 2 : index
    %c0_99 = arith.constant 0 : index
    %c0_100 = arith.constant 0 : index
    %202 = vector.load %arg27[%c0_97, %c2_98, %c0_99, %c0_100] : memref<1x4x12x16xf32, #tpu.memory_space<vmem>>, vector<1x1x12x16xf32>
    %203 = vector.shape_cast %202 : vector<1x1x12x16xf32> to vector<12x16xf32>
    %204 = vector.shape_cast %201 : vector<12x16xf32> to vector<1x1x12x16xf32>
    tpu.vector_store %arg27[%c0_97, %c2_98, %c0_99, %c0_100], %204 {strides = array<i32>} : memref<1x4x12x16xf32, #tpu.memory_space<vmem>>, vector<1x1x12x16xf32>,
    %205 = vector.extract_strided_slice %143 {offsets = [0, 16], sizes = [16, 8], strides = [1, 1]} : vector<16x32xf32> to vector<16x8xf32>
    %cst_101 = arith.constant dense<0.000000e+00> : vector<12x8xf32>
    %206 = tpu.matmul %201, %205, %cst_101 {dimension_numbers = #tpu.dot_dimension_numbers<[1], [0], [0], [1], [0, 0, 1, 1], [], []>} : vector<12x16xf32>, vector<16x8xf32>, vector<12x8xf32> -> vector<12x8xf32>
    %207 = vector.extract_strided_slice %134 {offsets = [16, 0], sizes = [8, 32], strides = [1, 1]} : vector<32x32xf32> to vector<8x32xf32>
    %cst_102 = arith.constant dense<0.000000e+00> : vector<12x32xf32>
    %208 = tpu.matmul %206, %207, %cst_102 {dimension_numbers = #tpu.dot_dimension_numbers<[1], [0], [0], [1], [0, 0, 1, 1], [], []>} : vector<12x8xf32>, vector<8x32xf32>, vector<12x32xf32> -> vector<12x32xf32>
    %209 = arith.addf %188, %208 : vector<12x32xf32>
    %210 = vector.extract_strided_slice %138 {offsets = [0, 24], sizes = [12, 8], strides = [1, 1]} : vector<12x32xf32> to vector<12x8xf32>
    %211 = vector.extract_strided_slice %142 {offsets = [0, 24], sizes = [16, 8], strides = [1, 1]} : vector<16x32xf32> to vector<16x8xf32>
    %cst_103 = arith.constant dense<0.000000e+00> : vector<12x16xf32>
    %212 = tpu.matmul %210, %211, %cst_103 {dimension_numbers = #tpu.dot_dimension_numbers<[1], [1], [0], [0], [0, 0, 1, 0], [], []>} : vector<12x8xf32>, vector<16x8xf32>, vector<12x16xf32> -> vector<12x16xf32>
    %cst_104 = arith.constant dense<0xFF800000> : vector<12xf32>
    %213 = vector.multi_reduction <maximumf>, %212, %cst_104 [1] : vector<12x16xf32> to vector<12xf32>
    %214 = vector.shape_cast %213 : vector<12xf32> to vector<12x1xf32>
    %215 = vector.broadcast %214 : vector<12x1xf32> to vector<12x16xf32>
    %216 = arith.subf %212, %215 : vector<12x16xf32>
    %217 = math.exp %216 : vector<12x16xf32>
    %cst_105 = arith.constant dense<0.000000e+00> : vector<12xf32>
    %218 = vector.multi_reduction <add>, %217, %cst_105 [1] : vector<12x16xf32> to vector<12xf32>
    %219 = vector.shape_cast %218 : vector<12xf32> to vector<12x1xf32>
    %220 = tpu.reciprocal %219 {approx = true} : vector<12x1xf32> -> vector<12x1xf32>
    %221 = vector.broadcast %220 : vector<12x1xf32> to vector<12x16xf32>
    %222 = arith.mulf %217, %221 : vector<12x16xf32>
    %c0_106 = arith.constant 0 : index
    %c3_107 = arith.constant 3 : index
    %c0_108 = arith.constant 0 : index
    %c0_109 = arith.constant 0 : index
    %223 = vector.load %arg27[%c0_106, %c3_107, %c0_108, %c0_109] : memref<1x4x12x16xf32, #tpu.memory_space<vmem>>, vector<1x1x12x16xf32>
    %224 = vector.shape_cast %223 : vector<1x1x12x16xf32> to vector<12x16xf32>
    %225 = vector.shape_cast %222 : vector<12x16xf32> to vector<1x1x12x16xf32>
    tpu.vector_store %arg27[%c0_106, %c3_107, %c0_108, %c0_109], %225 {strides = array<i32>} : memref<1x4x12x16xf32, #tpu.memory_space<vmem>>, vector<1x1x12x16xf32>,
    %226 = vector.extract_strided_slice %143 {offsets = [0, 24], sizes = [16, 8], strides = [1, 1]} : vector<16x32xf32> to vector<16x8xf32>
    %cst_110 = arith.constant dense<0.000000e+00> : vector<12x8xf32>
    %227 = tpu.matmul %222, %226, %cst_110 {dimension_numbers = #tpu.dot_dimension_numbers<[1], [0], [0], [1], [0, 0, 1, 1], [], []>} : vector<12x16xf32>, vector<16x8xf32>, vector<12x8xf32> -> vector<12x8xf32>
    %228 = vector.extract_strided_slice %134 {offsets = [24, 0], sizes = [8, 32], strides = [1, 1]} : vector<32x32xf32> to vector<8x32xf32>
    %cst_111 = arith.constant dense<0.000000e+00> : vector<12x32xf32>
    %229 = tpu.matmul %227, %228, %cst_111 {dimension_numbers = #tpu.dot_dimension_numbers<[1], [0], [0], [1], [0, 0, 1, 1], [], []>} : vector<12x8xf32>, vector<8x32xf32>, vector<12x32xf32> -> vector<12x32xf32>
    %230 = arith.addf %209, %229 : vector<12x32xf32>
    %231 = arith.addf %129, %230 : vector<12x32xf32>
    %c0_112 = arith.constant 0 : index
    %c0_113 = arith.constant 0 : index
    %232 = vector.load %arg17[%c0_112, %c0_113] : memref<1x32xf32, #tpu.memory_space<vmem>>, vector<1x32xf32>
    %c0_114 = arith.constant 0 : index
    %c0_115 = arith.constant 0 : index
    %233 = vector.load %arg18[%c0_114, %c0_115] : memref<1x32xf32, #tpu.memory_space<vmem>>, vector<1x32xf32>
    %cst_116 = arith.constant dense<0.000000e+00> : vector<12xf32>
    %234 = vector.multi_reduction <add>, %231, %cst_116 [1] : vector<12x32xf32> to vector<12xf32>
    %235 = vector.shape_cast %234 : vector<12xf32> to vector<12x1xf32>
    %cst_117 = arith.constant 3.200000e+01 : f32
    %236 = vector.broadcast %cst_117 : f32 to vector<12x1xf32>
    %237 = arith.divf %235, %236 : vector<12x1xf32>
    %238 = vector.broadcast %237 : vector<12x1xf32> to vector<12x32xf32>
    %239 = arith.subf %231, %238 : vector<12x32xf32>
    %240 = arith.mulf %239, %239 : vector<12x32xf32>
    %cst_118 = arith.constant dense<0.000000e+00> : vector<12xf32>
    %241 = vector.multi_reduction <add>, %240, %cst_118 [1] : vector<12x32xf32> to vector<12xf32>
    %242 = vector.shape_cast %241 : vector<12xf32> to vector<12x1xf32>
    %cst_119 = arith.constant 3.200000e+01 : f32
    %243 = vector.broadcast %cst_119 : f32 to vector<12x1xf32>
    %244 = arith.divf %242, %243 : vector<12x1xf32>
    %245 = vector.broadcast %237 : vector<12x1xf32> to vector<12x32xf32>
    %246 = arith.subf %231, %245 : vector<12x32xf32>
    %cst_120 = arith.constant 9.99999974E-6 : f32
    %247 = vector.broadcast %cst_120 : f32 to vector<12x1xf32>
    %248 = arith.addf %244, %247 : vector<12x1xf32>
    %249 = math.rsqrt %248 : vector<12x1xf32>
    %250 = vector.broadcast %249 : vector<12x1xf32> to vector<12x32xf32>
    %251 = arith.mulf %246, %250 : vector<12x32xf32>
    %252 = vector.broadcast %232 : vector<1x32xf32> to vector<12x32xf32>
    %253 = arith.mulf %251, %252 : vector<12x32xf32>
    %254 = vector.broadcast %233 : vector<1x32xf32> to vector<12x32xf32>
    %255 = arith.addf %253, %254 : vector<12x32xf32>
    %c0_121 = arith.constant 0 : index
    %c0_122 = arith.constant 0 : index
    %256 = vector.load %arg19[%c0_121, %c0_122] : memref<32x64xf32, #tpu.memory_space<vmem>>, vector<32x64xf32>
    %cst_123 = arith.constant dense<0.000000e+00> : vector<12x64xf32>
    %257 = tpu.matmul %255, %256, %cst_123 {dimension_numbers = #tpu.dot_dimension_numbers<[1], [0], [0], [1], [0, 0, 1, 1], [], []>} : vector<12x32xf32>, vector<32x64xf32>, vector<12x64xf32> -> vector<12x64xf32>
    %c0_124 = arith.constant 0 : index
    %c0_125 = arith.constant 0 : index
    %258 = vector.load %arg20[%c0_124, %c0_125] : memref<1x64xf32, #tpu.memory_space<vmem>>, vector<1x64xf32>
    %259 = vector.broadcast %258 : vector<1x64xf32> to vector<12x64xf32>
    %260 = arith.addf %257, %259 : vector<12x64xf32>
    %cst_126 = arith.constant 5.000000e-01 : f32
    %261 = vector.broadcast %cst_126 : f32 to vector<12x64xf32>
    %262 = arith.mulf %261, %260 : vector<12x64xf32>
    %cst_127 = arith.constant 0.707106769 : f32
    %263 = vector.broadcast %cst_127 : f32 to vector<12x64xf32>
    %264 = arith.mulf %260, %263 : vector<12x64xf32>
    %265 = math.absf %264 : vector<12x64xf32>
    %cst_128 = arith.constant 0.327591091 : f32
    %266 = vector.broadcast %cst_128 : f32 to vector<12x64xf32>
    %267 = arith.mulf %266, %265 : vector<12x64xf32>
    %cst_129 = arith.constant 1.000000e+00 : f32
    %268 = vector.broadcast %cst_129 : f32 to vector<12x64xf32>
    %269 = arith.addf %268, %267 : vector<12x64xf32>
    %cst_130 = arith.constant 1.000000e+00 : f32
    %270 = vector.broadcast %cst_130 : f32 to vector<12x64xf32>
    %271 = arith.divf %270, %269 : vector<12x64xf32>
    %cst_131 = arith.constant 1.06140542 : f32
    %272 = vector.broadcast %cst_131 : f32 to vector<12x64xf32>
    %273 = arith.mulf %272, %271 : vector<12x64xf32>
    %cst_132 = arith.constant -1.45315206 : f32
    %274 = vector.broadcast %cst_132 : f32 to vector<12x64xf32>
    %275 = arith.addf %273, %274 : vector<12x64xf32>
    %276 = arith.mulf %275, %271 : vector<12x64xf32>
    %cst_133 = arith.constant 1.42141378 : f32
    %277 = vector.broadcast %cst_133 : f32 to vector<12x64xf32>
    %278 = arith.addf %276, %277 : vector<12x64xf32>
    %279 = arith.mulf %278, %271 : vector<12x64xf32>
    %cst_134 = arith.constant -0.284496725 : f32
    %280 = vector.broadcast %cst_134 : f32 to vector<12x64xf32>
    %281 = arith.addf %279, %280 : vector<12x64xf32>
    %282 = arith.mulf %281, %271 : vector<12x64xf32>
    %cst_135 = arith.constant 0.254829586 : f32
    %283 = vector.broadcast %cst_135 : f32 to vector<12x64xf32>
    %284 = arith.addf %282, %283 : vector<12x64xf32>
    %285 = arith.mulf %284, %271 : vector<12x64xf32>
    %cst_136 = arith.constant 0.000000e+00 : f32
    %286 = vector.broadcast %cst_136 : f32 to vector<12x64xf32>
    %287 = arith.subf %286, %265 : vector<12x64xf32>
    %288 = arith.mulf %287, %265 : vector<12x64xf32>
    %289 = math.exp %288 : vector<12x64xf32>
    %290 = arith.mulf %285, %289 : vector<12x64xf32>
    %cst_137 = arith.constant 1.000000e+00 : f32
    %291 = vector.broadcast %cst_137 : f32 to vector<12x64xf32>
    %292 = arith.subf %291, %290 : vector<12x64xf32>
    %cst_138 = arith.constant 0.000000e+00 : f32
    %293 = vector.broadcast %cst_138 : f32 to vector<12x64xf32>
    %294 = arith.cmpf oge, %264, %293 : vector<12x64xf32>
    %cst_139 = arith.constant 0.000000e+00 : f32
    %295 = vector.broadcast %cst_139 : f32 to vector<12x64xf32>
    %296 = arith.subf %295, %292 : vector<12x64xf32>
    %297 = arith.select %294, %292, %296 : vector<12x64xi1>, vector<12x64xf32>
    %cst_140 = arith.constant 1.000000e+00 : f32
    %298 = vector.broadcast %cst_140 : f32 to vector<12x64xf32>
    %299 = arith.addf %298, %297 : vector<12x64xf32>
    %300 = arith.mulf %262, %299 : vector<12x64xf32>
    %c0_141 = arith.constant 0 : index
    %c0_142 = arith.constant 0 : index
    %301 = vector.load %arg21[%c0_141, %c0_142] : memref<64x32xf32, #tpu.memory_space<vmem>>, vector<64x32xf32>
    %cst_143 = arith.constant dense<0.000000e+00> : vector<12x32xf32>
    %302 = tpu.matmul %300, %301, %cst_143 {dimension_numbers = #tpu.dot_dimension_numbers<[1], [0], [0], [1], [0, 0, 1, 1], [], []>} : vector<12x64xf32>, vector<64x32xf32>, vector<12x32xf32> -> vector<12x32xf32>
    %c0_144 = arith.constant 0 : index
    %c0_145 = arith.constant 0 : index
    %303 = vector.load %arg22[%c0_144, %c0_145] : memref<1x32xf32, #tpu.memory_space<vmem>>, vector<1x32xf32>
    %304 = vector.broadcast %303 : vector<1x32xf32> to vector<12x32xf32>
    %305 = arith.addf %302, %304 : vector<12x32xf32>
    %306 = arith.addf %255, %305 : vector<12x32xf32>
    %c0_146 = arith.constant 0 : index
    %c0_147 = arith.constant 0 : index
    %307 = vector.load %arg23[%c0_146, %c0_147] : memref<1x32xf32, #tpu.memory_space<vmem>>, vector<1x32xf32>
    %c0_148 = arith.constant 0 : index
    %c0_149 = arith.constant 0 : index
    %308 = vector.load %arg24[%c0_148, %c0_149] : memref<1x32xf32, #tpu.memory_space<vmem>>, vector<1x32xf32>
    %cst_150 = arith.constant dense<0.000000e+00> : vector<12xf32>
    %309 = vector.multi_reduction <add>, %306, %cst_150 [1] : vector<12x32xf32> to vector<12xf32>
    %310 = vector.shape_cast %309 : vector<12xf32> to vector<12x1xf32>
    %cst_151 = arith.constant 3.200000e+01 : f32
    %311 = vector.broadcast %cst_151 : f32 to vector<12x1xf32>
    %312 = arith.divf %310, %311 : vector<12x1xf32>
    %313 = vector.broadcast %312 : vector<12x1xf32> to vector<12x32xf32>
    %314 = arith.subf %306, %313 : vector<12x32xf32>
    %315 = arith.mulf %314, %314 : vector<12x32xf32>
    %cst_152 = arith.constant dense<0.000000e+00> : vector<12xf32>
    %316 = vector.multi_reduction <add>, %315, %cst_152 [1] : vector<12x32xf32> to vector<12xf32>
    %317 = vector.shape_cast %316 : vector<12xf32> to vector<12x1xf32>
    %cst_153 = arith.constant 3.200000e+01 : f32
    %318 = vector.broadcast %cst_153 : f32 to vector<12x1xf32>
    %319 = arith.divf %317, %318 : vector<12x1xf32>
    %320 = vector.broadcast %312 : vector<12x1xf32> to vector<12x32xf32>
    %321 = arith.subf %306, %320 : vector<12x32xf32>
    %cst_154 = arith.constant 9.99999974E-6 : f32
    %322 = vector.broadcast %cst_154 : f32 to vector<12x1xf32>
    %323 = arith.addf %319, %322 : vector<12x1xf32>
    %324 = math.rsqrt %323 : vector<12x1xf32>
    %325 = vector.broadcast %324 : vector<12x1xf32> to vector<12x32xf32>
    %326 = arith.mulf %321, %325 : vector<12x32xf32>
    %327 = vector.broadcast %307 : vector<1x32xf32> to vector<12x32xf32>
    %328 = arith.mulf %326, %327 : vector<12x32xf32>
    %329 = vector.broadcast %308 : vector<1x32xf32> to vector<12x32xf32>
    %330 = arith.addf %328, %329 : vector<12x32xf32>
    %c0_155 = arith.constant 0 : index
    %c0_156 = arith.constant 0 : index
    %c0_157 = arith.constant 0 : index
    %331 = vector.load %arg25[%c0_155, %c0_156, %c0_157] : memref<1x12x32xf32, #tpu.memory_space<vmem>>, vector<1x12x32xf32>
    %332 = vector.shape_cast %331 : vector<1x12x32xf32> to vector<12x32xf32>
    %333 = vector.shape_cast %330 : vector<12x32xf32> to vector<1x12x32xf32>
    tpu.vector_store %arg25[%c0_155, %c0_156, %c0_157], %333 {strides = array<i32>} : memref<1x12x32xf32, #tpu.memory_space<vmem>>, vector<1x12x32xf32>,
    return
  }
  func.func @transform_0(%arg0: i32) -> (i32, i32, i32) {
    %c0_i32 = arith.constant 0 : i32
    %c0_i32_0 = arith.constant 0 : i32
    %c0_i32_1 = arith.constant 0 : i32
    return %arg0, %c0_i32, %c0_i32_0 : i32, i32, i32
  }
  func.func @transform_1(%arg0: i32) -> (i32, i32, i32) {
    %c0_i32 = arith.constant 0 : i32
    %c0_i32_0 = arith.constant 0 : i32
    %c0_i32_1 = arith.constant 0 : i32
    return %arg0, %c0_i32, %c0_i32_0 : i32, i32, i32
  }
  func.func @transform_2(%arg0: i32) -> (i32, i32) {
    %c0_i32 = arith.constant 0 : i32
    %c0_i32_0 = arith.constant 0 : i32
    %c0_i32_1 = arith.constant 0 : i32
    return %c0_i32, %c0_i32_0 : i32, i32
  }
  func.func @transform_3(%arg0: i32) -> (i32, i32) {
    %c0_i32 = arith.constant 0 : i32
    %c0_i32_0 = arith.constant 0 : i32
    %c0_i32_1 = arith.constant 0 : i32
    return %c0_i32, %c0_i32_0 : i32, i32
  }
  func.func @transform_4(%arg0: i32) -> (i32, i32) {
    %c0_i32 = arith.constant 0 : i32
    %c0_i32_0 = arith.constant 0 : i32
    %c0_i32_1 = arith.constant 0 : i32
    return %c0_i32, %c0_i32_0 : i32, i32
  }
  func.func @transform_5(%arg0: i32) -> (i32, i32) {
    %c0_i32 = arith.constant 0 : i32
    %c0_i32_0 = arith.constant 0 : i32
    %c0_i32_1 = arith.constant 0 : i32
    return %c0_i32, %c0_i32_0 : i32, i32
  }
  func.func @transform_6(%arg0: i32) -> (i32, i32) {
    %c0_i32 = arith.constant 0 : i32
    %c0_i32_0 = arith.constant 0 : i32
    %c0_i32_1 = arith.constant 0 : i32
    return %c0_i32, %c0_i32_0 : i32, i32
  }
  func.func @transform_7(%arg0: i32) -> (i32, i32) {
    %c0_i32 = arith.constant 0 : i32
    %c0_i32_0 = arith.constant 0 : i32
    %c0_i32_1 = arith.constant 0 : i32
    return %c0_i32, %c0_i32_0 : i32, i32
  }
  func.func @transform_8(%arg0: i32) -> (i32, i32) {
    %c0_i32 = arith.constant 0 : i32
    %c0_i32_0 = arith.constant 0 : i32
    %c0_i32_1 = arith.constant 0 : i32
    return %c0_i32, %c0_i32_0 : i32, i32
  }
  func.func @transform_9(%arg0: i32) -> (i32, i32) {
    %c0_i32 = arith.constant 0 : i32
    %c0_i32_0 = arith.constant 0 : i32
    %c0_i32_1 = arith.constant 0 : i32
    return %c0_i32, %c0_i32_0 : i32, i32
  }
  func.func @transform_10(%arg0: i32) -> (i32, i32) {
    %c0_i32 = arith.constant 0 : i32
    %c0_i32_0 = arith.constant 0 : i32
    %c0_i32_1 = arith.constant 0 : i32
    return %c0_i32, %c0_i32_0 : i32, i32
  }
  func.func @transform_11(%arg0: i32) -> (i32, i32) {
    %c0_i32 = arith.constant 0 : i32
    %c0_i32_0 = arith.constant 0 : i32
    %c0_i32_1 = arith.constant 0 : i32
    return %c0_i32, %c0_i32_0 : i32, i32
  }
  func.func @transform_12(%arg0: i32) -> (i32, i32) {
    %c0_i32 = arith.constant 0 : i32
    %c0_i32_0 = arith.constant 0 : i32
    %c0_i32_1 = arith.constant 0 : i32
    return %c0_i32, %c0_i32_0 : i32, i32
  }
  func.func @transform_13(%arg0: i32) -> (i32, i32) {
    %c0_i32 = arith.constant 0 : i32
    %c0_i32_0 = arith.constant 0 : i32
    %c0_i32_1 = arith.constant 0 : i32
    return %c0_i32, %c0_i32_0 : i32, i32
  }
  func.func @transform_14(%arg0: i32) -> (i32, i32) {
    %c0_i32 = arith.constant 0 : i32
    %c0_i32_0 = arith.constant 0 : i32
    %c0_i32_1 = arith.constant 0 : i32
    return %c0_i32, %c0_i32_0 : i32, i32
  }
  func.func @transform_15(%arg0: i32) -> (i32, i32) {
    %c0_i32 = arith.constant 0 : i32
    %c0_i32_0 = arith.constant 0 : i32
    %c0_i32_1 = arith.constant 0 : i32
    return %c0_i32, %c0_i32_0 : i32, i32
  }
  func.func @transform_16(%arg0: i32) -> (i32, i32) {
    %c0_i32 = arith.constant 0 : i32
    %c0_i32_0 = arith.constant 0 : i32
    %c0_i32_1 = arith.constant 0 : i32
    return %c0_i32, %c0_i32_0 : i32, i32
  }
  func.func @transform_17(%arg0: i32) -> (i32, i32) {
    %c0_i32 = arith.constant 0 : i32
    %c0_i32_0 = arith.constant 0 : i32
    %c0_i32_1 = arith.constant 0 : i32
    return %c0_i32, %c0_i32_0 : i32, i32
  }
  func.func @transform_18(%arg0: i32) -> (i32, i32) {
    %c0_i32 = arith.constant 0 : i32
    %c0_i32_0 = arith.constant 0 : i32
    %c0_i32_1 = arith.constant 0 : i32
    return %c0_i32, %c0_i32_0 : i32, i32
  }
  func.func @transform_19(%arg0: i32) -> (i32, i32) {
    %c0_i32 = arith.constant 0 : i32
    %c0_i32_0 = arith.constant 0 : i32
    %c0_i32_1 = arith.constant 0 : i32
    return %c0_i32, %c0_i32_0 : i32, i32
  }
  func.func @transform_20(%arg0: i32) -> (i32, i32) {
    %c0_i32 = arith.constant 0 : i32
    %c0_i32_0 = arith.constant 0 : i32
    %c0_i32_1 = arith.constant 0 : i32
    return %c0_i32, %c0_i32_0 : i32, i32
  }
  func.func @transform_21(%arg0: i32) -> (i32, i32) {
    %c0_i32 = arith.constant 0 : i32
    %c0_i32_0 = arith.constant 0 : i32
    %c0_i32_1 = arith.constant 0 : i32
    return %c0_i32, %c0_i32_0 : i32, i32
  }
  func.func @transform_22(%arg0: i32) -> (i32, i32) {
    %c0_i32 = arith.constant 0 : i32
    %c0_i32_0 = arith.constant 0 : i32
    %c0_i32_1 = arith.constant 0 : i32
    return %c0_i32, %c0_i32_0 : i32, i32
  }
  func.func @transform_23(%arg0: i32) -> (i32, i32) {
    %c0_i32 = arith.constant 0 : i32
    %c0_i32_0 = arith.constant 0 : i32
    %c0_i32_1 = arith.constant 0 : i32
    return %c0_i32, %c0_i32_0 : i32, i32
  }
  func.func @transform_24(%arg0: i32) -> (i32, i32, i32) {
    %c0_i32 = arith.constant 0 : i32
    %c0_i32_0 = arith.constant 0 : i32
    %c0_i32_1 = arith.constant 0 : i32
    return %arg0, %c0_i32, %c0_i32_0 : i32, i32, i32
  }
  func.func @transform_25(%arg0: i32) -> (i32, i32, i32, i32) {
    %c0_i32 = arith.constant 0 : i32
    %c0_i32_0 = arith.constant 0 : i32
    %c0_i32_1 = arith.constant 0 : i32
    %c0_i32_2 = arith.constant 0 : i32
    return %arg0, %c0_i32, %c0_i32_0, %c0_i32_1 : i32, i32, i32, i32
  }
  func.func @transform_26(%arg0: i32) -> (i32, i32, i32, i32) {
    %c0_i32 = arith.constant 0 : i32
    %c0_i32_0 = arith.constant 0 : i32
    %c0_i32_1 = arith.constant 0 : i32
    %c0_i32_2 = arith.constant 0 : i32
    return %arg0, %c0_i32, %c0_i32_0, %c0_i32_1 : i32, i32, i32, i32
  }
}

</mosaic_0001>

<bundles_post_ra>
// kernel: run.10
= control target key start
LH: loop header
LB: loop body
LE: loop exit
PB: predicated region body
PF: predicated region fallthrough
CT: control target
= control target key end

     0   :  { %vm20_vm0 = vcmask 261120   ;;  %v151_v8 = vmov 32.0   ;;  %s229_s0 = inlined_call_operand.vmem [shape: f32[32,32], index: 0, kind: input, shape index: {}]   ;;  %s230_s1 = inlined_call_operand.vmem [shape: f32[1,32], index: 1, kind: input, shape index: {}]   ;;  %s231_s2 = inlined_call_operand.vmem [shape: f32[1,32], index: 2, kind: input, shape index: {}]   ;;  %s232_s3 = inlined_call_operand.vmem [shape: f32[32,32], index: 3, kind: output, shape index: {}]  }
   0x1   :  { %v16_v0 = vld [vmem:[%s229_s0 + $0x10] sm:$0xff]  ;;  %v14_v1 = vld [vmem:[%s229_s0] sm:$0xff]  ;;  %v17_v4 = vld [vmem:[%s229_s0 + $0x18] sm:$0xff]  ;;  %141 = vrcp.f32 %v151_v8 }
   0x2   :  { %v27_v2 = vsel %vm20_vm0, %v16_v0, 0.0  ;;  %v21_v3 = vsel %vm20_vm0, %v14_v1, 0.0  ;;  %v15_v5 = vld [vmem:[%s229_s0 + $0x8] sm:$0xff]  ;;  %v30_v6 = vsel %vm20_vm0, %v17_v4, 0.0  ;;  %v139_v61 = vld [vmem:[%s230_s1] ss:$0 sm:$0xff] }
   0x3   :  { %28 = vadd.xlane.f32.xlu1 %v27_v2  ;;  %22 = vadd.xlane.f32.xlu0 %v21_v3  ;;  %v24_v7 = vsel %vm20_vm0, %v15_v5, 0.0  ;;  %v140_v2 = vld [vmem:[%s231_s2] ss:$0 sm:$0xff] }
   0x7   :  { %v142_v9 = vpop.eup %141 }
   0x8   :  { %v34_v10 = vmul.f32 32.0, %v142_v9  ;;  %vm38_vm1 = vweird.f32 %v142_v9 }
   0xa   :  { %v35_v11 = vsub.f32 1.0, %v34_v10 }
   0xb   :  { %31 = vadd.xlane.f32.xlu1 %v30_v6  ;;  %25 = vadd.xlane.f32.xlu0 %v24_v7 }
   0xc   :  { %v36_v12 = vmul.f32 %v142_v9, %v35_v11 }
   0xe   :  { %v37_v13 = vadd.f32 %v142_v9, %v36_v12 }
  0x10   :  { %v39_v14 = vsel %vm38_vm1, %v142_v9, %v37_v13 }
  0x76   :  { %v29_v15 = vpop.xlane.xlu1 %28  ;;  %v23_v16 = vpop.xlane.xlu0 %22 }
  0x77   :  { %v42_v17 = vmul.f32 %v39_v14, %v29_v15  ;;  %v40_v18 = vmul.f32 %v39_v14, %v23_v16 }
  0x79   :  { %v188_v19 = vsub.f32 %v16_v0, %v42_v17  ;;  %v44_v20 = vsub.f32 %v14_v1, %v40_v18 }
  0x7b   :  { %v50_v21 = vmul.f32 %v188_v19, %v188_v19  ;;  %v48_v22 = vmul.f32 %v44_v20, %v44_v20 }
  0x7d   :  { %v58_v23 = vsel %vm20_vm0, %v50_v21, 0.0  ;;  %v52_v24 = vsel %vm20_vm0, %v48_v22, 0.0 }
  0x7e   :  { %v32_v25 = vpop.xlane.xlu1 %31  ;;  %59 = vadd.xlane.f32.xlu0 %v58_v23  ;;  %53 = vadd.xlane.f32.xlu2 %v52_v24  ;;  %v26_v26 = vpop.xlane.xlu0 %25 }
  0x7f   :  { %v43_v27 = vmul.f32 %v39_v14, %v32_v25  ;;  %v41_v28 = vmul.f32 %v39_v14, %v26_v26 }
  0x81   :  { %v194_v29 = vsub.f32 %v17_v4, %v43_v27  ;;  %v196_v30 = vsub.f32 %v15_v5, %v41_v28 }
  0x83   :  { %v51_v31 = vmul.f32 %v194_v29, %v194_v29  ;;  %v49_v32 = vmul.f32 %v196_v30, %v196_v30 }
  0x85   :  { %v61_v33 = vsel %vm20_vm0, %v51_v31, 0.0  ;;  %v55_v34 = vsel %vm20_vm0, %v49_v32, 0.0 }
  0x86   :  { %62 = vadd.xlane.f32.xlu1 %v61_v33  ;;  %56 = vadd.xlane.f32.xlu2 %v55_v34 }
  0xf1   :  { %v54_v35 = vpop.xlane.xlu2 %53  ;;  %v60_v36 = vpop.xlane.xlu0 %59 }
  0xf2   :  { %v64_v37 = vmul.f32 %v54_v35, %v39_v14  ;;  %v66_v38 = vmul.f32 %v60_v36, %v39_v14 }
  0xf4   :  { %v68_v39 = vadd.f32 1e-05, %v64_v37  ;;  %v70_v40 = vadd.f32 1e-05, %v66_v38 }
  0xf6   :  { %143 = vrsqrt.f32 %v68_v39  ;;  %vm78_vm4 = vweird.f32 %v68_v39  ;;  %vm98_vm6 = vweird.f32 %v70_v40 }
  0xf7   :  { %145 = vrsqrt.f32 %v70_v40 }
  0xf9   :  { %v63_v41 = vpop.xlane.xlu1 %62  ;;  %v57_v42 = vpop.xlane.xlu2 %56 }
  0xfa   :  { %v67_v43 = vmul.f32 %v63_v41, %v39_v14  ;;  %v65_v44 = vmul.f32 %v57_v42, %v39_v14 }
  0xfc   :  { %v144_v45 = vpop.eup %143  ;;  %v71_v46 = vadd.f32 1e-05, %v67_v43  ;;  %v69_v47 = vadd.f32 1e-05, %v65_v44 }
  0xfd   :  { %v146_v48 = vpop.eup %145  ;;  %v73_v49 = vmul.f32 %v144_v45, %v68_v39  ;;  %vm79_vm2 = vweird.f32 %v144_v45 }
  0xfe   :  { %v93_v50 = vmul.f32 %v146_v48, %v70_v40  ;;  %147 = vrsqrt.f32 %v71_v46  ;;  %vm99_vm3 = vweird.f32 %v146_v48  ;;  %vm80_vm5 = vmor %vm78_vm4, %vm79_vm2  ;;  %vm108_vm10 = vweird.f32 %v71_v46 }
  0xff   :  { %v74_v51 = vmul.f32 %v144_v45, %v73_v49  ;;  %149 = vrsqrt.f32 %v69_v47  ;;  %vm100_vm7 = vmor %vm98_vm6, %vm99_vm3  ;;  %vm88_vm12 = vweird.f32 %v69_v47 }
 0x100   :  { %v94_v52 = vmul.f32 %v146_v48, %v93_v50 }
 0x101   :  { %v75_v53 = vmul.f32 0.5, %v74_v51 }
 0x102   :  { %v95_v54 = vmul.f32 0.5, %v94_v52 }
 0x103   :  { %v76_v55 = vsub.f32 1.5, %v75_v53 }
 0x104   :  { %v148_v56 = vpop.eup %147  ;;  %v96_v57 = vsub.f32 1.5, %v95_v54 }
 0x105   :  { %v150_v58 = vpop.eup %149  ;;  %v77_v59 = vmul.f32 %v144_v45, %v76_v55  ;;  %v103_v60 = vmul.f32 %v148_v56, %v71_v46  ;;  %vm109_vm8 = vweird.f32 %v148_v56 }
 0x106   :  { %v97_v62 = vmul.f32 %v146_v48, %v96_v57  ;;  %v83_v63 = vmul.f32 %v150_v58, %v69_v47  ;;  %vm89_vm9 = vweird.f32 %v150_v58  ;;  %vm110_vm11 = vmor %vm108_vm10, %vm109_vm8 }
 0x107   :  { %v81_v0 = vsel %vm80_vm5, %v144_v45, %v77_v59  ;;  %v104_v1 = vmul.f32 %v148_v56, %v103_v60  ;;  %vm90_vm13 = vmor %vm88_vm12, %vm89_vm9 }
 0x108   :  { %v112_v3 = vmul.f32 %v81_v0, %v44_v20  ;;  %v101_v4 = vsel %vm100_vm7, %v146_v48, %v97_v62  ;;  %v84_v5 = vmul.f32 %v150_v58, %v83_v63 }
 0x109   :  { %v114_v6 = vmul.f32 %v101_v4, %v188_v19  ;;  %v105_v7 = vmul.f32 0.5, %v104_v1 }
 0x10a   :  { %v119_v8 = vmul.f32 %v139_v61, %v112_v3  ;;  %v85_v9 = vmul.f32 0.5, %v84_v5 }
 0x10b   :  { %v121_v10 = vmul.f32 %v139_v61, %v114_v6  ;;  %v106_v11 = vsub.f32 1.5, %v105_v7 }
 0x10c   :  { %v126_v12 = vadd.f32 %v140_v2, %v119_v8  ;;  %v86_v13 = vsub.f32 1.5, %v85_v9 }
 0x10d   :  { %v128_v14 = vadd.f32 %v140_v2, %v121_v10  ;;  %v107_v15 = vmul.f32 %v148_v56, %v106_v11 }
 0x10e   :  { %130 = vst.msk [vmem:[%s232_s3] sm:$0xff] %vm20_vm0, %v126_v12  ;;  %v87_v16 = vmul.f32 %v150_v58, %v86_v13 }
 0x10f   :  { %132 = vst.msk [vmem:[%s232_s3 + $0x10] sm:$0xff] %vm20_vm0, %v128_v14  ;;  %v111_v17 = vsel %vm110_vm11, %v148_v56, %v107_v15 }
 0x110   :  { %v115_v18 = vmul.f32 %v111_v17, %v194_v29  ;;  %v91_v19 = vsel %vm90_vm13, %v150_v58, %v87_v16 }
 0x111   :  { %v113_v20 = vmul.f32 %v91_v19, %v196_v30 }
 0x112   :  { %v122_v21 = vmul.f32 %v139_v61, %v115_v18 }
 0x113   :  { %v120_v22 = vmul.f32 %v139_v61, %v113_v20 }
 0x114   :  { %v129_v23 = vadd.f32 %v140_v2, %v122_v21 }
 0x115   :  { %v127_v24 = vadd.f32 %v140_v2, %v120_v22 }
 0x116   :  { %133 = vst.msk [vmem:[%s232_s3 + $0x18] sm:$0xff] %vm20_vm0, %v129_v23 }
 0x117   :  { %131 = vst.msk [vmem:[%s232_s3 + $0x8] sm:$0xff] %vm20_vm0, %v127_v24 }

// kernel: run.7
= control target key start
LH: loop header
LB: loop body
LE: loop exit
PB: predicated region body
PF: predicated region fallthrough
CT: control target
= control target key end

     0   :  { %vm45_vm0 = vcmask 1043456   ;;  %vm91_vm1 = vcmask 1044480   ;;  %vm32_vm2 = vcmask 31744   ;;  %vm78_vm3 = vcmask 171008   ;;  %s259_s4 = inlined_call_operand.vmem [shape: f32[4,32], index: 4, kind: input, shape index: {}]   ;;  %s260_s3 = inlined_call_operand.vmem [shape: f32[21,32], index: 3, kind: input, shape index: {}]   ;;  %s261_s1 = inlined_call_operand.vmem [shape: f32[32,4], index: 1, kind: input, shape index: {}]   ;;  %s262_s0 = inlined_call_operand.vmem [shape: f32[32,21], index: 0, kind: input, shape index: {}]   ;;  %s263_s2 = inlined_call_operand.vmem [shape: f32[32,32], index: 2, kind: input, shape index: {}]   ;;  %s264_s5 = inlined_call_operand.vmem [shape: f32[32,32], index: 5, kind: output, shape index: {}]  }
   0x1   :  { %v31_v0 = vld [vmem:[%s259_s4] sm:$0xf]  ;;  %v26_v1 = vld [vmem:[%s260_s3 + $0x10] sm:$0x1f]  ;;  %v28_v2 = vld [vmem:[%s261_s1 + $0x8] sm:$0xff]  ;;  %vm132_vm4 = vcmask 261120  }
   0x2   :  { %151 = vmatpush.msk.msra.mxu3 %vm45_vm0, %v31_v0  ;;  %146 = vmatpush.msk.msra.mxu1 %vm91_vm1, %v26_v1  ;;  %v25_v3 = vld [vmem:[%s260_s3 + $0x8] sm:$0xff]  ;;  %v24_v4 = vld [vmem:[%s260_s3] sm:$0xff]  ;;  %v22_v7 = vld [vmem:[%s262_s0 + $0x10] sm:$0xff] }
   0x3   :  { %143 = vmatmul.msk.f32.vlgmr.msra.gmra.mxu3 %vm32_vm2, %v28_v2  ;;  %152 = vmatpush.msk.msra.mxu2 %vm91_vm1, %v26_v1  ;;  %v20_v5 = vld [vmem:[%s262_s0] sm:$0xff]  ;;  %v29_v8 = vld [vmem:[%s261_s1 + $0x10] sm:$0xff]  ;;  %v21_v9 = vld [vmem:[%s262_s0 + $0x8] sm:$0xff] }
   0x4   :  { %109 = vmatpush.msra.mxu1 %v25_v3  ;;  %141 = vmatpush.msk.msra.mxu0 %vm45_vm0, %v31_v0  ;;  %v27_v6 = vld [vmem:[%s261_s1] sm:$0xff]  ;;  %v23_v10 = vld [vmem:[%s262_s0 + $0x18] sm:$0xff]  ;;  %v125_v20 = vld [vmem:[%s263_s2 + $0x8] sm:$0xff] }
   0x5   :  { %153 = vmatpush.msra.mxu2 %v25_v3  ;;  %142 = vmatmul.msk.f32.vlgmr.msra.gmra.mxu0 %vm32_vm2, %v27_v6  ;;  %v30_v11 = vld [vmem:[%s261_s1 + $0x18] sm:$0xff]  ;;  %v124_v14 = vld [vmem:[%s263_s2] sm:$0xff]  ;;  %v126_v23 = vld [vmem:[%s263_s2 + $0x10] sm:$0xff] }
   0x6   :  { %110 = vmatpush.msra.mxu1 %v24_v4  ;;  %v127_v29 = vld [vmem:[%s263_s2 + $0x18] sm:$0xff] }
   0x7   :  { %147 = vmatmul.msk.f32.vlgmr.msra.gmra.mxu1 %vm78_vm3, %v20_v5  ;;  %154 = vmatpush.msra.mxu2 %v24_v4 }
   0x8   :  { %149 = vmatmul.msk.f32.vlgmr.msra.gmra.mxu2 %vm78_vm3, %v22_v7 }
   0xb   :  { %144 = vmatmul.msk.f32.gmra.mxu3 %vm32_vm2, %v29_v8 }
   0xf   :  { %148 = vmatmul.msk.f32.gmra.mxu1 %vm78_vm3, %v21_v9 }
  0x10   :  { %150 = vmatmul.msk.f32.gmra.mxu2 %vm78_vm3, %v23_v10 }
  0x13   :  { %145 = vmatmul.msk.f32.gmra.mxu3 %vm32_vm2, %v30_v11 }
  0x82   :  { %v66_v12 = vpop.f32.mrf.mxu0 }
  0x84   :  { %v112_v13 = vpop.f32.mrf.mxu1 }
  0x85   :  { %v113_v15 = vadd.f32 %v112_v13, %v66_v12 }
  0x86   :  { %v69_v16 = vpop.f32.mrf.mxu3 }
  0x87   :  { %v128_v17 = vadd.f32 %v124_v14, %v113_v15 }
  0x89   :  { %133 = vst.msk [vmem:[%s264_s5] sm:$0xff] %vm132_vm4, %v128_v17 }
  0x8b   :  { %v118_v18 = vpop.f32.mrf.mxu2 }
  0x8c   :  { %v115_v19 = vpop.f32.mrf.mxu1 }
  0x8d   :  { %v116_v21 = vadd.f32 %v115_v19, %v69_v16 }
  0x8e   :  { %v72_v22 = vpop.f32.mrf.mxu3 }
  0x8f   :  { %v129_v24 = vadd.f32 %v125_v20, %v116_v21  ;;  %v119_v25 = vadd.f32 %v118_v18, %v72_v22 }
  0x91   :  { %134 = vst.msk [vmem:[%s264_s5 + $0x8] sm:$0xff] %vm132_vm4, %v129_v24  ;;  %v130_v26 = vadd.f32 %v126_v23, %v119_v25 }
  0x93   :  { %135 = vst.msk [vmem:[%s264_s5 + $0x10] sm:$0xff] %vm132_vm4, %v130_v26  ;;  %v121_v27 = vpop.f32.mrf.mxu2 }
  0x96   :  { %v75_v28 = vpop.f32.mrf.mxu3 }
  0x97   :  { %v122_v30 = vadd.f32 %v121_v27, %v75_v28 }
  0x99   :  { %v131_v31 = vadd.f32 %v127_v29, %v122_v30 }
  0x9b   :  { %136 = vst.msk [vmem:[%s264_s5 + $0x18] sm:$0xff] %vm132_vm4, %v131_v31 }

// kernel: tile.19
= control target key start
LH: loop header
LB: loop body
LE: loop exit
PB: predicated region body
PF: predicated region fallthrough
CT: control target
= control target key end

     0   :  { %vm3_vm0 = vcmask 261120   ;;  %s60_s0 = inlined_call_operand.vmem [shape: f32[2,12,32], index: 0, kind: input, shape index: {}]   ;;  %s61_s1 = inlined_call_operand.vmem [shape: f32[24,32], index: 1, kind: output, shape index: {}]  }
   0x1   :  { %v2_v0 = vld [vmem:[%s60_s0] sm:$0xff]   ;;  %v20_v1 = vld [vmem:[%s60_s0 + $0x8] sm:$0xf]   ;;  %v22_v2 = vld [vmem:[%s60_s0 + $0x10] sm:$0xff]  }
   0x2   :  { %4 = vst.msk [vmem:[%s61_s1] sm:$0xff] %vm3_vm0, %v2_v0   ;;  %v24_v3 = vld [vmem:[%s60_s0 + $0x18] sm:$0xf]  }
   0x3   :  { %21 = vst.msk [vmem:[%s61_s1 + $0x8] sm:$0xf] %vm3_vm0, %v20_v1  }
   0x4   :  { %23 = vst.msk [vmem:[%s61_s1 + $0xc] sm:$0xff] %vm3_vm0, %v22_v2  }
   0x5   :  { %25 = vst.msk [vmem:[%s61_s1 + $0x14] sm:$0xf] %vm3_vm0, %v24_v3  }

// kernel: run.8
= control target key start
LH: loop header
LB: loop body
LE: loop exit
PB: predicated region body
PF: predicated region fallthrough
CT: control target
= control target key end

     0   :  { %s2246_s0 = inlined_call_operand.vmem [shape: f32[2,16,32], index: 0, kind: input, shape index: {}]   ;;  %s2247_s1 = inlined_call_operand.vmem [shape: f32[32,32], index: 1, kind: input, shape index: {}]   ;;  %s2248_s2 = inlined_call_operand.vmem [shape: f32[1,32], index: 2, kind: input, shape index: {}]   ;;  %s2249_s3 = inlined_call_operand.vmem [shape: f32[32,64], index: 3, kind: input, shape index: {}]   ;;  %s2250_s4 = inlined_call_operand.vmem [shape: f32[1,64], index: 4, kind: input, shape index: {}]   ;;  %s2251_s5 = inlined_call_operand.vmem [shape: f32[32,32], index: 5, kind: input, shape index: {}]   ;;  %s2252_s6 = inlined_call_operand.vmem [shape: f32[1,32], index: 6, kind: input, shape index: {}]   ;;  %s2253_s7 = inlined_call_operand.vmem [shape: f32[1,32], index: 7, kind: input, shape index: {}]   ;;  %s2254_s8 = inlined_call_operand.vmem [shape: f32[1,32], index: 8, kind: input, shape index: {}]   ;;  %s2255_s9 = inlined_call_operand.vmem [shape: f32[32,64], index: 9, kind: input, shape index: {}]   ;;  %s2256_s10 = inlined_call_operand.vmem [shape: f32[1,64], index: 10, kind: input, shape index: {}]   ;;  %s2257_s11 = inlined_call_operand.vmem [shape: f32[64,32], index: 11, kind: input, shape index: {}]   ;;  %s2258_s12 = inlined_call_operand.vmem [shape: f32[1,32], index: 12, kind: input, shape index: {}]   ;;  %s2259_s13 = inlined_call_operand.vmem [shape: f32[1,32], index: 13, kind: input, shape index: {}]   ;;  %s2260_s14 = inlined_call_operand.vmem [shape: f32[1,32], index: 14, kind: input, shape index: {}]   ;;  %s2261_s15 = inlined_call_operand.vmem [shape: f32[2,16,32], index: 15, kind: output, shape index: {0}]   ;;  %s2262_s16 = inlined_call_operand.hbm [shape: f32[2,4,16,16], index: 16, kind: output, shape index: {1}]  }
   0x1   :  { %2269 = sst [smem:[#allocation9_spill]] %s2246_s0 }
   0x2   :  { %2270 = sst [smem:[#allocation10_spill]] %s2247_s1 }
   0x3   :  { %2271 = sst [smem:[#allocation11_spill]] %s2248_s2 }
   0x4   :  { %2272 = sst [smem:[#allocation12_spill]] %s2249_s3 }
   0x5   :  { %2273 = sst [smem:[#allocation13_spill]] %s2250_s4 }
   0x6   :  { %2274 = sst [smem:[#allocation14_spill]] %s2251_s5 }
   0x7   :  { %22 = vsyncpa [#allocation3], 0 }
   0x8   :  { %24 = vsyncpa [#allocation3 + $0x1], 0  ;;  %s1875_s21 = smov 0   ;;  %s1877_s22 = smov 0  }
   0x9   :  { %s1879_s23 = smov 0   ;;  %s1881_s24 = smov 0  }
   0xa LB: > { %2275 = sst [smem:[#allocation5_spill]] %s1774_s23  ;;  %s1896_s25 = sadd.s32 4294967295, %s1778_s24   ;;  %s1778_s24 = sphi %s1881_s24, %s2290_s24   ;;  %s1774_s23 = sphi %s1879_s23, %s2292_s23   ;;  %s1770_s22 = sphi %s1877_s22, %s2294_s22   ;;  %s1766_s21 = sphi %s1875_s21, %s2293_s21  }
   0xb   : > { %s1525_s26 = sadd.s32 4294967294, %s1778_s24   ;;  %s1900_s27 = sadd.s32 1, %s1778_s24  }
   0xc   : > { %2276 = sst [smem:[#allocation6_spill]] %s1900_s27  ;;  %s383_s28 = sadd.s32 1, %s1774_s23 }
   0xd   : > { %s380_s29 = ssub.s32 %s1778_s24, %s1900_s27  ;;  %p393_p0 = scmp.ne.s32.totalorder %s1774_s23, %s1770_s22 }
   0xe   : > { %p381_p1 = scmp.eq.s32.totalorder %s380_s29, 0  ;;  %p394_p2 = scmp.eq.s32.totalorder %s1896_s25, 1 }
   0xf   : > { %p399_p3 = scmp.ne.s32.totalorder %s1770_s22, %s1766_s21  ;;  %p400_p4 = scmp.eq.s32.totalorder %s1525_s26, 1 }
  0x10   : > { %s1911_s30 = scalar_select %p381_p1, %s1774_s23, %s383_s28  }
  0x11   : > { %p1913_p5 = por %p394_p2, %p393_p0  ;;  %p1917_p6 = por %p400_p4, %p399_p3 }
  0x12   : > { %2277 = sst [smem:[#allocation7_spill]] %s1911_s30  ;;  %p1528_p7 = scmp.ge.s32.totalorder %s1778_s24, 1 }
  0x13   : > { %s2279_s17 = scalar_select %p1917_p6, 1, 0 }
  0x14   : > { %p468_p8 = scmp.lt.s32.totalorder %s1778_s24, 3 }
  0x15   : > { %2280 = sst [smem:[#allocation8_spill]] %s2279_s17 }
  0x16   : > { %p469_p9 = pnand %p1528_p7, %p468_p8 }
  0x17   : > { %s2281_s3 = sld [smem:[#allocation12_spill]] (!%p469_p9)  ;;  %p523_p10 = scmp.lt.s32.totalorder (!%p469_p9), %s1896_s25, 1 }
  0x18   : > { %472 = sbr.rel (%p469_p9) target bundleno = 2355 (0x933), region = 80  ;;  %s2282_s1 = sld [smem:[#allocation10_spill]] (!%p469_p9) }
  0x19   : > { %s2283_s18 = sld [smem:[#allocation9_spill]] (!%p469_p9)  ;;  %s1780_s30 = smov (!%p469_p9), 120  }
  0x1a   : > { %s2284_s2 = sld [smem:[#allocation11_spill]] (!%p469_p9)  ;;  %s1781_s29 = smov (!%p469_p9), 88  }
  0x1b   : > { %s2285_s4 = sld [smem:[#allocation13_spill]] (!%p469_p9)  ;;  %s1784_s26 = smov (!%p469_p9), 96  }
  0x1c   : > { %s2286_s5 = sld [smem:[#allocation14_spill]] (!%p469_p9)  ;;  %s2268_s27 = sand.u32 (!%p469_p9), 1, %s1770_s22  }
  0x1d   : > { %v543_v0 = vld [vmem:[%s2281_s3 + $0x18] sm:$0xff]  ;;  %v542_v1 = vld [vmem:[%s2281_s3 + $0x10] sm:$0xff]  ;;  %v541_v4 = vld [vmem:[%s2281_s3 + $0x8] sm:$0xff]  ;;  %s1943_s20 = scalar_select %p523_p10, %s1896_s25, 1  ;;  %vm553_vm0 = vcmask 261120   ;;  %vm613_vm1 = vcmask 64512  }
  0x1e   : > { %598 = vmatpush.msra.mxu1 %v543_v0  ;;  %v538_v2 = vld [vmem:[%s2282_s1 + $0x18] sm:$0xff]  ;;  %v537_v3 = vld [vmem:[%s2282_s1 + $0x10] sm:$0xff]  ;;  %v540_v5 = vld [vmem:[%s2281_s3] sm:$0xff]  ;;  %vm649_vm2 = vcmask 130048   ;;  %s1529_s17 = sshll.u32 %s2268_s27, 6 }
  0x1f   : > { %572 = vmatpush.msra.mxu0 %v538_v2  ;;  %v536_v6 = vld [vmem:[%s2282_s1 + $0x8] sm:$0xff]  ;;  %s2267_s23 = sshll.u32 %s1943_s20, 4  ;;  %v535_v7 = vld [vmem:[%s2282_s1] sm:$0xff] }
  0x20   : > { %599 = vmatpush.msra.mxu1 %v542_v1  ;;  %s527_s19 = scalar_lea.vmem %s2283_s18, %s2267_s23  ;;  %v1658_v10 = vld [vmem:[%s2284_s2] ss:$0 sm:$0xff]  ;;  %s1782_s18 = smov 112  }
  0x21   : > { %573 = vmatpush.msra.mxu0 %v537_v3  ;;  %v1957_v8 = vld [vmem:[%s527_s19] sm:$0xff]  ;;  %v1963_v9 = vld [vmem:[%s527_s19 + $0x8] sm:$0xff]  ;;  %s1783_s19 = smov 104   ;;  %s1587_s23 = sshll.u32 %s1896_s25, 6 }
  0x22   : > { %600 = vmatpush.msra.mxu1 %v541_v4  ;;  %v1657_v14 = vld [vmem:[%s2285_s4] ss:$0 sm:$0xff]  ;;  %v546_v2 = vld [vmem:[%s2286_s5 + $0x8] sm:$0xff]  ;;  %s1736_s25 = scalar_lea.hbm %s2262_s16, 128 }
  0x23   : > { %574 = vmatpush.msra.mxu0 %v536_v6  ;;  %v545_v59 = vld [vmem:[%s2286_s5] sm:$0xff] }
  0x24   : > { %601 = vmatpush.msra.mxu1 %v540_v5 }
  0x25   : > { %1536 = vmatmul.msk.f32.vlgmr.msra.gmra.mxu1 %vm553_vm0, %v1957_v8  ;;  %575 = vmatpush.msra.mxu0 %v535_v7 }
  0x26   : > { %1534 = vmatmul.msk.f32.vlgmr.msra.gmra.mxu0 %vm553_vm0, %v1957_v8 }
  0x2d   : > { %1537 = vmatmul.msk.f32.gmra.mxu1 %vm553_vm0, %v1963_v9 }
  0x2e   : > { %1535 = vmatmul.msk.f32.gmra.mxu0 %vm553_vm0, %v1963_v9 }
  0xa2   : > { %v603_v11 = vpop.f32.mrf.mxu1 }
  0xa3   : > { %v577_v12 = vpop.f32.mrf.mxu0  ;;  %v604_v19 = vadd.f32 %v1657_v14, %v603_v11 }
  0xa4   : > { %v1972_v13 = vadd.f32 %v1658_v10, %v577_v12 }
  0xa6   : > { %740 = vrot.lane.b32.xlu1 %v1972_v13, %s1780_s30 }
  0xaa   : > { %v606_v15 = vpop.f32.mrf.mxu1 }
  0xab   : > { %v1978_v16 = vadd.f32 %v1657_v14, %v606_v15  ;;  %v580_v17 = vpop.f32.mrf.mxu0 }
  0xac   : > { %v1980_v18 = vadd.f32 %v1658_v10, %v580_v17 }
  0xad   : > { %746 = vrot.lane.b32.xlu0 %v1978_v16, %s1780_s30  ;;  %1538 = vmatpush.xpose.msk.msra.mxu2 %vm613_vm1, %v1978_v16  ;;  %v1998_v28 = vpack.i.bf16 %v604_v19, %v1978_v16 }
  0xae   : > { %742 = vrot.lane.b32.xlu1 %v1980_v18, %s1780_s30 }
  0xb1   : > { %1539 = vmatpush.xpose.msk.msra.mxu2 %vm613_vm1, %v604_v19 }
  0xb4   : > { %1540 = vmatmul.msk.f32.vlgmr.msra.gmra.mxu2 %vm613_vm1, %v1972_v13 }
  0xb5   : > { %744 = vrot.lane.b32.xlu0 %v604_v19, %s1780_s30  ;;  %860 = vmatpush.msrb.mxu2 %v546_v2  ;;  %s1785_s30 = smov 72  }
  0xbc   : > { %1541 = vmatmul.msk.f32.gmra.mxu2 %vm613_vm1, %v1980_v18 }
 0x118   : > { %v741_v21 = vpop.permute.xlu1 %740 }
 0x11f   : > { %v747_v20 = vpop.permute.xlu0 %746 }
 0x120   : > { %1546 = vmatpush.xpose.msk.msrb.mxu0 %vm613_vm1, %v747_v20  ;;  %v743_v23 = vpop.permute.xlu1 %742 }
 0x127   : > { %v745_v22 = vpop.permute.xlu0 %744 }
 0x128   : > { %1547 = vmatpush.xpose.msk.msrb.mxu0 %vm613_vm1, %v745_v22 }
 0x12b   : > { %1548 = vmatmul.msk.f32.vlgmr.msrb.gmra.mxu0 %vm613_vm1, %v741_v21 }
 0x133   : > { %1549 = vmatmul.msk.f32.gmra.mxu0 %vm613_vm1, %v743_v23 }
 0x137   : > { %v643_v24 = vpop.f32.mrf.mxu2 }
 0x138   : > { %v650_v25 = vsel %vm649_vm2, %v643_v24, -inf }
 0x139   : > { %651 = vmax.xlane.f32.xlu2 %v650_v25 }
 0x13f   : > { %v646_v26 = vpop.f32.mrf.mxu2 }
 0x140   : > { %v653_v27 = vsel %vm649_vm2, %v646_v26, -inf }
 0x141   : > { %654 = vmax.xlane.f32.xlu0 %v653_v27 }
 0x155   : > { %1643 = vrot.lane.b32.xlu0 %v1998_v28, %s1781_s29  ;;  %s2028_s29 = scalar_lea.vmem [#allocation2], %s1529_s17  ;;  %s1786_s17 = smov 80  }
 0x15d   : > { %876 = vrot.lane.b32.xlu0 %v1978_v16, %s1782_s18 }
 0x165   : > { %1004 = vrot.lane.b32.xlu0 %v604_v19, %s1783_s19 }
 0x16d   : > { %874 = vrot.lane.b32.xlu0 %v604_v19, %s1782_s18 }
 0x175   : > { %872 = vrot.lane.b32.xlu0 %v1980_v18, %s1782_s18 }
 0x1a8   : > { %v773_v29 = vpop.f32.mrf.mxu0 }
 0x1a9   : > { %v779_v30 = vsel %vm649_vm2, %v773_v29, -inf }
 0x1aa   : > { %780 = vmax.xlane.f32.xlu2 %v779_v30 }
 0x1ac   : > { %v652_v37 = vpop.xlane.xlu2 %651 }
 0x1ad   : > { %v656_v38 = vsub.f32 %v643_v24, %v652_v37 }
 0x1af   : > { %v658_v39 = vmul.f32 1.442695, %v656_v38 }
 0x1b0   : > { %v776_v31 = vpop.f32.mrf.mxu0 }
 0x1b1   : > { %v782_v32 = vsel %vm649_vm2, %v776_v31, -inf  ;;  %1666 = vpow2.f32 %v658_v39 }
 0x1b2   : > { %783 = vmax.xlane.f32.xlu1 %v782_v32 }
 0x1b4   : > { %v655_v33 = vpop.xlane.xlu0 %654 }
 0x1b5   : > { %v657_v44 = vsub.f32 %v646_v26, %v655_v33  ;;  %v2064_v26 = vld [vmem:[%s2252_s6] ss:$0 sm:$0xff] }
 0x1b7   : > { %v1667_v40 = vpop.eup %1666  ;;  %v660_v46 = vmul.f32 1.442695, %v657_v44 }
 0x1b8   : > { %v662_v41 = vsel %vm649_vm2, %v1667_v40, 0.0 }
 0x1c2   : > { %1638 = vrot.lane.b32.xlu2 %v1998_v28, %s1784_s26  ;;  %s2287_s26 = sand.u32 1, %s1770_s22  }
 0x1c3   : > { %s1420_s28 = scalar_lea.sflag [#allocation3], %s2287_s26 }
 0x1c7   : > { %v1644_v34 = vpop.permute.xlu0 %1643 }
 0x1c8   : > { %v1645_v35 = vunpack.i.l.bf16 %v1644_v34  ;;  %v1646_v36 = vunpack.i.h.bf16 %v1644_v34 }
 0x1ca   : > { %830 = vmatpush.msrb.mxu1 %v1645_v35 }
 0x1cc   : > { %831 = vmatpush.msrb.mxu1 %v1646_v36 }
 0x1cf   : > { %v877_v60 = vpop.permute.xlu0 %876 }
 0x1d7   : > { %v1005_v62 = vpop.permute.xlu0 %1004 }
 0x1df   : > { %v875_v1 = vpop.permute.xlu0 %874 }
 0x1e7   : > { %v873_v22 = vpop.permute.xlu0 %872 }
 0x1eb   : > { %663 = vadd.xlane.f32.xlu2 %v662_v41 }
 0x21d   : > { %v781_v42 = vpop.xlane.xlu2 %780 }
 0x21e   : > { %v785_v43 = vsub.f32 %v773_v29, %v781_v42 }
 0x220   : > { %v787_v45 = vmul.f32 1.442695, %v785_v43 }
 0x222   : > { %1668 = vpow2.f32 %v787_v45 }
 0x223   : > { %1670 = vpow2.f32 %v660_v46 }
 0x225   : > { %v784_v47 = vpop.xlane.xlu1 %783  ;;  %v1639_v48 = vpop.permute.xlu2 %1638 }
 0x226   : > { %v786_v49 = vsub.f32 %v776_v31, %v784_v47  ;;  %v1640_v50 = vunpack.i.l.bf16 %v1639_v48  ;;  %v1641_v53 = vunpack.i.h.bf16 %v1639_v48 }
 0x228   : > { %v1669_v51 = vpop.eup %1668  ;;  %v789_v52 = vmul.f32 1.442695, %v786_v49  ;;  %700 = vmatpush.msra.mxu3 %v1640_v50 }
 0x229   : > { %v791_v54 = vsel %vm649_vm2, %v1669_v51, 0.0  ;;  %v1671_v55 = vpop.eup %1670 }
 0x22a   : > { %1672 = vpow2.f32 %v789_v52  ;;  %792 = vadd.xlane.f32.xlu2 %v791_v54  ;;  %701 = vmatpush.msra.mxu3 %v1641_v53  ;;  %v665_v58 = vsel %vm649_vm2, %v1671_v55, 0.0 }
 0x22c   : > { %730 = vmatpush.msrb.mxu3 %v545_v59 }
 0x230   : > { %v1673_v56 = vpop.eup %1672 }
 0x231   : > { %v794_v57 = vsel %vm649_vm2, %v1673_v56, 0.0 }
 0x232   : > { %795 = vadd.xlane.f32.xlu1 %v794_v57  ;;  %666 = vadd.xlane.f32.xlu2 %v665_v58 }
 0x24a   : > { %870 = vrot.lane.b32.xlu2 %v1972_v13, %s1782_s18  ;;  %s1435_s18 = sshll.u32 %s2028_s29, 4  ;;  %s1436_s18 = int_to_ptr.vmem [resolvable:$true] %s1435_s18 }
 0x24b   : > { %1006 = vrot.lane.b32.xlu1 %v1978_v16, %s1783_s19 }
 0x253   : > { %1000 = vrot.lane.b32.xlu1 %v1972_v13, %s1783_s19 }
 0x25b   : > { %1002 = vrot.lane.b32.xlu1 %v1980_v18, %s1783_s19 }
 0x25e   : > { %v664_v61 = vpop.xlane.xlu2 %663 }
 0x25f   : > { %1674 = vrcp.f32 %v664_v61 }
 0x265   : > { %v1675_v63 = vpop.eup %1674 }
 0x266   : > { %v670_v0 = vmul.f32 %v1675_v63, %v1667_v40 }
 0x268   : > { %672 = vst.msk [vmem:[%s2028_s29] sm:$0xff] %vm649_vm2, %v670_v0  ;;  %1542 = vmatmul.msk.f32.vlgmr.msra.gmra.mxu3 %vm649_vm2, %v670_v0 }
 0x269   : > { %1556 = vmatpush.xpose.msk.msra.mxu3 %vm613_vm1, %v877_v60 }
 0x26d   : > { %1557 = vmatpush.xpose.msk.msra.mxu3 %vm613_vm1, %v875_v1 }
 0x29d   : > { %v793_v3 = vpop.xlane.xlu2 %792 }
 0x29e   : > { %1676 = vrcp.f32 %v793_v3 }
 0x2a4   : > { %v1677_v4 = vpop.eup %1676 }
 0x2a5   : > { %v796_v5 = vpop.xlane.xlu1 %795  ;;  %v667_v6 = vpop.xlane.xlu2 %666  ;;  %v799_v7 = vmul.f32 %v1677_v4, %v1669_v51 }
 0x2a6   : > { %1678 = vrcp.f32 %v796_v5 }
 0x2a7   : > { %1680 = vrcp.f32 %v667_v6  ;;  %1550 = vst.msk [vmem:[%s2028_s29 + $0x10] sm:$0xff] %vm649_vm2, %v799_v7  ;;  %1552 = vmatmul.msk.f32.vlgmr.msrb.gmra.mxu1 %vm649_vm2, %v799_v7 }
 0x2ac   : > { %v1679_v10 = vpop.eup %1678 }
 0x2ad   : > { %v1681_v11 = vpop.eup %1680  ;;  %v800_v12 = vmul.f32 %v1679_v10, %v1673_v56  ;;  %v871_v20 = vpop.permute.xlu2 %870 }
 0x2ae   : > { %v671_v13 = vmul.f32 %v1681_v11, %v1671_v55 }
 0x2af   : > { %1551 = vst.msk [vmem:[%s2028_s29 + $0x18] sm:$0xff] %vm649_vm2, %v800_v12  ;;  %1553 = vmatmul.msk.f32.gmra.mxu1 %vm649_vm2, %v800_v12 }
 0x2b0   : > { %673 = vst.msk [vmem:[%s2028_s29 + $0x8] sm:$0xff] %vm649_vm2, %v671_v13  ;;  %1543 = vmatmul.msk.f32.gmra.mxu3 %vm649_vm2, %v671_v13 }
 0x2bd   : > { %v1007_v14 = vpop.permute.xlu1 %1006 }
 0x2be   : > { %1566 = vmatpush.xpose.msk.msra.mxu2 %vm613_vm1, %v1007_v14  ;;  %v548_v14 = vld [vmem:[%s2286_s5 + $0x18] sm:$0xff] }
 0x2c2   : > { %1567 = vmatpush.xpose.msk.msra.mxu2 %vm613_vm1, %v1005_v62 }
 0x2c5   : > { %v1001_v18 = vpop.permute.xlu1 %1000 }
 0x2cd   : > { %v1003_v21 = vpop.permute.xlu1 %1002 }
 0x2eb   : > { %v703_v15 = vpop.f32.mrf.mxu3 }
 0x2ec   : > { %1544 = vmatmul.msk.f32.vlgmr.msrb.gmra.mxu3 %vm613_vm1, %v703_v15  ;;  %v547_v15 = vld [vmem:[%s2286_s5 + $0x10] sm:$0xff] }
 0x2ed   : > { %990 = vmatpush.msra.mxu1 %v547_v15 }
 0x324   : > { %v833_v16 = vpop.f32.mrf.mxu1 }
 0x325   : > { %1554 = vmatmul.msk.f32.vlgmr.msrb.gmra.mxu2 %vm613_vm1, %v833_v16 }
 0x32c   : > { %v836_v17 = vpop.f32.mrf.mxu1 }
 0x32d   : > { %1555 = vmatmul.msk.f32.gmra.mxu2 %vm613_vm1, %v836_v17 }
 0x333   : > { %v706_v19 = vpop.f32.mrf.mxu3 }
 0x334   : > { %1545 = vmatmul.msk.f32.gmra.mxu3 %vm613_vm1, %v706_v19 }
 0x335   : > { %1568 = vmatmul.msk.f32.vlgmr.msra.gmra.mxu2 %vm613_vm1, %v1001_v18 }
 0x33c   : > { %1558 = vmatmul.msk.f32.vlgmr.msra.gmra.mxu3 %vm613_vm1, %v871_v20 }
 0x33d   : > { %1569 = vmatmul.msk.f32.gmra.mxu2 %vm613_vm1, %v1003_v21 }
 0x344   : > { %1559 = vmatmul.msk.f32.gmra.mxu3 %vm613_vm1, %v873_v22 }
 0x36f   : > { %v2059_v24 = vpop.f32.mrf.mxu3 }
 0x370   : > { %v738_v20 = vadd.f32 %v2064_v26, %v2059_v24 }
 0x3a8   : > { %v2057_v23 = vpop.f32.mrf.mxu2 }
 0x3a9   : > { %v868_v21 = vadd.f32 %v2057_v23, %v738_v20  ;;  %v1787_v23 = vmov 32.0  }
 0x3b0   : > { %v865_v25 = vpop.f32.mrf.mxu2 }
 0x3b7   : > { %v735_v27 = vpop.f32.mrf.mxu3 }
 0x3b8   : > { %v739_v29 = vadd.f32 %v2064_v26, %v735_v27  ;;  %v1033_v30 = vpop.f32.mrf.mxu2 }
 0x3b9   : > { %v1039_v31 = vsel %vm649_vm2, %v1033_v30, -inf }
 0x3ba   : > { %1040 = vmax.xlane.f32.xlu1 %v1039_v31  ;;  %v2068_v32 = vadd.f32 %v865_v25, %v739_v29 }
 0x3bf   : > { %v903_v33 = vpop.f32.mrf.mxu3 }
 0x3c0   : > { %v909_v34 = vsel %vm649_vm2, %v903_v33, -inf  ;;  %v1036_v35 = vpop.f32.mrf.mxu2 }
 0x3c1   : > { %910 = vmax.xlane.f32.xlu0 %v909_v34  ;;  %v1042_v36 = vsel %vm649_vm2, %v1036_v35, -inf }
 0x3c2   : > { %1043 = vmax.xlane.f32.xlu2 %v1042_v36 }
 0x3c7   : > { %v906_v37 = vpop.f32.mrf.mxu3 }
 0x3c8   : > { %v912_v38 = vsel %vm649_vm2, %v906_v37, -inf }
 0x3c9   : > { %913 = vmax.xlane.f32.xlu1 %v912_v38 }
 0x42d   : > { %v1041_v39 = vpop.xlane.xlu1 %1040 }
 0x42e   : > { %v1045_v40 = vsub.f32 %v1033_v30, %v1041_v39 }
 0x430   : > { %v1047_v41 = vmul.f32 1.442695, %v1045_v40 }
 0x432   : > { %1682 = vpow2.f32 %v1047_v41 }
 0x434   : > { %v911_v42 = vpop.xlane.xlu0 %910 }
 0x435   : > { %v915_v43 = vsub.f32 %v903_v33, %v911_v42  ;;  %v1044_v44 = vpop.xlane.xlu2 %1043 }
 0x436   : > { %v1046_v45 = vsub.f32 %v1036_v35, %v1044_v44 }
 0x437   : > { %v917_v46 = vmul.f32 1.442695, %v915_v43 }
 0x438   : > { %v1683_v47 = vpop.eup %1682  ;;  %v1049_v48 = vmul.f32 1.442695, %v1046_v45 }
 0x439   : > { %1684 = vpow2.f32 %v917_v46  ;;  %v1051_v49 = vsel %vm649_vm2, %v1683_v47, 0.0 }
 0x43a   : > { %1686 = vpow2.f32 %v1049_v48  ;;  %1052 = vadd.xlane.f32.xlu0 %v1051_v49 }
 0x43c   : > { %v914_v50 = vpop.xlane.xlu1 %913 }
 0x43d   : > { %v916_v51 = vsub.f32 %v906_v37, %v914_v50  ;;  %v1198_v50 = vld [vmem:[%s2255_s9 + $0x18] sm:$0xff] }
 0x43e   : > { %1221 = vmatpush.msrb.mxu1 %v1198_v50 }
 0x43f   : > { %v1685_v52 = vpop.eup %1684  ;;  %v919_v53 = vmul.f32 1.442695, %v916_v51  ;;  %v1197_v51 = vld [vmem:[%s2255_s9 + $0x10] sm:$0xff] }
 0x440   : > { %v1687_v54 = vpop.eup %1686  ;;  %v921_v55 = vsel %vm649_vm2, %v1685_v52, 0.0  ;;  %1222 = vmatpush.msrb.mxu1 %v1197_v51 }
 0x441   : > { %1688 = vpow2.f32 %v919_v53  ;;  %922 = vadd.xlane.f32.xlu1 %v921_v55  ;;  %v1054_v56 = vsel %vm649_vm2, %v1687_v54, 0.0  ;;  %v1195_v53 = vld [vmem:[%s2255_s9] sm:$0xff] }
 0x442   : > { %1055 = vadd.xlane.f32.xlu2 %v1054_v56 }
 0x447   : > { %v1689_v57 = vpop.eup %1688 }
 0x448   : > { %v924_v58 = vsel %vm649_vm2, %v1689_v57, 0.0 }
 0x44a   : > { %925 = vadd.xlane.f32.xlu2 %v924_v58 }
 0x44e   : > { %1648 = vrot.lane.b32.xlu0 %v1998_v28, %s1785_s30 }
 0x45a   : > { %1653 = vrot.lane.b32.xlu1 %v1998_v28, %s1786_s17  ;;  %s1434_s17 = scalar_lea.hbm %s2262_s16, %s1587_s23 }
 0x45b   : > { %s1437_s19 = sshll.u32 %s1434_s17, 4  ;;  %s1438_s19 = int_to_ptr.hbm [resolvable:$true] %s1437_s19 }
 0x45c   : > { %s1730_s1 = sshra.s32 %s1438_s19, 4  ;;  %s1731_s1 = int_to_ptr.hbm [resolvable:$true] %s1730_s1 }
 0x45d   : > { %s1732_s2 = scalar_lea.hbm %s1731_s1, 64  ;;  %p1737_p0 = scmp.lt.s32.totalorder %s1731_s1, %s2262_s16 }
 0x45e   : > { %p1733_p11 = scmp.ne.s32.totalorder %s1731_s1, %s1732_s2  ;;  %p1738_p1 = scmp.lt.s32.totalorder %s1736_s25, %s1732_s2 }
 0x460   : > { %p1734_p12 = pnand %p1733_p11, %p1913_p5  ;;  %p1739_p2 = por %p1738_p1, %p1737_p0 }
 0x462   : > { %p1735_p13 = pneg %p1734_p12 }
 0x464   : > { %p1740_p3 = pnand %p1739_p2, %p1735_p13 }
 0x4ad   : > { %v1053_v59 = vpop.xlane.xlu0 %1052 }
 0x4ae   : > { %1690 = vrcp.f32 %v1053_v59 }
 0x4b4   : > { %v1691_v60 = vpop.eup %1690  ;;  %v923_v61 = vpop.xlane.xlu1 %922 }
 0x4b5   : > { %v1059_v62 = vmul.f32 %v1691_v60, %v1683_v47  ;;  %1692 = vrcp.f32 %v923_v61  ;;  %v1056_v63 = vpop.xlane.xlu2 %1055 }
 0x4b6   : > { %1694 = vrcp.f32 %v1056_v63 }
 0x4b7   : > { %1570 = vst.msk [vmem:[%s2028_s29 + $0x30] sm:$0xff] %vm649_vm2, %v1059_v62 }
 0x4bb   : > { %v1693_v0 = vpop.eup %1692 }
 0x4bc   : > { %v1695_v1 = vpop.eup %1694  ;;  %v929_v2 = vmul.f32 %v1693_v0, %v1685_v52  ;;  %v1196_v52 = vld [vmem:[%s2255_s9 + $0x8] sm:$0xff] }
 0x4bd   : > { %v926_v3 = vpop.xlane.xlu2 %925  ;;  %v1060_v4 = vmul.f32 %v1695_v1, %v1687_v54  ;;  %1223 = vmatpush.msrb.mxu1 %v1196_v52 }
 0x4be   : > { %1560 = vst.msk [vmem:[%s2028_s29 + $0x20] sm:$0xff] %vm649_vm2, %v929_v2  ;;  %1696 = vrcp.f32 %v926_v3 }
 0x4bf   : > { %1571 = vst.msk [vmem:[%s2028_s29 + $0x38] sm:$0xff] %vm649_vm2, %v1060_v4  ;;  %1698 = vrcp.f32 %v1787_v23  ;;  %1224 = vmatpush.msrb.mxu1 %v1195_v53 }
 0x4c0   : > { %v1649_v28 = vpop.permute.xlu0 %1648 }
 0x4c1   : > { %v1650_v5 = vunpack.i.l.bf16 %v1649_v28  ;;  %v1651_v6 = vunpack.i.h.bf16 %v1649_v28 }
 0x4c3   : > { %1090 = vmatpush.msrb.mxu3 %v1650_v5 }
 0x4c4   : > { %v1697_v7 = vpop.eup %1696 }
 0x4c5   : > { %1091 = vmatpush.msrb.mxu3 %v1651_v6  ;;  %v930_v10 = vmul.f32 %v1697_v7, %v1689_v57  ;;  %v1699_v26 = vpop.eup %1698  ;;  %v1661_v7 = vld [vmem:[%s2254_s8] ss:$0 sm:$0xff] }
 0x4c6   : > { %1572 = vmatmul.msk.f32.vlgmr.msrb.gmra.mxu3 %vm649_vm2, %v1059_v62  ;;  %v1141_v38 = vmul.f32 32.0, %v1699_v26  ;;  %vm1145_vm3 = vweird.f32 %v1699_v26 }
 0x4c7   : > { %1561 = vst.msk [vmem:[%s2028_s29 + $0x28] sm:$0xff] %vm649_vm2, %v930_v10 }
 0x4c8   : > { %v1142_v39 = vsub.f32 1.0, %v1141_v38 }
 0x4ca   : > { %v1143_v40 = vmul.f32 %v1699_v26, %v1142_v39 }
 0x4cc   : > { %v1654_v11 = vpop.permute.xlu1 %1653 }
 0x4cd   : > { %v1655_v12 = vunpack.i.l.bf16 %v1654_v11  ;;  %v1656_v13 = vunpack.i.h.bf16 %v1654_v11 }
 0x4ce   : > { %1573 = vmatmul.msk.f32.gmra.mxu3 %vm649_vm2, %v1060_v4  ;;  %v1660_v4 = vld [vmem:[%s2253_s7] ss:$0 sm:$0xff] }
 0x4cf   : > { %960 = vmatpush.msra.mxu0 %v1655_v12 }
 0x4d1   : > { %961 = vmatpush.msra.mxu0 %v1656_v13 }
 0x4d2   : > { %1562 = vmatmul.msk.f32.vlgmr.msra.gmra.mxu0 %vm649_vm2, %v929_v2 }
 0x4d3   : > { %1120 = vmatpush.msrb.mxu0 %v548_v14 }
 0x4da   : > { %1563 = vmatmul.msk.f32.gmra.mxu0 %vm649_vm2, %v930_v10 }
 0x549   : > { %v1093_v16 = vpop.f32.mrf.mxu3 }
 0x54a   : > { %1574 = vmatmul.msk.f32.vlgmr.msrb.gmra.mxu0 %vm613_vm1, %v1093_v16 }
 0x54f   : > { %v963_v17 = vpop.f32.mrf.mxu0 }
 0x550   : > { %1564 = vmatmul.msk.f32.vlgmr.msra.gmra.mxu1 %vm613_vm1, %v963_v17 }
 0x551   : > { %v1096_v18 = vpop.f32.mrf.mxu3 }
 0x552   : > { %1575 = vmatmul.msk.f32.gmra.mxu0 %vm613_vm1, %v1096_v18 }
 0x557   : > { %v966_v19 = vpop.f32.mrf.mxu0 }
 0x558   : > { %1565 = vmatmul.msk.f32.gmra.mxu1 %vm613_vm1, %v966_v19  ;;  %v1662_v19 = vld [vmem:[%s2256_s10] ss:$0 sm:$0xff] }
 0x5c7   : > { %v1122_v22 = vpop.f32.mrf.mxu0 }
 0x5cd   : > { %v992_v25 = vpop.f32.mrf.mxu1 }
 0x5ce   : > { %v998_v27 = vadd.f32 %v992_v25, %v868_v21 }
 0x5cf   : > { %v1125_v35 = vpop.f32.mrf.mxu0 }
 0x5d0   : > { %v1128_v29 = vadd.f32 %v1122_v22, %v998_v27 }
 0x5d2   : > { %v1130_v30 = vadd.f32 %v1128_v29, %v1957_v8  ;;  %v1144_v8 = vadd.f32 %v1699_v26, %v1143_v40  ;;  %v1315_v40 = vld [vmem:[%s2257_s11 + $0x18] sm:$0xff] }
 0x5d4   : > { %v1134_v31 = vsel %vm553_vm0, %v1130_v30, 0.0  ;;  %v2109_v41 = vsel %vm1145_vm3, %v1699_v26, %v1144_v8  ;;  %v1316_v26 = vld [vmem:[%s2257_s11 + $0x20] sm:$0xff] }
 0x5d5   : > { %1135 = vadd.xlane.f32.xlu2 %v1134_v31  ;;  %v995_v33 = vpop.f32.mrf.mxu1 }
 0x5d6   : > { %v999_v34 = vadd.f32 %v995_v33, %v2068_v32  ;;  %v1319_v33 = vld [vmem:[%s2257_s11 + $0x38] sm:$0xff] }
 0x5d7   : > { %1339 = vmatpush.msrb.mxu2 %v1319_v33 }
 0x5d8   : > { %v1129_v36 = vadd.f32 %v1125_v35, %v999_v34  ;;  %v1318_v35 = vld [vmem:[%s2257_s11 + $0x30] sm:$0xff] }
 0x5d9   : > { %1340 = vmatpush.msrb.mxu2 %v1318_v35 }
 0x5da   : > { %v1131_v37 = vadd.f32 %v1129_v36, %v1963_v9 }
 0x5dc   : > { %v1137_v24 = vsel %vm553_vm0, %v1131_v37, 0.0 }
 0x5dd   : > { %1138 = vadd.xlane.f32.xlu0 %v1137_v24 }
 0x648   : > { %v1136_v42 = vpop.xlane.xlu2 %1135 }
 0x649   : > { %v1147_v32 = vmul.f32 %v2109_v41, %v1136_v42 }
 0x64b   : > { %v1149_v43 = vsub.f32 %v1130_v30, %v1147_v32  ;;  %v1314_v32 = vld [vmem:[%s2257_s11 + $0x10] sm:$0xff] }
 0x64d   : > { %v1151_v44 = vmul.f32 %v1149_v43, %v1149_v43 }
 0x64f   : > { %v1153_v9 = vsel %vm553_vm0, %v1151_v44, 0.0 }
 0x650   : > { %1154 = vadd.xlane.f32.xlu2 %v1153_v9  ;;  %v1139_v45 = vpop.xlane.xlu0 %1138  ;;  %v1313_v9 = vld [vmem:[%s2257_s11 + $0x8] sm:$0xff] }
 0x651   : > { %v1148_v46 = vmul.f32 %v2109_v41, %v1139_v45  ;;  %v1312_v45 = vld [vmem:[%s2257_s11] sm:$0xff] }
 0x653   : > { %v1150_v47 = vsub.f32 %v1131_v37, %v1148_v46  ;;  %v1317_v37 = vld [vmem:[%s2257_s11 + $0x28] sm:$0xff] }
 0x654   : > { %1341 = vmatpush.msrb.mxu2 %v1317_v37 }
 0x655   : > { %v1152_v48 = vmul.f32 %v1150_v47, %v1150_v47 }
 0x656   : > { %1342 = vmatpush.msrb.mxu2 %v1316_v26 }
 0x657   : > { %v1156_v49 = vsel %vm553_vm0, %v1152_v48, 0.0 }
 0x658   : > { %1157 = vadd.xlane.f32.xlu1 %v1156_v49  ;;  %1343 = vmatpush.msrb.mxu2 %v1315_v40 }
 0x65a   : > { %1344 = vmatpush.msrb.mxu2 %v1314_v32 }
 0x65c   : > { %1345 = vmatpush.msrb.mxu2 %v1313_v9 }
 0x65e   : > { %1346 = vmatpush.msrb.mxu2 %v1312_v45 }
 0x6c3   : > { %v1155_v54 = vpop.xlane.xlu2 %1154 }
 0x6c4   : > { %v1159_v55 = vmul.f32 %v1155_v54, %v2109_v41 }
 0x6c6   : > { %v1161_v56 = vadd.f32 1e-05, %v1159_v55 }
 0x6c8   : > { %1700 = vrsqrt.f32 %v1161_v56  ;;  %vm1169_vm5 = vweird.f32 %v1161_v56 }
 0x6cb   : > { %v1158_v57 = vpop.xlane.xlu1 %1157 }
 0x6cc   : > { %v1160_v58 = vmul.f32 %v1158_v57, %v2109_v41 }
 0x6ce   : > { %v1701_v59 = vpop.eup %1700  ;;  %v1162_v60 = vadd.f32 1e-05, %v1160_v58 }
 0x6cf   : > { %v1164_v61 = vmul.f32 %v1701_v59, %v1161_v56  ;;  %vm1170_vm4 = vweird.f32 %v1701_v59 }
 0x6d0   : > { %1702 = vrsqrt.f32 %v1162_v60  ;;  %vm1171_vm6 = vmor %vm1169_vm5, %vm1170_vm4  ;;  %vm1179_vm8 = vweird.f32 %v1162_v60  ;;  %vm1324_vm4 = vcmask 523264  }
 0x6d1   : > { %v1165_v62 = vmul.f32 %v1701_v59, %v1164_v61 }
 0x6d3   : > { %v1166_v63 = vmul.f32 0.5, %v1165_v62 }
 0x6d5   : > { %v1167_v0 = vsub.f32 1.5, %v1166_v63 }
 0x6d6   : > { %v1703_v1 = vpop.eup %1702 }
 0x6d7   : > { %v1168_v2 = vmul.f32 %v1701_v59, %v1167_v0  ;;  %v1174_v3 = vmul.f32 %v1703_v1, %v1162_v60  ;;  %vm1180_vm7 = vweird.f32 %v1703_v1 }
 0x6d8   : > { %vm1181_vm9 = vmor %vm1179_vm8, %vm1180_vm7 }
 0x6d9   : > { %v1172_v28 = vsel %vm1171_vm6, %v1701_v59, %v1168_v2  ;;  %v1175_v5 = vmul.f32 %v1703_v1, %v1174_v3 }
 0x6da   : > { %v1183_v6 = vmul.f32 %v1172_v28, %v1149_v43 }
 0x6db   : > { %v1176_v10 = vmul.f32 0.5, %v1175_v5 }
 0x6dc   : > { %v1188_v11 = vmul.f32 %v1660_v4, %v1183_v6 }
 0x6dd   : > { %v1177_v12 = vsub.f32 1.5, %v1176_v10 }
 0x6de   : > { %v2135_v13 = vadd.f32 %v1661_v7, %v1188_v11 }
 0x6df   : > { %v1178_v14 = vmul.f32 %v1703_v1, %v1177_v12 }
 0x6e0   : > { %1576 = vmatmul.msk.f32.vlgmr.msrb.gmra.mxu1 %vm553_vm0, %v2135_v13 }
 0x6e1   : > { %v1182_v15 = vsel %vm1181_vm9, %v1703_v1, %v1178_v14 }
 0x6e2   : > { %v1184_v16 = vmul.f32 %v1182_v15, %v1150_v47 }
 0x6e4   : > { %v1189_v17 = vmul.f32 %v1660_v4, %v1184_v16 }
 0x6e6   : > { %v2139_v18 = vadd.f32 %v1661_v7, %v1189_v17 }
 0x6e8   : > { %1577 = vmatmul.msk.f32.gmra.mxu1 %vm553_vm0, %v2139_v18 }
 0x75d   : > { %v1226_v20 = vpop.f32.mrf.mxu1 }
 0x75e   : > { %v2146_v21 = vadd.f32 %v1662_v19, %v1226_v20 }
 0x760   : > { %v2149_v22 = vmul.f32 0.70710677, %v2146_v21  ;;  %v1232_v37 = vmul.f32 0.5, %v2146_v21  ;;  %v1663_v21 = vld [vmem:[%s2258_s12] ss:$0 sm:$0xff] }
 0x762   : > { %v1236_v25 = vand.u32 2147483647, %v2149_v22  ;;  %vm1302_vm3 = vcmp.ge.f32.partialorder %v2149_v22, 0.0 }
 0x764   : > { %v1238_v27 = vmul.f32 0.3275911, %v1236_v25  ;;  %v1290_v51 = vsub.f32 0.0, %v1236_v25 }
 0x765   : > { %v1229_v29 = vpop.f32.mrf.mxu1 }
 0x766   : > { %v1240_v30 = vadd.f32 1.0, %v1238_v27  ;;  %v2152_v31 = vadd.f32 %v1662_v19, %v1229_v29  ;;  %v1292_v57 = vmul.f32 %v1290_v51, %v1236_v25 }
 0x768   : > { %1704 = vrcp.f32 %v1240_v30  ;;  %v2158_v34 = vmul.f32 0.70710677, %v2152_v31  ;;  %v1253_v42 = vand.u32 2147483648, %v1240_v30  ;;  %v1251_v44 = vand.u32 2147483647, %v1240_v30 }
 0x769   : > { %vm1247_vm11 = vweird.f32 %v1240_v30  ;;  %v1294_v0 = vmul.f32 1.442695, %v1292_v57 }
 0x76a   : > { %v1237_v36 = vand.u32 2147483647, %v2158_v34  ;;  %v1254_v47 = vor.u32 1.1754944e-38, %v1253_v42  ;;  %vm1252_vm13 = vcmp.eq.f32.partialorder %v1251_v44, 8.507059e+37  ;;  %vm1303_vm5 = vcmp.ge.f32.partialorder %v2158_v34, 0.0 }
 0x76b   : > { %v1233_v42 = vmul.f32 0.5, %v2152_v31 }
 0x76c   : > { %v1239_v24 = vmul.f32 0.3275911, %v1237_v36  ;;  %v1291_v3 = vsub.f32 0.0, %v1237_v36 }
 0x76e   : > { %v1705_v23 = vpop.eup %1704  ;;  %v1241_v39 = vadd.f32 1.0, %v1239_v24  ;;  %v1293_v10 = vmul.f32 %v1291_v3, %v1237_v36 }
 0x76f   : > { %v1243_v38 = vmul.f32 %v1705_v23, %v1240_v30  ;;  %vm1248_vm10 = vweird.f32 %v1705_v23 }
 0x770   : > { %1706 = vrcp.f32 %v1241_v39  ;;  %vm1249_vm12 = vmor %vm1247_vm11, %vm1248_vm10  ;;  %v1268_v56 = vand.u32 2147483648, %v1241_v39  ;;  %v1266_v59 = vand.u32 2147483647, %v1241_v39  ;;  %vm1262_vm15 = vweird.f32 %v1241_v39 }
 0x771   : > { %v1244_v8 = vsub.f32 1.0, %v1243_v38  ;;  %1708 = vpow2.f32 %v1294_v0  ;;  %v1296_v16 = vmul.f32 1.442695, %v1293_v10 }
 0x772   : > { %v1269_v63 = vor.u32 1.1754944e-38, %v1268_v56  ;;  %vm1267_vm2 = vcmp.eq.f32.partialorder %v1266_v59, 8.507059e+37 }
 0x773   : > { %v1245_v43 = vmul.f32 %v1705_v23, %v1244_v8  ;;  %1710 = vpow2.f32 %v1296_v16 }
 0x775   : > { %v1246_v46 = vadd.f32 %v1705_v23, %v1245_v43 }
 0x776   : > { %v1707_v48 = vpop.eup %1706 }
 0x777   : > { %v1250_v49 = vsel %vm1249_vm12, %v1705_v23, %v1246_v46  ;;  %v1258_v52 = vmul.f32 %v1707_v48, %v1241_v39  ;;  %vm1263_vm14 = vweird.f32 %v1707_v48  ;;  %v1709_v17 = vpop.eup %1708 }
 0x778   : > { %v1255_v50 = vsel %vm1252_vm13, %v1254_v47, %v1250_v49  ;;  %vm1264_vm1 = vmor %vm1262_vm15, %vm1263_vm14 }
 0x779   : > { %v1272_v53 = vmul.f32 1.0614054, %v1255_v50  ;;  %v1259_v54 = vsub.f32 1.0, %v1258_v52  ;;  %v1711_v23 = vpop.eup %1710 }
 0x77b   : > { %v1274_v55 = vadd.f32 -1.4531521, %v1272_v53  ;;  %v1260_v58 = vmul.f32 %v1707_v48, %v1259_v54 }
 0x77d   : > { %v1276_v60 = vmul.f32 %v1274_v55, %v1255_v50  ;;  %v1261_v61 = vadd.f32 %v1707_v48, %v1260_v58 }
 0x77f   : > { %v1278_v62 = vadd.f32 1.4214138, %v1276_v60  ;;  %v1265_v1 = vsel %vm1264_vm1, %v1707_v48, %v1261_v61 }
 0x780   : > { %v1270_v4 = vsel %vm1267_vm2, %v1269_v63, %v1265_v1 }
 0x781   : > { %v1280_v2 = vmul.f32 %v1278_v62, %v1255_v50  ;;  %v1273_v28 = vmul.f32 1.0614054, %v1270_v4 }
 0x783   : > { %v1282_v5 = vadd.f32 -0.28449672, %v1280_v2  ;;  %v1275_v6 = vadd.f32 -1.4531521, %v1273_v28 }
 0x785   : > { %v1284_v7 = vmul.f32 %v1282_v5, %v1255_v50  ;;  %v1277_v11 = vmul.f32 %v1275_v6, %v1270_v4 }
 0x787   : > { %v1286_v12 = vadd.f32 0.2548296, %v1284_v7  ;;  %v1279_v14 = vadd.f32 1.4214138, %v1277_v11 }
 0x789   : > { %v1288_v15 = vmul.f32 %v1286_v12, %v1255_v50  ;;  %v1281_v19 = vmul.f32 %v1279_v14, %v1270_v4 }
 0x78b   : > { %v1298_v20 = vmul.f32 %v1709_v17, %v1288_v15  ;;  %v1283_v25 = vadd.f32 -0.28449672, %v1281_v19 }
 0x78d   : > { %v1300_v27 = vsub.f32 1.0, %v1298_v20  ;;  %v1285_v29 = vmul.f32 %v1283_v25, %v1270_v4 }
 0x78f   : > { %v1304_v30 = vsub.f32 0.0, %v1300_v27  ;;  %v1287_v33 = vadd.f32 0.2548296, %v1285_v29 }
 0x791   : > { %v1306_v35 = vsel %vm1302_vm3, %v1300_v27, %v1304_v30  ;;  %v1289_v24 = vmul.f32 %v1287_v33, %v1270_v4 }
 0x792   : > { %v1308_v36 = vadd.f32 1.0, %v1306_v35 }
 0x793   : > { %v1299_v38 = vmul.f32 %v1711_v23, %v1289_v24 }
 0x794   : > { %v1310_v26 = vmul.f32 %v1308_v36, %v1232_v37 }
 0x795   : > { %v1301_v39 = vsub.f32 1.0, %v1299_v38 }
 0x796   : > { %1578 = vmatmul.msk.f32.vlgmr.msrb.gmra.mxu2 %vm1324_vm4, %v1310_v26 }
 0x797   : > { %v1305_v40 = vsub.f32 0.0, %v1301_v39 }
 0x799   : > { %v1307_v8 = vsel %vm1303_vm5, %v1301_v39, %v1305_v40 }
 0x79a   : > { %v1309_v32 = vadd.f32 1.0, %v1307_v8 }
 0x79c   : > { %v1311_v22 = vmul.f32 %v1309_v32, %v1233_v42 }
 0x79e   : > { %1579 = vmatmul.msk.f32.gmra.mxu2 %vm1324_vm4, %v1311_v22 }
 0x819   : > { %v1348_v43 = vpop.f32.mrf.mxu2 }
 0x81a   : > { %v1349_v44 = vadd.f32 %v1663_v21, %v1348_v43 }
 0x81c   : > { %v1354_v9 = vadd.f32 %v1349_v44, %v2135_v13 }
 0x81e   : > { %v1358_v45 = vsel %vm553_vm0, %v1354_v9, 0.0 }
 0x81f   : > { %1359 = vadd.xlane.f32.xlu2 %v1358_v45 }
 0x821   : > { %v1351_v46 = vpop.f32.mrf.mxu2 }
 0x822   : > { %v1352_v47 = vadd.f32 %v1663_v21, %v1351_v46 }
 0x824   : > { %v1355_v34 = vadd.f32 %v1352_v47, %v2139_v18 }
 0x826   : > { %v1361_v31 = vsel %vm553_vm0, %v1355_v34, 0.0 }
 0x827   : > { %1362 = vadd.xlane.f32.xlu2 %v1361_v31 }
 0x892   : > { %v1360_v48 = vpop.xlane.xlu2 %1359 }
 0x893   : > { %v1364_v49 = vmul.f32 %v1360_v48, %v2109_v41 }
 0x895   : > { %v1366_v50 = vsub.f32 %v1354_v9, %v1364_v49 }
 0x897   : > { %v1368_v51 = vmul.f32 %v1366_v50, %v1366_v50 }
 0x899   : > { %v1370_v13 = vsel %vm553_vm0, %v1368_v51, 0.0 }
 0x89a   : > { %1371 = vadd.xlane.f32.xlu2 %v1370_v13  ;;  %v1363_v52 = vpop.xlane.xlu2 %1362 }
 0x89b   : > { %v1365_v53 = vmul.f32 %v1363_v52, %v2109_v41 }
 0x89d   : > { %v1367_v54 = vsub.f32 %v1355_v34, %v1365_v53 }
 0x89f   : > { %v1369_v55 = vmul.f32 %v1367_v54, %v1367_v54 }
 0x8a1   : > { %v1373_v18 = vsel %vm553_vm0, %v1369_v55, 0.0 }
 0x8a2   : > { %1374 = vadd.xlane.f32.xlu2 %v1373_v18 }
 0x8a3   : > { %1743 = shalt.err (!%p1740_p3)
}
 0x8a4   : > { %s1788_s29 = smov 128   ;;  %s1789_s23 = smov 8   ;;  %v1664_v28 = vld [vmem:[%s2259_s13] ss:$0 sm:$0xff] }
 0x8a5   : > { %1588 = dma.vmem_to_hbm [thread:$0]  (%p1913_p5), %s1436_s18, 1024, %s1438_s19, %s1420_s28, %s1788_s29, %s1788_s29, %s1789_s23  }
 0x8a6   : > { %s2288_s5 = sshll.u32 %s1943_s20, 4 }
 0x8a7   : > { %s532_s17 = scalar_lea.vmem %s2261_s15, %s2288_s5 }
 0x90d   : > { %v1372_v56 = vpop.xlane.xlu2 %1371 }
 0x90e   : > { %v1376_v57 = vmul.f32 %v1372_v56, %v2109_v41 }
 0x910   : > { %v1378_v58 = vadd.f32 1e-05, %v1376_v57 }
 0x912   : > { %1712 = vrsqrt.f32 %v1378_v58  ;;  %vm1386_vm7 = vweird.f32 %v1378_v58 }
 0x915   : > { %v1375_v59 = vpop.xlane.xlu2 %1374 }
 0x916   : > { %v1377_v60 = vmul.f32 %v1375_v59, %v2109_v41  ;;  %v1665_v41 = vld [vmem:[%s2260_s14] ss:$0 sm:$0xff] }
 0x918   : > { %v1713_v61 = vpop.eup %1712  ;;  %v1379_v63 = vadd.f32 1e-05, %v1377_v60 }
 0x919   : > { %v1381_v62 = vmul.f32 %v1713_v61, %v1378_v58  ;;  %vm1387_vm6 = vweird.f32 %v1713_v61 }
 0x91a   : > { %1714 = vrsqrt.f32 %v1379_v63  ;;  %vm1388_vm8 = vmor %vm1386_vm7, %vm1387_vm6  ;;  %vm1396_vm10 = vweird.f32 %v1379_v63 }
 0x91b   : > { %v1382_v0 = vmul.f32 %v1713_v61, %v1381_v62 }
 0x91d   : > { %v1383_v1 = vmul.f32 0.5, %v1382_v0 }
 0x91f   : > { %v1384_v2 = vsub.f32 1.5, %v1383_v1 }
 0x920   : > { %v1715_v3 = vpop.eup %1714 }
 0x921   : > { %v1385_v4 = vmul.f32 %v1713_v61, %v1384_v2  ;;  %v1391_v5 = vmul.f32 %v1715_v3, %v1379_v63  ;;  %vm1397_vm9 = vweird.f32 %v1715_v3 }
 0x922   : > { %vm1398_vm11 = vmor %vm1396_vm10, %vm1397_vm9 }
 0x923   : > { %v1389_v6 = vsel %vm1388_vm8, %v1713_v61, %v1385_v4  ;;  %v1392_v10 = vmul.f32 %v1715_v3, %v1391_v5 }
 0x924   : > { %v1400_v7 = vmul.f32 %v1389_v6, %v1366_v50 }
 0x925   : > { %v1393_v12 = vmul.f32 0.5, %v1392_v10 }
 0x926   : > { %v1405_v11 = vmul.f32 %v1664_v28, %v1400_v7 }
 0x927   : > { %v1394_v15 = vsub.f32 1.5, %v1393_v12 }
 0x928   : > { %v1410_v14 = vadd.f32 %v1665_v41, %v1405_v11 }
 0x929   : > { %v1395_v16 = vmul.f32 %v1715_v3, %v1394_v15 }
 0x92a   : > { %1412 = vst.msk [vmem:[%s532_s17] sm:$0xff] %vm553_vm0, %v1410_v14 }
 0x92b   : > { %v1399_v17 = vsel %vm1398_vm11, %v1715_v3, %v1395_v16 }
 0x92c   : > { %v1401_v19 = vmul.f32 %v1399_v17, %v1367_v54 }
 0x92e   : > { %v1406_v20 = vmul.f32 %v1664_v28, %v1401_v19 }
 0x930   : > { %v1411_v25 = vadd.f32 %v1665_v41, %v1406_v20 }
 0x932   : > { %1413 = vst.msk [vmem:[%s532_s17 + $0x8] sm:$0xff] %vm553_vm0, %v1411_v25 }
 0x933 PF: > { %p1594_p4 = scmp.ge.s32.totalorder %s1778_s24, 2  ;;  %s1460_s18 = sand.u32 1, %s1766_s21  }
 0x934   : > { %s1461_s19 = scalar_lea.sflag [#allocation3], %s1460_s18 }
 0x935   : > { %p1591_p5 = pnand %p1594_p4, %p1917_p6 }
 0x937   : > { %p1592_p7 = pneg %p1591_p5 }
 0x939   : > { %1761 = dma.done.wait (%p1592_p7), %s1461_s19, 1024  }
 0x93a   : > { %1763 = vsyncadd (%p1592_p7), %s1461_s19, 4294966272  ;;  %s2290_s24 = sld [smem:[#allocation6_spill]]  ;;  %s2293_s21 = smov %s1770_s22 }
 0x93b   : > { %s2291_s26 = sld [smem:[#allocation5_spill]] }
 0x93c   : > { %s2292_s23 = sld [smem:[#allocation7_spill]] }
 0x940   : > { %p27_p8 = scmp.ge.s32.totalorder %s2290_s24, 4  }
 0x941   : > { %s2294_s22 = smov %s2291_s26 }
 0x942   :  { %29 = sbr.rel (!%p27_p8) target bundleno = 10 (0xa), region = 130 }
 0x947   :  { %1467 = vsyncpa [#allocation3], 1 }
 0x948   :  { %1469 = vsyncpa [#allocation3 + $0x1], 1 }

// kernel: run.11
= control target key start
LH: loop header
LB: loop body
LE: loop exit
PB: predicated region body
PF: predicated region fallthrough
CT: control target
= control target key end

     0   :  { %vm40_vm0 = vcmask 1043456   ;;  %vm30_vm1 = vcmask 31744   ;;  %vm80_vm2 = vcmask 1044480   ;;  %vm70_vm3 = vcmask 171008   ;;  %s220_s4 = inlined_call_operand.vmem [shape: f32[4,32], index: 4, kind: input, shape index: {}]   ;;  %s221_s1 = inlined_call_operand.vmem [shape: f32[24,4], index: 1, kind: input, shape index: {}]   ;;  %s222_s3 = inlined_call_operand.vmem [shape: f32[21,32], index: 3, kind: input, shape index: {}]   ;;  %s223_s0 = inlined_call_operand.vmem [shape: f32[24,21], index: 0, kind: input, shape index: {}]   ;;  %s224_s2 = inlined_call_operand.vmem [shape: f32[24,32], index: 2, kind: input, shape index: {}]   ;;  %s225_s5 = inlined_call_operand.vmem [shape: f32[24,32], index: 5, kind: output, shape index: {}]  }
   0x1   :  { %v29_v0 = vld [vmem:[%s220_s4] sm:$0xf]  ;;  %v27_v2 = vld [vmem:[%s221_s1 + $0x8] sm:$0xff]  ;;  %v25_v3 = vld [vmem:[%s222_s3 + $0x10] sm:$0x1f]  ;;  %vm116_vm4 = vcmask 261120  }
   0x2   :  { %v26_v1 = vld [vmem:[%s221_s1] sm:$0xff]  ;;  %124 = vmatpush.msk.msra.mxu0 %vm40_vm0, %v29_v0  ;;  %132 = vmatpush.msk.msra.mxu3 %vm40_vm0, %v29_v0  ;;  %v24_v4 = vld [vmem:[%s222_s3 + $0x8] sm:$0xff]  ;;  %v22_v7 = vld [vmem:[%s223_s0 + $0x10] sm:$0xff] }
   0x3   :  { %125 = vmatmul.msk.f32.vlgmr.msra.gmra.mxu0 %vm30_vm1, %v26_v1  ;;  %126 = vmatmul.msk.f32.vlgmr.msra.gmra.mxu3 %vm30_vm1, %v27_v2  ;;  %v23_v5 = vld [vmem:[%s222_s3] sm:$0xff]  ;;  %v21_v6 = vld [vmem:[%s223_s0 + $0x8] sm:$0xff]  ;;  %v28_v8 = vld [vmem:[%s221_s1 + $0x10] sm:$0xff] }
   0x4   :  { %133 = vmatpush.msk.msra.mxu1 %vm80_vm2, %v25_v3  ;;  %128 = vmatpush.msk.msrb.mxu0 %vm80_vm2, %v25_v3  ;;  %v20_v9 = vld [vmem:[%s223_s0] sm:$0xff]  ;;  %v111_v13 = vld [vmem:[%s224_s2 + $0x8] sm:$0xff]  ;;  %v112_v22 = vld [vmem:[%s224_s2 + $0x10] sm:$0xff] }
   0x5   :  { %134 = vmatpush.msk.msra.mxu2 %vm80_vm2, %v25_v3  ;;  %v110_v16 = vld [vmem:[%s224_s2] sm:$0xff] }
   0x6   :  { %135 = vmatpush.msra.mxu1 %v24_v4  ;;  %98 = vmatpush.msrb.mxu0 %v24_v4 }
   0x7   :  { %136 = vmatpush.msra.mxu2 %v24_v4 }
   0x8   :  { %137 = vmatpush.msra.mxu1 %v23_v5  ;;  %99 = vmatpush.msrb.mxu0 %v23_v5 }
   0x9   :  { %130 = vmatmul.msk.f32.vlgmr.msra.gmra.mxu1 %vm70_vm3, %v21_v6  ;;  %138 = vmatpush.msra.mxu2 %v23_v5 }
   0xa   :  { %131 = vmatmul.msk.f32.vlgmr.msra.gmra.mxu2 %vm70_vm3, %v22_v7 }
   0xb   :  { %127 = vmatmul.msk.f32.gmra.mxu3 %vm30_vm1, %v28_v8  ;;  %129 = vmatmul.msk.f32.vlgmr.msrb.gmra.mxu0 %vm70_vm3, %v20_v9 }
  0x80   :  { %v61_v10 = vpop.f32.mrf.mxu0 }
  0x86   :  { %v64_v11 = vpop.f32.mrf.mxu3  ;;  %v104_v12 = vpop.f32.mrf.mxu1 }
  0x87   :  { %v105_v14 = vadd.f32 %v104_v12, %v64_v11 }
  0x88   :  { %v101_v15 = vpop.f32.mrf.mxu0 }
  0x89   :  { %v114_v17 = vadd.f32 %v111_v13, %v105_v14  ;;  %v102_v18 = vadd.f32 %v101_v15, %v61_v10 }
  0x8b   :  { %118 = vst.msk [vmem:[%s225_s5 + $0x8] sm:$0xff] %vm116_vm4, %v114_v17  ;;  %v113_v19 = vadd.f32 %v110_v16, %v102_v18 }
  0x8d   :  { %117 = vst.msk [vmem:[%s225_s5] sm:$0xff] %vm116_vm4, %v113_v19  ;;  %v107_v20 = vpop.f32.mrf.mxu2 }
  0x8e   :  { %v67_v21 = vpop.f32.mrf.mxu3 }
  0x8f   :  { %v108_v23 = vadd.f32 %v107_v20, %v67_v21 }
  0x91   :  { %v115_v24 = vadd.f32 %v112_v22, %v108_v23 }
  0x93   :  { %119 = vst.msk [vmem:[%s225_s5 + $0x10] sm:$0xff] %vm116_vm4, %v115_v24 }

// kernel: run.13
= control target key start
LH: loop header
LB: loop body
LE: loop exit
PB: predicated region body
PF: predicated region fallthrough
CT: control target
= control target key end

     0   :  { %vm25_vm0 = vcmask 261120   ;;  %v185_v6 = vmov 32.0   ;;  %vm154_vm11 = vcmask 56320   ;;  %s274_s0 = inlined_call_operand.vmem [shape: f32[24,32], index: 0, kind: input, shape index: {}]   ;;  %s275_s1 = inlined_call_operand.vmem [shape: f32[1,32], index: 1, kind: input, shape index: {}]   ;;  %s276_s2 = inlined_call_operand.vmem [shape: f32[1,32], index: 2, kind: input, shape index: {}]   ;;  %s277_s4 = inlined_call_operand.vmem [shape: f32[1,7], index: 4, kind: input, shape index: {}]   ;;  %s278_s3 = inlined_call_operand.vmem [shape: f32[32,7], index: 3, kind: input, shape index: {}]   ;;  %s279_s5 = inlined_call_operand.vmem [shape: f32[24,7], index: 5, kind: output, shape index: {}]  }
   0x1   :  { %v22_v0 = vld [vmem:[%s274_s0 + $0x10] sm:$0xff]  ;;  %v21_v1 = vld [vmem:[%s274_s0 + $0x8] sm:$0xff]  ;;  %v20_v4 = vld [vmem:[%s274_s0] sm:$0xff]  ;;  %177 = vrcp.f32 %v185_v6 }
   0x2   :  { %v32_v2 = vsel %vm25_vm0, %v22_v0, 0.0  ;;  %v29_v3 = vsel %vm25_vm0, %v21_v1, 0.0  ;;  %v26_v5 = vsel %vm25_vm0, %v20_v4, 0.0  ;;  %v114_v28 = vld [vmem:[%s278_s3 + $0x18] sm:$0xff]  ;;  %v113_v29 = vld [vmem:[%s278_s3 + $0x10] sm:$0xff]  ;;  %v112_v30 = vld [vmem:[%s278_s3 + $0x8] sm:$0xff] }
   0x3   :  { %33 = vadd.xlane.f32.xlu0 %v32_v2  ;;  %30 = vadd.xlane.f32.xlu1 %v29_v3  ;;  %v111_v31 = vld [vmem:[%s278_s3] sm:$0xff] }
   0x4   :  { %166 = vmatpush.msra.mxu2 %v114_v28  ;;  %140 = vmatpush.msra.mxu0 %v114_v28  ;;  %v174_v49 = vld [vmem:[%s275_s1] ss:$0 sm:$0xff] }
   0x5   :  { %165 = vmatpush.msra.mxu1 %v114_v28  ;;  %v175_v53 = vld [vmem:[%s276_s2] ss:$0 sm:$0xff] }
   0x6   :  { %168 = vmatpush.msra.mxu2 %v113_v29  ;;  %141 = vmatpush.msra.mxu0 %v113_v29 }
   0x7   :  { %v178_v7 = vpop.eup %177  ;;  %167 = vmatpush.msra.mxu1 %v113_v29 }
   0x8   :  { %v36_v8 = vmul.f32 32.0, %v178_v7  ;;  %vm40_vm1 = vweird.f32 %v178_v7  ;;  %170 = vmatpush.msra.mxu2 %v112_v30  ;;  %142 = vmatpush.msra.mxu0 %v112_v30 }
   0x9   :  { %169 = vmatpush.msra.mxu1 %v112_v30 }
   0xa   :  { %v37_v9 = vsub.f32 1.0, %v36_v8  ;;  %172 = vmatpush.msra.mxu2 %v111_v31  ;;  %143 = vmatpush.msra.mxu0 %v111_v31 }
   0xb   :  { %27 = vadd.xlane.f32.xlu0 %v26_v5  ;;  %171 = vmatpush.msra.mxu1 %v111_v31 }
   0xc   :  { %v38_v10 = vmul.f32 %v178_v7, %v37_v9  ;;  %v176_v9 = vld [vmem:[%s277_s4] ss:$0 sm:$0xff] }
   0xe   :  { %v39_v11 = vadd.f32 %v178_v7, %v38_v10 }
  0x10   :  { %v41_v12 = vsel %vm40_vm1, %v178_v7, %v39_v11 }
  0x76   :  { %v34_v13 = vpop.xlane.xlu0 %33  ;;  %v31_v17 = vpop.xlane.xlu1 %30 }
  0x77   :  { %v44_v14 = vmul.f32 %v41_v12, %v34_v13  ;;  %v43_v21 = vmul.f32 %v41_v12, %v31_v17 }
  0x79   :  { %v47_v15 = vsub.f32 %v22_v0, %v44_v14  ;;  %v231_v23 = vsub.f32 %v21_v1, %v43_v21 }
  0x7b   :  { %v50_v16 = vmul.f32 %v47_v15, %v47_v15  ;;  %v49_v26 = vmul.f32 %v231_v23, %v231_v23 }
  0x7d   :  { %v57_v18 = vsel %vm25_vm0, %v50_v16, 0.0  ;;  %v54_v27 = vsel %vm25_vm0, %v49_v26, 0.0 }
  0x7e   :  { %58 = vadd.xlane.f32.xlu1 %v57_v18  ;;  %v28_v19 = vpop.xlane.xlu0 %27 }
  0x7f   :  { %v42_v20 = vmul.f32 %v41_v12, %v28_v19 }
  0x81   :  { %v229_v22 = vsub.f32 %v20_v4, %v42_v20 }
  0x83   :  { %v48_v24 = vmul.f32 %v229_v22, %v229_v22 }
  0x85   :  { %v51_v25 = vsel %vm25_vm0, %v48_v24, 0.0 }
  0x86   :  { %52 = vadd.xlane.f32.xlu2 %v51_v25 }
  0x8e   :  { %55 = vadd.xlane.f32.xlu2 %v54_v27 }
  0xf1   :  { %v59_v32 = vpop.xlane.xlu1 %58 }
  0xf2   :  { %v62_v33 = vmul.f32 %v59_v32, %v41_v12 }
  0xf4   :  { %v65_v34 = vadd.f32 1e-05, %v62_v33 }
  0xf6   :  { %179 = vrsqrt.f32 %v65_v34  ;;  %vm92_vm3 = vweird.f32 %v65_v34 }
  0xf9   :  { %v53_v35 = vpop.xlane.xlu2 %52 }
  0xfa   :  { %v60_v36 = vmul.f32 %v53_v35, %v41_v12 }
  0xfc   :  { %v180_v37 = vpop.eup %179  ;;  %v63_v38 = vadd.f32 1e-05, %v60_v36 }
  0xfd   :  { %v87_v39 = vmul.f32 %v180_v37, %v65_v34  ;;  %vm93_vm2 = vweird.f32 %v180_v37 }
  0xfe   :  { %181 = vrsqrt.f32 %v63_v38  ;;  %vm94_vm4 = vmor %vm92_vm3, %vm93_vm2  ;;  %vm72_vm6 = vweird.f32 %v63_v38 }
  0xff   :  { %v88_v40 = vmul.f32 %v180_v37, %v87_v39 }
 0x101   :  { %v89_v41 = vmul.f32 0.5, %v88_v40  ;;  %v56_v42 = vpop.xlane.xlu2 %55 }
 0x102   :  { %v61_v43 = vmul.f32 %v56_v42, %v41_v12 }
 0x103   :  { %v90_v44 = vsub.f32 1.5, %v89_v41 }
 0x104   :  { %v182_v45 = vpop.eup %181  ;;  %v64_v46 = vadd.f32 1e-05, %v61_v43 }
 0x105   :  { %v91_v47 = vmul.f32 %v180_v37, %v90_v44  ;;  %v67_v48 = vmul.f32 %v182_v45, %v63_v38  ;;  %vm73_vm5 = vweird.f32 %v182_v45 }
 0x106   :  { %183 = vrsqrt.f32 %v64_v46  ;;  %vm74_vm7 = vmor %vm72_vm6, %vm73_vm5  ;;  %vm82_vm9 = vweird.f32 %v64_v46 }
 0x107   :  { %v95_v50 = vsel %vm94_vm4, %v180_v37, %v91_v47  ;;  %v68_v51 = vmul.f32 %v182_v45, %v67_v48 }
 0x108   :  { %v98_v52 = vmul.f32 %v95_v50, %v47_v15 }
 0x109   :  { %v69_v54 = vmul.f32 0.5, %v68_v51 }
 0x10a   :  { %v104_v55 = vmul.f32 %v174_v49, %v98_v52 }
 0x10b   :  { %v70_v56 = vsub.f32 1.5, %v69_v54 }
 0x10c   :  { %v184_v57 = vpop.eup %183  ;;  %v110_v58 = vadd.f32 %v175_v53, %v104_v55 }
 0x10d   :  { %v71_v59 = vmul.f32 %v182_v45, %v70_v56  ;;  %v77_v60 = vmul.f32 %v184_v57, %v64_v46  ;;  %vm83_vm8 = vweird.f32 %v184_v57 }
 0x10e   :  { %164 = vmatmul.msk.f32.vlgmr.msra.gmra.mxu2 %vm25_vm0, %v110_v58  ;;  %vm84_vm10 = vmor %vm82_vm9, %vm83_vm8 }
 0x10f   :  { %v75_v61 = vsel %vm74_vm7, %v182_v45, %v71_v59  ;;  %v78_v62 = vmul.f32 %v184_v57, %v77_v60 }
 0x110   :  { %v96_v63 = vmul.f32 %v75_v61, %v229_v22 }
 0x111   :  { %v79_v0 = vmul.f32 0.5, %v78_v62 }
 0x112   :  { %v102_v1 = vmul.f32 %v174_v49, %v96_v63 }
 0x113   :  { %v80_v2 = vsub.f32 1.5, %v79_v0 }
 0x114   :  { %v108_v3 = vadd.f32 %v175_v53, %v102_v1 }
 0x115   :  { %v81_v4 = vmul.f32 %v184_v57, %v80_v2 }
 0x116   :  { %162 = vmatmul.msk.f32.vlgmr.msra.gmra.mxu0 %vm25_vm0, %v108_v3 }
 0x117   :  { %v85_v5 = vsel %vm84_vm10, %v184_v57, %v81_v4 }
 0x118   :  { %v97_v6 = vmul.f32 %v85_v5, %v231_v23 }
 0x11a   :  { %v103_v7 = vmul.f32 %v174_v49, %v97_v6 }
 0x11c   :  { %v109_v8 = vadd.f32 %v175_v53, %v103_v7 }
 0x11e   :  { %163 = vmatmul.msk.f32.vlgmr.msra.gmra.mxu1 %vm25_vm0, %v109_v8 }
 0x191   :  { %v151_v10 = vpop.f32.mrf.mxu2 }
 0x192   :  { %v152_v11 = vadd.f32 %v176_v9, %v151_v10 }
 0x193   :  { %v145_v12 = vpop.f32.mrf.mxu0 }
 0x194   :  { %157 = vst.msk [vmem:[%s279_s5 + $0x10] sm:$0xff] %vm154_vm11, %v152_v11  ;;  %v146_v13 = vadd.f32 %v176_v9, %v145_v12 }
 0x196   :  { %155 = vst.msk [vmem:[%s279_s5] sm:$0xff] %vm154_vm11, %v146_v13 }
 0x19b   :  { %v148_v14 = vpop.f32.mrf.mxu1 }
 0x19c   :  { %v149_v15 = vadd.f32 %v176_v9, %v148_v14 }
 0x19e   :  { %156 = vst.msk [vmem:[%s279_s5 + $0x8] sm:$0xff] %vm154_vm11, %v149_v15 }

// kernel: run.12
= control target key start
LH: loop header
LB: loop body
LE: loop exit
PB: predicated region body
PF: predicated region fallthrough
CT: control target
= control target key end

     0   :  { %s2925_s27 = smov 0   ;;  %s3444_s0 = inlined_call_operand.vmem [shape: f32[2,12,32], index: 0, kind: input, shape index: {}]   ;;  %s3445_s1 = inlined_call_operand.vmem [shape: f32[2,16,32], index: 1, kind: input, shape index: {}]   ;;  %s3446_s2 = inlined_call_operand.vmem [shape: f32[32,32], index: 2, kind: input, shape index: {}]   ;;  %s3447_s3 = inlined_call_operand.vmem [shape: f32[1,32], index: 3, kind: input, shape index: {}]   ;;  %s3448_s4 = inlined_call_operand.vmem [shape: f32[32,64], index: 4, kind: input, shape index: {}]   ;;  %s3449_s5 = inlined_call_operand.vmem [shape: f32[1,64], index: 5, kind: input, shape index: {}]   ;;  %s3450_s6 = inlined_call_operand.vmem [shape: f32[32,32], index: 6, kind: input, shape index: {}]   ;;  %s3451_s7 = inlined_call_operand.vmem [shape: f32[1,32], index: 7, kind: input, shape index: {}]   ;;  %s3452_s8 = inlined_call_operand.vmem [shape: f32[32,32], index: 8, kind: input, shape index: {}]   ;;  %s3453_s9 = inlined_call_operand.vmem [shape: f32[1,32], index: 9, kind: input, shape index: {}]   ;;  %s3454_s10 = inlined_call_operand.vmem [shape: f32[32,64], index: 10, kind: input, shape index: {}]   ;;  %s3455_s11 = inlined_call_operand.vmem [shape: f32[1,64], index: 11, kind: input, shape index: {}]   ;;  %s3456_s12 = inlined_call_operand.vmem [shape: f32[32,32], index: 12, kind: input, shape index: {}]   ;;  %s3457_s13 = inlined_call_operand.vmem [shape: f32[1,32], index: 13, kind: input, shape index: {}]   ;;  %s3458_s14 = inlined_call_operand.vmem [shape: f32[1,32], index: 14, kind: input, shape index: {}]   ;;  %s3459_s15 = inlined_call_operand.vmem [shape: f32[1,32], index: 15, kind: input, shape index: {}]   ;;  %s3460_s16 = inlined_call_operand.vmem [shape: f32[1,32], index: 16, kind: input, shape index: {}]   ;;  %s3461_s17 = inlined_call_operand.vmem [shape: f32[1,32], index: 17, kind: input, shape index: {}]   ;;  %s3462_s18 = inlined_call_operand.vmem [shape: f32[32,64], index: 18, kind: input, shape index: {}]   ;;  %s3463_s19 = inlined_call_operand.vmem [shape: f32[1,64], index: 19, kind: input, shape index: {}]   ;;  %s3464_s20 = inlined_call_operand.vmem [shape: f32[64,32], index: 20, kind: input, shape index: {}]   ;;  %s3465_s21 = inlined_call_operand.vmem [shape: f32[1,32], index: 21, kind: input, shape index: {}]   ;;  %s3466_s22 = inlined_call_operand.vmem [shape: f32[1,32], index: 22, kind: input, shape index: {}]   ;;  %s3467_s23 = inlined_call_operand.vmem [shape: f32[1,32], index: 23, kind: input, shape index: {}]   ;;  %s3468_s24 = inlined_call_operand.vmem [shape: f32[2,12,32], index: 24, kind: output, shape index: {0}]   ;;  %s3469_s25 = inlined_call_operand.vmem [shape: f32[2,4,12,12], index: 25, kind: output, shape index: {1}]   ;;  %s3470_s26 = inlined_call_operand.vmem [shape: f32[2,4,12,16], index: 26, kind: output, shape index: {2}]  }
   0x1   :  { %3490 = sst [smem:[#allocation2_spill]] %s3444_s0 }
   0x2   :  { %3491 = sst [smem:[#allocation3_spill]] %s3445_s1 }
   0x3   :  { %3492 = sst [smem:[#allocation4_spill]] %s3446_s2 }
   0x4   :  { %3493 = sst [smem:[#allocation5_spill]] %s3447_s3 }
   0x5   :  { %3494 = sst [smem:[#allocation6_spill]] %s3448_s4 }
   0x6   :  { %3495 = sst [smem:[#allocation7_spill]] %s3449_s5 }
   0x7   :  { %3496 = sst [smem:[#allocation8_spill]] %s3450_s6 }
   0x8   :  { %3497 = sst [smem:[#allocation9_spill]] %s3451_s7 }
   0x9   :  { %3498 = sst [smem:[#allocation10_spill]] %s3452_s8 }
   0xa   :  { %3499 = sst [smem:[#allocation11_spill]] %s3453_s9 }
   0xb   :  { %3500 = sst [smem:[#allocation12_spill]] %s3454_s10 }
   0xc   :  { %3501 = sst [smem:[#allocation13_spill]] %s3469_s25 }
   0xd LB: > { %s2518_s3 = sadd.s32 4294967295, %s2780_s27   ;;  %p2522_p0 = scmp.ge.s32.totalorder %s2780_s27, 1  ;;  %s2780_s27 = sphi %s2925_s27, %s37_s27  }
   0xe   : > { %p727_p1 = scmp.lt.s32.totalorder %s2780_s27, 3 }
  0x10   : > { %p728_p2 = pnand %p2522_p0, %p727_p1 }
  0x11   : > { %s3502_s8 = sld [smem:[#allocation4_spill]] (!%p728_p2)  ;;  %p812_p3 = scmp.lt.s32.totalorder (!%p728_p2), %s2518_s3, 1 }
  0x12   : > { %731 = sbr.rel (%p728_p2) target bundleno = 4077 (0xfed), region = 116  ;;  %s3503_s1 = sld [smem:[#allocation6_spill]] (!%p728_p2) }
  0x13   : > { %s3504_s4 = sld [smem:[#allocation2_spill]] (!%p728_p2)  ;;  %s3484_s2 = smov (!%p728_p2), 96  }
  0x14   : > { %s3506_s30 = sld [smem:[#allocation7_spill]] (!%p728_p2)  ;;  %s3476_s10 = smov (!%p728_p2), 88  }
  0x15   : > { %s3477_s6 = smov (!%p728_p2), 104   ;;  %s3482_s7 = smov (!%p728_p2), 112  }
  0x16   : > { %s3507_s0 = sld [smem:[#allocation8_spill]] (!%p728_p2)  ;;  %s3480_s28 = smov (!%p728_p2), 80  }
  0x17   : > { %v844_v0 = vld [vmem:[%s3502_s8 + $0x18] sm:$0xff]  ;;  %v843_v1 = vld [vmem:[%s3502_s8 + $0x10] sm:$0xff]  ;;  %v842_v2 = vld [vmem:[%s3502_s8 + $0x8] sm:$0xff]  ;;  %s3523_s3 = smov (!%p812_p3, %s2518_s3), 1  ;;  %vm859_vm0 = vcmask 261120   ;;  %vm919_vm1 = vcmask 64512  }
  0x18   : > { %878 = vmatpush.msra.mxu0 %v844_v0  ;;  %2632 = vmatpush.msra.mxu1 %v844_v0  ;;  %v841_v3 = vld [vmem:[%s3502_s8] sm:$0xff]  ;;  %s2948_s5 = sshll.u32 %s3523_s3, 4  ;;  %v849_v4 = vld [vmem:[%s3503_s1 + $0x18] sm:$0xff]  ;;  %v848_v7 = vld [vmem:[%s3503_s1 + $0x10] sm:$0xff]  ;;  %vm955_vm2 = vcmask 97280   ;;  %vm959_vm3 = vcmask 93184  }
  0x19   : > { %s816_s29 = scalar_lea.vmem %s3504_s4, %s2948_s5  ;;  %v847_v8 = vld [vmem:[%s3503_s1 + $0x8] sm:$0xff]  ;;  %v846_v9 = vld [vmem:[%s3503_s1] sm:$0xff]  ;;  %s3505_s4 = sld [smem:[#allocation5_spill]]  ;;  %vm992_vm4 = vcmask 1043456   ;;  %vm1449_vm5 = vcmask 257024   ;;  %vm1626_vm13 = vcmask 130048  }
  0x1a   : > { %879 = vmatpush.msra.mxu0 %v843_v1  ;;  %2633 = vmatpush.msra.mxu1 %v843_v1  ;;  %v2957_v5 = vld [vmem:[%s816_s29] sm:$0xff]  ;;  %v2959_v6 = vld [vmem:[%s816_s29 + $0x8] sm:$0xf]  ;;  %s3485_s29 = smov 120   ;;  %s3481_s9 = sshll.u32 %s3523_s3, 6  ;;  %vm1630_vm14 = vcmask 125952  }
  0x1b   : > { %v2675_v16 = vld [vmem:[%s3506_s30] ss:$0 sm:$0xff]  ;;  %s3508_s25 = sld [smem:[#allocation13_spill]] }
  0x1c   : > { %880 = vmatpush.msra.mxu0 %v842_v2  ;;  %2634 = vmatpush.msra.mxu1 %v842_v2  ;;  %v852_v56 = vld [vmem:[%s3507_s0 + $0x8] sm:$0xff]  ;;  %v851_v62 = vld [vmem:[%s3507_s0] sm:$0xff]  ;;  %s3509_s30 = sld [smem:[#allocation9_spill]] }
  0x1e   : > { %881 = vmatpush.msra.mxu0 %v841_v3  ;;  %2635 = vmatpush.msra.mxu1 %v841_v3 }
  0x1f   : > { %2533 = vmatmul.msk.f32.vlgmr.msra.gmra.mxu0 %vm859_vm0, %v2957_v5  ;;  %2534 = vmatmul.msk.f32.vlgmr.msra.gmra.mxu1 %vm859_vm0, %v2959_v6  ;;  %v2674_v10 = vld [vmem:[%s3505_s4] ss:$0 sm:$0xff] }
  0x20   : > { %904 = vmatpush.msrb.mxu1 %v849_v4 }
  0x21   : > { %s3056_s4 = scalar_lea.vmem %s3508_s25, %s3481_s9  ;;  %s3512_s25 = sld [smem:[#allocation10_spill]] }
  0x22   : > { %905 = vmatpush.msrb.mxu1 %v848_v7  ;;  %s3514_s9 = sld [smem:[#allocation11_spill]] }
  0x24   : > { %906 = vmatpush.msrb.mxu1 %v847_v8 }
  0x26   : > { %907 = vmatpush.msrb.mxu1 %v846_v9 }
  0x27   : > { %2535 = vmatmul.msk.f32.vlgmr.msrb.gmra.mxu1 %vm859_vm0, %v2957_v5 }
  0x2f   : > { %2536 = vmatmul.msk.f32.gmra.mxu1 %vm859_vm0, %v2959_v6 }
  0x9c   : > { %v883_v11 = vpop.f32.mrf.mxu0  ;;  %v886_v12 = vpop.f32.mrf.mxu1 }
  0x9d   : > { %v2981_v13 = vadd.f32 %v2674_v10, %v883_v11  ;;  %v2985_v15 = vadd.f32 %v2674_v10, %v886_v12 }
  0x9f   : > { %1049 = vrot.lane.b32.xlu1 %v2981_v13, %s3485_s29 }
  0xa4   : > { %v909_v14 = vpop.f32.mrf.mxu1 }
  0xa5   : > { %v2998_v19 = vadd.f32 %v2675_v16, %v909_v14 }
  0xa7   : > { %1051 = vrot.lane.b32.xlu1 %v2985_v15, %s3485_s29 }
  0xac   : > { %v912_v17 = vpop.f32.mrf.mxu1 }
  0xad   : > { %v2992_v18 = vadd.f32 %v2675_v16, %v912_v17 }
  0xaf   : > { %1055 = vrot.lane.b32.xlu0 %v2992_v18, %s3485_s29  ;;  %2537 = vmatpush.xpose.msk.msra.mxu2 %vm919_vm1, %v2992_v18 }
  0xb3   : > { %2538 = vmatpush.xpose.msk.msra.mxu2 %vm919_vm1, %v2998_v19 }
  0xb6   : > { %2539 = vmatmul.msk.f32.vlgmr.msra.gmra.mxu2 %vm919_vm1, %v2981_v13 }
  0xb7   : > { %1053 = vrot.lane.b32.xlu0 %v2998_v19, %s3485_s29 }
  0xbe   : > { %2540 = vmatmul.msk.f32.gmra.mxu2 %vm919_vm1, %v2985_v15 }
 0x111   : > { %v1050_v22 = vpop.permute.xlu1 %1049 }
 0x119   : > { %v1052_v23 = vpop.permute.xlu1 %1051 }
 0x121   : > { %v1056_v20 = vpop.permute.xlu0 %1055 }
 0x122   : > { %2546 = vmatpush.xpose.msk.msrb.mxu0 %vm919_vm1, %v1056_v20 }
 0x129   : > { %v1054_v21 = vpop.permute.xlu0 %1053 }
 0x12a   : > { %2547 = vmatpush.xpose.msk.msrb.mxu0 %vm919_vm1, %v1054_v21 }
 0x12d   : > { %2548 = vmatmul.msk.f32.vlgmr.msrb.gmra.mxu0 %vm919_vm1, %v1050_v22 }
 0x135   : > { %2549 = vmatmul.msk.f32.gmra.mxu0 %vm919_vm1, %v1052_v23 }
 0x139   : > { %v949_v24 = vpop.f32.mrf.mxu2 }
 0x13a   : > { %v956_v25 = vsel %vm955_vm2, %v949_v24, -inf }
 0x13b   : > { %957 = vmax.xlane.f32.xlu2 %v956_v25  ;;  %v3092_v25 = vld [vmem:[%s3509_s30] ss:$0 sm:$0xff]  ;;  %s3518_s30 = sshll.u32 %s3523_s3, 6 }
 0x13c   : > { %s3250_s8 = scalar_lea.vmem %s3470_s26, %s3518_s30  ;;  %s3521_s30 = smov 72  }
 0x141   : > { %v952_v26 = vpop.f32.mrf.mxu2 }
 0x142   : > { %v960_v27 = vsel %vm959_vm3, %v952_v26, -inf }
 0x143   : > { %961 = vmax.xlane.f32.xlu0 %v960_v27 }
 0x157   : > { %981 = vrot.lane.b32.xlu0 %v2998_v19, %s3484_s2 }
 0x1aa   : > { %v1082_v28 = vpop.f32.mrf.mxu0 }
 0x1ab   : > { %v1088_v29 = vsel %vm955_vm2, %v1082_v28, -inf }
 0x1ac   : > { %1089 = vmax.xlane.f32.xlu2 %v1088_v29 }
 0x1ae   : > { %v958_v32 = vpop.xlane.xlu2 %957 }
 0x1af   : > { %v963_v33 = vsub.f32 %v949_v24, %v958_v32 }
 0x1b1   : > { %v965_v34 = vmul.f32 1.442695, %v963_v33 }
 0x1b2   : > { %v1085_v30 = vpop.f32.mrf.mxu0 }
 0x1b3   : > { %v1091_v31 = vsel %vm959_vm3, %v1085_v30, -inf  ;;  %2688 = vpow2.f32 %v965_v34 }
 0x1b4   : > { %1092 = vmax.xlane.f32.xlu1 %v1091_v31 }
 0x1b6   : > { %v962_v37 = vpop.xlane.xlu0 %961 }
 0x1b7   : > { %v964_v40 = vsub.f32 %v952_v26, %v962_v37 }
 0x1b9   : > { %v2689_v35 = vpop.eup %2688  ;;  %v967_v42 = vmul.f32 1.442695, %v964_v40 }
 0x1ba   : > { %v969_v36 = vsel %vm955_vm2, %v2689_v35, 0.0 }
 0x1c4   : > { %983 = vrot.lane.b32.xlu2 %v2992_v18, %s3484_s2 }
 0x1c9   : > { %v982_v46 = vpop.permute.xlu0 %981 }
 0x1cd   : > { %1115 = vrot.lane.b32.xlu1 %v2992_v18, %s3476_s10 }
 0x1d5   : > { %1113 = vrot.lane.b32.xlu1 %v2998_v19, %s3476_s10  ;;  %s3479_s10 = smov 72  }
 0x1dd   : > { %1317 = vrot.lane.b32.xlu1 %v2992_v18, %s3477_s6 }
 0x1e5   : > { %1315 = vrot.lane.b32.xlu1 %v2998_v19, %s3477_s6 }
 0x1ed   : > { %1311 = vrot.lane.b32.xlu1 %v2981_v13, %s3477_s6  ;;  %970 = vadd.xlane.f32.xlu2 %v969_v36 }
 0x1f5   : > { %1184 = vrot.lane.b32.xlu1 %v2998_v19, %s3482_s7 }
 0x1fd   : > { %1182 = vrot.lane.b32.xlu1 %v2985_v15, %s3482_s7 }
 0x21f   : > { %v1090_v38 = vpop.xlane.xlu2 %1089 }
 0x220   : > { %v1094_v39 = vsub.f32 %v1082_v28, %v1090_v38 }
 0x222   : > { %v1096_v41 = vmul.f32 1.442695, %v1094_v39 }
 0x224   : > { %2690 = vpow2.f32 %v1096_v41 }
 0x225   : > { %2692 = vpow2.f32 %v967_v42 }
 0x227   : > { %v1093_v43 = vpop.xlane.xlu1 %1092  ;;  %v984_v44 = vpop.permute.xlu2 %983 }
 0x228   : > { %v1095_v45 = vsub.f32 %v1085_v30, %v1093_v43  ;;  %2541 = vmatpush.msk.msrb.mxu2 %vm992_vm4, %v984_v44  ;;  %2636 = vmatpush.msk.msra.mxu3 %vm992_vm4, %v984_v44 }
 0x22a   : > { %v2691_v47 = vpop.eup %2690  ;;  %v1098_v48 = vmul.f32 1.442695, %v1095_v45  ;;  %1010 = vmatpush.msrb.mxu2 %v982_v46  ;;  %2637 = vmatpush.msra.mxu3 %v982_v46 }
 0x22b   : > { %v1100_v49 = vsel %vm955_vm2, %v2691_v47, 0.0  ;;  %v2693_v50 = vpop.eup %2692 }
 0x22c   : > { %2694 = vpow2.f32 %v1098_v48  ;;  %1101 = vadd.xlane.f32.xlu2 %v1100_v49  ;;  %v972_v53 = vsel %vm959_vm3, %v2693_v50, 0.0  ;;  %1170 = vmatpush.msra.mxu2 %v852_v56 }
 0x22d   : > { %1039 = vmatpush.msrb.mxu3 %v851_v62 }
 0x232   : > { %v2695_v51 = vpop.eup %2694 }
 0x233   : > { %v1103_v52 = vsel %vm959_vm3, %v2695_v51, 0.0 }
 0x234   : > { %1104 = vadd.xlane.f32.xlu0 %v1103_v52  ;;  %973 = vadd.xlane.f32.xlu2 %v972_v53 }
 0x23f   : > { %v1116_v54 = vpop.permute.xlu1 %1115 }
 0x240   : > { %2552 = vmatpush.msk.msra.mxu1 %vm992_vm4, %v1116_v54 }
 0x247   : > { %v1114_v55 = vpop.permute.xlu1 %1113 }
 0x248   : > { %1141 = vmatpush.msra.mxu1 %v1114_v55  ;;  %1180 = vrot.lane.b32.xlu0 %v2981_v13, %s3482_s7 }
 0x24c   : > { %1186 = vrot.lane.b32.xlu2 %v2992_v18, %s3482_s7  ;;  %s3513_s7 = smov 120  }
 0x24f   : > { %v1318_v58 = vpop.permute.xlu1 %1317 }
 0x254   : > { %1313 = vrot.lane.b32.xlu2 %v2985_v15, %s3477_s6  ;;  %s3517_s6 = smov 104  }
 0x257   : > { %v1316_v61 = vpop.permute.xlu1 %1315 }
 0x25f   : > { %v1312_v4 = vpop.permute.xlu1 %1311 }
 0x260   : > { %v971_v57 = vpop.xlane.xlu2 %970 }
 0x261   : > { %2696 = vrcp.f32 %v971_v57 }
 0x267   : > { %v2697_v59 = vpop.eup %2696  ;;  %v1185_v12 = vpop.permute.xlu1 %1184 }
 0x268   : > { %v977_v60 = vmul.f32 %v2697_v59, %v2689_v35 }
 0x26a   : > { %979 = vst.msk [vmem:[%s3056_s4] sm:$0xff] %vm955_vm2, %v977_v60  ;;  %2542 = vmatmul.msk.f32.vlgmr.msrb.gmra.mxu2 %vm955_vm2, %v977_v60 }
 0x26b   : > { %2568 = vmatpush.xpose.msk.msrb.mxu2 %vm919_vm1, %v1318_v58 }
 0x26f   : > { %2569 = vmatpush.xpose.msk.msrb.mxu2 %vm919_vm1, %v1316_v61  ;;  %v1183_v21 = vpop.permute.xlu1 %1182 }
 0x29f   : > { %v1102_v63 = vpop.xlane.xlu2 %1101 }
 0x2a0   : > { %2698 = vrcp.f32 %v1102_v63 }
 0x2a6   : > { %v2699_v0 = vpop.eup %2698 }
 0x2a7   : > { %v1108_v1 = vmul.f32 %v2699_v0, %v2691_v47  ;;  %v974_v2 = vpop.xlane.xlu2 %973  ;;  %v1105_v3 = vpop.xlane.xlu0 %1104 }
 0x2a8   : > { %2700 = vrcp.f32 %v974_v2 }
 0x2a9   : > { %2550 = vst.msk [vmem:[%s3056_s4 + $0x10] sm:$0xff] %vm955_vm2, %v1108_v1  ;;  %2702 = vrcp.f32 %v1105_v3  ;;  %2553 = vmatmul.msk.f32.vlgmr.msra.gmra.mxu1 %vm955_vm2, %v1108_v1 }
 0x2ae   : > { %v2701_v7 = vpop.eup %2700 }
 0x2af   : > { %v2703_v8 = vpop.eup %2702  ;;  %v1187_v9 = vpop.permute.xlu2 %1186  ;;  %v978_v10 = vmul.f32 %v2701_v7, %v2693_v50 }
 0x2b0   : > { %v1109_v11 = vmul.f32 %v2703_v8, %v2695_v51 }
 0x2b1   : > { %980 = vst.msk [vmem:[%s3056_s4 + $0x8] sm:$0xf] %vm959_vm3, %v978_v10  ;;  %2543 = vmatmul.msk.f32.vlgmr.msra.gmra.mxu3 %vm955_vm2, %v978_v10  ;;  %v854_v10 = vld [vmem:[%s3507_s0 + $0x18] sm:$0xff] }
 0x2b2   : > { %2551 = vst.msk [vmem:[%s3056_s4 + $0x18] sm:$0xf] %vm959_vm3, %v1109_v11  ;;  %2554 = vmatmul.msk.f32.gmra.mxu1 %vm955_vm2, %v1109_v11  ;;  %2557 = vmatpush.xpose.msk.msra.mxu3 %vm919_vm1, %v1187_v9  ;;  %v853_v9 = vld [vmem:[%s3507_s0 + $0x10] sm:$0xff]  ;;  %s3511_s0 = sld [smem:[#allocation3_spill]] }
 0x2b3   : > { %1301 = vmatpush.msrb.mxu1 %v853_v9 }
 0x2b6   : > { %2558 = vmatpush.xpose.msk.msra.mxu3 %vm919_vm1, %v1185_v12 }
 0x2b7   : > { %v1314_v20 = vpop.permute.xlu2 %1313 }
 0x2b8   : > { %s821_s1 = scalar_lea.vmem %s3511_s0, %s2948_s5  ;;  %s826_s0 = scalar_lea.vmem %s3468_s24, %s2948_s5 }
 0x2ba   : > { %v1181_v17 = vpop.permute.xlu0 %1180 }
 0x2ed   : > { %v1012_v13 = vpop.f32.mrf.mxu2 }
 0x2ee   : > { %2544 = vmatmul.msk.f32.vlgmr.msrb.gmra.mxu3 %vm919_vm1, %v1012_v13 }
 0x326   : > { %v1143_v14 = vpop.f32.mrf.mxu1 }
 0x327   : > { %2555 = vmatmul.msk.f32.vlgmr.msra.gmra.mxu2 %vm919_vm1, %v1143_v14 }
 0x32f   : > { %v1146_v15 = vpop.f32.mrf.mxu1 }
 0x330   : > { %2556 = vmatmul.msk.f32.gmra.mxu2 %vm919_vm1, %v1146_v15 }
 0x334   : > { %v1015_v16 = vpop.f32.mrf.mxu3 }
 0x335   : > { %2545 = vmatmul.msk.f32.gmra.mxu3 %vm919_vm1, %v1015_v16 }
 0x338   : > { %2570 = vmatmul.msk.f32.vlgmr.msrb.gmra.mxu2 %vm919_vm1, %v1312_v4 }
 0x33d   : > { %2559 = vmatmul.msk.f32.vlgmr.msra.gmra.mxu3 %vm919_vm1, %v1181_v17 }
 0x340   : > { %2571 = vmatmul.msk.f32.gmra.mxu2 %vm919_vm1, %v1314_v20 }
 0x345   : > { %2560 = vmatmul.msk.f32.gmra.mxu3 %vm919_vm1, %v1183_v21 }
 0x371   : > { %v3087_v23 = vpop.f32.mrf.mxu3 }
 0x372   : > { %v1047_v15 = vadd.f32 %v3092_v25, %v3087_v23 }
 0x3aa   : > { %v3085_v22 = vpop.f32.mrf.mxu2 }
 0x3ab   : > { %v1178_v17 = vadd.f32 %v3085_v22, %v1047_v15  ;;  %v2789_v22 = vmov 32.0  }
 0x3b3   : > { %v1175_v24 = vpop.f32.mrf.mxu2 }
 0x3b8   : > { %v1044_v26 = vpop.f32.mrf.mxu3 }
 0x3b9   : > { %v1048_v27 = vadd.f32 %v3092_v25, %v1044_v26 }
 0x3bb   : > { %v1344_v28 = vpop.f32.mrf.mxu2  ;;  %v3095_v29 = vadd.f32 %v1175_v24, %v1048_v27 }
 0x3bc   : > { %v1350_v30 = vsel %vm955_vm2, %v1344_v28, -inf }
 0x3bd   : > { %1351 = vmax.xlane.f32.xlu2 %v1350_v30 }
 0x3c0   : > { %v1213_v31 = vpop.f32.mrf.mxu3 }
 0x3c1   : > { %v1219_v32 = vsel %vm955_vm2, %v1213_v31, -inf }
 0x3c2   : > { %1220 = vmax.xlane.f32.xlu1 %v1219_v32 }
 0x3c3   : > { %v1347_v33 = vpop.f32.mrf.mxu2 }
 0x3c4   : > { %v1353_v34 = vsel %vm959_vm3, %v1347_v33, -inf }
 0x3c5   : > { %1354 = vmax.xlane.f32.xlu0 %v1353_v34 }
 0x3c8   : > { %v1216_v35 = vpop.f32.mrf.mxu3 }
 0x3c9   : > { %v1222_v36 = vsel %vm959_vm3, %v1216_v35, -inf }
 0x3ca   : > { %1223 = vmax.xlane.f32.xlu2 %v1222_v36 }
 0x3d9   : > { %1246 = vrot.lane.b32.xlu0 %v2992_v18, %s3480_s28 }
 0x430   : > { %v1352_v37 = vpop.xlane.xlu2 %1351 }
 0x431   : > { %v1356_v38 = vsub.f32 %v1344_v28, %v1352_v37 }
 0x433   : > { %v1358_v39 = vmul.f32 1.442695, %v1356_v38 }
 0x435   : > { %2704 = vpow2.f32 %v1358_v39  ;;  %v1221_v40 = vpop.xlane.xlu1 %1220 }
 0x436   : > { %v1225_v41 = vsub.f32 %v1213_v31, %v1221_v40 }
 0x438   : > { %v1227_v42 = vmul.f32 1.442695, %v1225_v41  ;;  %v1355_v43 = vpop.xlane.xlu0 %1354 }
 0x439   : > { %v1357_v44 = vsub.f32 %v1347_v33, %v1355_v43 }
 0x43a   : > { %2706 = vpow2.f32 %v1227_v42 }
 0x43b   : > { %v2705_v45 = vpop.eup %2704  ;;  %v1360_v46 = vmul.f32 1.442695, %v1357_v44 }
 0x43c   : > { %v1362_v47 = vsel %vm955_vm2, %v2705_v45, 0.0 }
 0x43d   : > { %2708 = vpow2.f32 %v1360_v46  ;;  %1363 = vadd.xlane.f32.xlu1 %v1362_v47  ;;  %v1224_v53 = vpop.xlane.xlu2 %1223  ;;  %v840_v46 = vld [vmem:[%s821_s1 + $0x8] sm:$0xff] }
 0x43e   : > { %v1226_v54 = vsub.f32 %v1216_v35, %v1224_v53  ;;  %v1510_v53 = vld [vmem:[%s3512_s25 + $0x10] sm:$0xff] }
 0x440   : > { %v2707_v48 = vpop.eup %2706  ;;  %v1229_v55 = vmul.f32 1.442695, %v1226_v54  ;;  %v1509_v54 = vld [vmem:[%s3512_s25 + $0x8] sm:$0xff] }
 0x441   : > { %v1231_v49 = vsel %vm955_vm2, %v2707_v48, 0.0 }
 0x442   : > { %1232 = vadd.xlane.f32.xlu2 %v1231_v49  ;;  %2710 = vpow2.f32 %v1229_v55  ;;  %v1508_v55 = vld [vmem:[%s3512_s25] sm:$0xff] }
 0x443   : > { %v2709_v50 = vpop.eup %2708 }
 0x444   : > { %v1365_v51 = vsel %vm959_vm3, %v2709_v50, 0.0 }
 0x445   : > { %1366 = vadd.xlane.f32.xlu0 %v1365_v51 }
 0x448   : > { %v2711_v56 = vpop.eup %2710 }
 0x449   : > { %v1234_v57 = vsel %vm959_vm3, %v2711_v56, 0.0 }
 0x44b   : > { %v1247_v52 = vpop.permute.xlu0 %1246 }
 0x44c   : > { %2563 = vmatpush.msk.msra.mxu0 %vm992_vm4, %v1247_v52  ;;  %v1511_v52 = vld [vmem:[%s3512_s25 + $0x18] sm:$0xff] }
 0x44d   : > { %1544 = vmatpush.msra.mxu1 %v1511_v52 }
 0x44f   : > { %1545 = vmatpush.msra.mxu1 %v1510_v53 }
 0x451   : > { %1546 = vmatpush.msra.mxu1 %v1509_v54 }
 0x453   : > { %1547 = vmatpush.msra.mxu1 %v1508_v55 }
 0x456   : > { %1377 = vrot.lane.b32.xlu1 %v2992_v18, %s3479_s10 }
 0x459   : > { %1244 = vrot.lane.b32.xlu0 %v2998_v19, %s3480_s28  ;;  %s3516_s28 = smov 112  }
 0x45a   : > { %1375 = vrot.lane.b32.xlu2 %v2998_v19, %s3479_s10  ;;  %s3510_s10 = sld [smem:[#allocation12_spill]] }
 0x460   : > { %v1516_v41 = vld [vmem:[%s3510_s10 + $0x18] sm:$0xff]  ;;  %v1515_v42 = vld [vmem:[%s3510_s10 + $0x10] sm:$0xff]  ;;  %v1514_v43 = vld [vmem:[%s3510_s10 + $0x8] sm:$0xff] }
 0x461   : > { %1576 = vmatpush.msra.mxu2 %v1516_v41  ;;  %v1513_v44 = vld [vmem:[%s3510_s10] sm:$0xff] }
 0x463   : > { %1577 = vmatpush.msra.mxu2 %v1515_v42 }
 0x465   : > { %1578 = vmatpush.msra.mxu2 %v1514_v43 }
 0x467   : > { %1579 = vmatpush.msra.mxu2 %v1513_v44 }
 0x480   : > { %1235 = vadd.xlane.f32.xlu1 %v1234_v57 }
 0x4b0   : > { %v1364_v58 = vpop.xlane.xlu1 %1363 }
 0x4b1   : > { %2712 = vrcp.f32 %v1364_v58 }
 0x4b5   : > { %v1233_v18 = vpop.xlane.xlu2 %1232 }
 0x4b6   : > { %2714 = vrcp.f32 %v1233_v18 }
 0x4b7   : > { %v2713_v59 = vpop.eup %2712 }
 0x4b8   : > { %v1370_v60 = vmul.f32 %v2713_v59, %v2705_v45  ;;  %v1367_v61 = vpop.xlane.xlu0 %1366  ;;  %v839_v45 = vld [vmem:[%s821_s1] sm:$0xff] }
 0x4b9   : > { %2716 = vrcp.f32 %v1367_v61  ;;  %2581 = vmatmul.msk.f32.vlgmr.msra.gmra.mxu2 %vm859_vm0, %v839_v45 }
 0x4ba   : > { %2572 = vst.msk [vmem:[%s3056_s4 + $0x30] sm:$0xff] %vm955_vm2, %v1370_v60 }
 0x4bc   : > { %v2715_v19 = vpop.eup %2714 }
 0x4bd   : > { %v1239_v62 = vmul.f32 %v2715_v19, %v2707_v48  ;;  %v1376_v2 = vpop.permute.xlu2 %1375 }
 0x4bf   : > { %v2717_v63 = vpop.eup %2716  ;;  %2561 = vst.msk [vmem:[%s3056_s4 + $0x20] sm:$0xff] %vm955_vm2, %v1239_v62 }
 0x4c0   : > { %v1371_v0 = vmul.f32 %v2717_v63, %v2709_v50  ;;  %v2677_v63 = vld [vmem:[%s3458_s14] ss:$0 sm:$0xff] }
 0x4c1   : > { %2582 = vmatmul.msk.f32.gmra.mxu2 %vm859_vm0, %v840_v46 }
 0x4c2   : > { %2573 = vst.msk [vmem:[%s3056_s4 + $0x38] sm:$0xf] %vm959_vm3, %v1371_v0 }
 0x4c8   : > { %v1378_v1 = vpop.permute.xlu1 %1377 }
 0x4c9   : > { %2574 = vmatpush.msk.msrb.mxu3 %vm992_vm4, %v1378_v1 }
 0x4cb   : > { %1403 = vmatpush.msrb.mxu3 %v1376_v2  ;;  %v1245_v3 = vpop.permute.xlu0 %1244  ;;  %v2678_v2 = vld [vmem:[%s3459_s15] ss:$0 sm:$0xff] }
 0x4cc   : > { %1272 = vmatpush.msra.mxu0 %v1245_v3  ;;  %2575 = vmatmul.msk.f32.vlgmr.msrb.gmra.mxu3 %vm955_vm2, %v1370_v60 }
 0x4cd   : > { %2564 = vmatmul.msk.f32.vlgmr.msra.gmra.mxu0 %vm955_vm2, %v1239_v62 }
 0x4ce   : > { %1432 = vmatpush.msrb.mxu0 %v854_v10 }
 0x4d4   : > { %2576 = vmatmul.msk.f32.gmra.mxu3 %vm955_vm2, %v1371_v0 }
 0x4f3   : > { %v1236_v4 = vpop.xlane.xlu1 %1235 }
 0x4f4   : > { %2718 = vrcp.f32 %v1236_v4 }
 0x4f5   : > { %2720 = vrcp.f32 %v2789_v22 }
 0x4fa   : > { %v2719_v7 = vpop.eup %2718 }
 0x4fb   : > { %v1240_v8 = vmul.f32 %v2719_v7, %v2711_v56  ;;  %v2721_v25 = vpop.eup %2720  ;;  %v2679_v7 = vld [vmem:[%s3455_s11] ss:$0 sm:$0xff] }
 0x4fc   : > { %v1454_v34 = vmul.f32 32.0, %v2721_v25  ;;  %vm1458_vm6 = vweird.f32 %v2721_v25 }
 0x4fd   : > { %2562 = vst.msk [vmem:[%s3056_s4 + $0x28] sm:$0xf] %vm959_vm3, %v1240_v8  ;;  %2565 = vmatmul.msk.f32.gmra.mxu0 %vm955_vm2, %v1240_v8  ;;  %s3515_s4 = smov 96  }
 0x53c   : > { %v1581_v8 = vpop.f32.mrf.mxu2 }
 0x53d   : > { %v3195_v9 = vadd.f32 %v2679_v7, %v1581_v8 }
 0x54a   : > { %v1274_v11 = vpop.f32.mrf.mxu0 }
 0x54b   : > { %2566 = vmatmul.msk.f32.vlgmr.msrb.gmra.mxu1 %vm919_vm1, %v1274_v11 }
 0x54f   : > { %v1405_v12 = vpop.f32.mrf.mxu3 }
 0x550   : > { %2577 = vmatmul.msk.f32.vlgmr.msrb.gmra.mxu0 %vm919_vm1, %v1405_v12 }
 0x557   : > { %v1408_v13 = vpop.f32.mrf.mxu3 }
 0x558   : > { %2578 = vmatmul.msk.f32.gmra.mxu0 %vm919_vm1, %v1408_v13  ;;  %v1584_v13 = vpop.f32.mrf.mxu2 }
 0x57a   : > { %v1277_v14 = vpop.f32.mrf.mxu0 }
 0x57b   : > { %2567 = vmatmul.msk.f32.gmra.mxu1 %vm919_vm1, %v1277_v14  ;;  %v3200_v14 = vadd.f32 %v2679_v7, %v1584_v13 }
 0x57d   : > { %2583 = vmatpush.xpose.msk.msra.mxu3 %vm919_vm1, %v3200_v14  ;;  %v3235_v53 = vpack.i.bf16 %v3195_v9, %v3200_v14 }
 0x581   : > { %2584 = vmatpush.xpose.msk.msra.mxu3 %vm919_vm1, %v3195_v9 }
 0x5c8   : > { %v1303_v16 = vpop.f32.mrf.mxu1 }
 0x5c9   : > { %v1309_v20 = vadd.f32 %v1303_v16, %v1178_v17 }
 0x5cd   : > { %v1434_v21 = vpop.f32.mrf.mxu0 }
 0x5ce   : > { %v1440_v24 = vadd.f32 %v1434_v21, %v1309_v20 }
 0x5d0   : > { %v1442_v26 = vadd.f32 %v1440_v24, %v2957_v5  ;;  %v1455_v5 = vsub.f32 1.0, %v1454_v34 }
 0x5d2   : > { %v1446_v27 = vsel %vm859_vm0, %v1442_v26, 0.0  ;;  %v1456_v35 = vmul.f32 %v2721_v25, %v1455_v5 }
 0x5d3   : > { %1447 = vadd.xlane.f32.xlu2 %v1446_v27 }
 0x5d4   : > { %v1457_v36 = vadd.f32 %v2721_v25, %v1456_v35 }
 0x5d5   : > { %v1437_v31 = vpop.f32.mrf.mxu0 }
 0x5d6   : > { %v3145_v37 = vsel %vm1458_vm6, %v2721_v25, %v1457_v36 }
 0x5f8   : > { %v1306_v28 = vpop.f32.mrf.mxu1 }
 0x5f9   : > { %v1310_v30 = vadd.f32 %v1306_v28, %v3095_v29 }
 0x5fb   : > { %v1441_v32 = vadd.f32 %v1437_v31, %v1310_v30  ;;  %v2680_v31 = vld [vmem:[%s3514_s9] ss:$0 sm:$0xff] }
 0x5fd   : > { %v1443_v33 = vadd.f32 %v1441_v32, %v2959_v6 }
 0x5ff   : > { %v1450_v23 = vsel %vm1449_vm5, %v1443_v33, 0.0 }
 0x600   : > { %1451 = vadd.xlane.f32.xlu0 %v1450_v23 }
 0x646   : > { %v1448_v29 = vpop.xlane.xlu2 %1447 }
 0x647   : > { %v1460_v38 = vmul.f32 %v3145_v37, %v1448_v29 }
 0x649   : > { %v1462_v39 = vsub.f32 %v1442_v26, %v1460_v38 }
 0x64b   : > { %v1464_v40 = vmul.f32 %v1462_v39, %v1462_v39 }
 0x64d   : > { %v1466_v6 = vsel %vm859_vm0, %v1464_v40, 0.0 }
 0x64e   : > { %1467 = vadd.xlane.f32.xlu1 %v1466_v6 }
 0x667   : > { %1724 = vrot.lane.b32.xlu1 %v3200_v14, %s3513_s7 }
 0x673   : > { %v1452_v47 = vpop.xlane.xlu0 %1451 }
 0x674   : > { %v1461_v48 = vmul.f32 %v3145_v37, %v1452_v47 }
 0x676   : > { %v1463_v49 = vsub.f32 %v1443_v33, %v1461_v48 }
 0x678   : > { %v1465_v50 = vmul.f32 %v1463_v49, %v1463_v49 }
 0x67a   : > { %v1469_v51 = vsel %vm1449_vm5, %v1465_v50, 0.0 }
 0x67b   : > { %1470 = vadd.xlane.f32.xlu2 %v1469_v51 }
 0x693   : > { %1722 = vrot.lane.b32.xlu2 %v3195_v9, %s3513_s7 }
 0x6c1   : > { %v1468_v56 = vpop.xlane.xlu1 %1467 }
 0x6c2   : > { %v1472_v57 = vmul.f32 %v1468_v56, %v3145_v37 }
 0x6c4   : > { %v1474_v58 = vadd.f32 1e-05, %v1472_v57 }
 0x6c6   : > { %2722 = vrsqrt.f32 %v1474_v58  ;;  %vm1482_vm8 = vweird.f32 %v1474_v58 }
 0x6cc   : > { %v2723_v18 = vpop.eup %2722 }
 0x6cd   : > { %v1477_v59 = vmul.f32 %v2723_v18, %v1474_v58  ;;  %vm1483_vm7 = vweird.f32 %v2723_v18 }
 0x6ce   : > { %vm1484_vm9 = vmor %vm1482_vm8, %vm1483_vm7 }
 0x6cf   : > { %v1478_v60 = vmul.f32 %v2723_v18, %v1477_v59 }
 0x6d1   : > { %v1479_v61 = vmul.f32 0.5, %v1478_v60 }
 0x6d3   : > { %v1480_v19 = vsub.f32 1.5, %v1479_v61 }
 0x6d5   : > { %v1481_v62 = vmul.f32 %v2723_v18, %v1480_v19 }
 0x6d7   : > { %v1485_v0 = vsel %vm1484_vm9, %v2723_v18, %v1481_v62 }
 0x6d8   : > { %v1496_v1 = vmul.f32 %v1485_v0, %v1462_v39 }
 0x6d9   : > { %v1725_v23 = vpop.permute.xlu1 %1724 }
 0x6da   : > { %v1501_v3 = vmul.f32 %v2677_v63, %v1496_v1  ;;  %2591 = vmatpush.xpose.msk.msrb.mxu2 %vm919_vm1, %v1725_v23 }
 0x6dc   : > { %v3188_v4 = vadd.f32 %v2678_v2, %v1501_v3 }
 0x6de   : > { %2579 = vmatmul.msk.f32.vlgmr.msra.gmra.mxu1 %vm859_vm0, %v3188_v4 }
 0x6ee   : > { %v1471_v10 = vpop.xlane.xlu2 %1470 }
 0x6ef   : > { %v1473_v11 = vmul.f32 %v1471_v10, %v3145_v37 }
 0x6f1   : > { %v1475_v12 = vadd.f32 1e-05, %v1473_v11 }
 0x6f3   : > { %2724 = vrsqrt.f32 %v1475_v12  ;;  %vm1492_vm11 = vweird.f32 %v1475_v12 }
 0x6f6   : > { %v1723_v22 = vpop.permute.xlu2 %1722 }
 0x6f7   : > { %2592 = vmatpush.xpose.msk.msrb.mxu2 %vm919_vm1, %v1723_v22 }
 0x6f9   : > { %v2725_v15 = vpop.eup %2724 }
 0x6fa   : > { %v1487_v16 = vmul.f32 %v2725_v15, %v1475_v12  ;;  %vm1493_vm10 = vweird.f32 %v2725_v15 }
 0x6fb   : > { %vm1494_vm12 = vmor %vm1492_vm11, %vm1493_vm10 }
 0x6fc   : > { %v1488_v17 = vmul.f32 %v2725_v15, %v1487_v16 }
 0x6fe   : > { %v1489_v20 = vmul.f32 0.5, %v1488_v17  ;;  %v1518_v17 = vld [vmem:[%s3456_s12] sm:$0xff] }
 0x6ff   : > { %1708 = vmatpush.msrb.mxu1 %v1518_v17 }
 0x700   : > { %v1490_v21 = vsub.f32 1.5, %v1489_v20 }
 0x702   : > { %v1491_v24 = vmul.f32 %v2725_v15, %v1490_v21 }
 0x704   : > { %v1495_v26 = vsel %vm1494_vm12, %v2725_v15, %v1491_v24 }
 0x705   : > { %v1497_v27 = vmul.f32 %v1495_v26, %v1463_v49 }
 0x707   : > { %v1502_v28 = vmul.f32 %v2677_v63, %v1497_v27 }
 0x709   : > { %v3208_v30 = vadd.f32 %v2678_v2, %v1502_v28 }
 0x70b   : > { %2580 = vmatmul.msk.f32.gmra.mxu1 %vm859_vm0, %v3208_v30 }
 0x75b   : > { %v1549_v32 = vpop.f32.mrf.mxu1 }
 0x75c   : > { %v3215_v33 = vadd.f32 %v2680_v31, %v1549_v32 }
 0x75e   : > { %2585 = vmatmul.msk.f32.vlgmr.msra.gmra.mxu3 %vm919_vm1, %v3215_v33  ;;  %1718 = vrot.lane.b32.xlu0 %v3215_v33, %s3513_s7 }
 0x788   : > { %v1552_v25 = vpop.f32.mrf.mxu1 }
 0x789   : > { %v1553_v34 = vadd.f32 %v2680_v31, %v1552_v25 }
 0x78b   : > { %1720 = vrot.lane.b32.xlu0 %v1553_v34, %s3513_s7  ;;  %2586 = vmatmul.msk.f32.gmra.mxu3 %vm919_vm1, %v1553_v34  ;;  %s3519_s7 = smov 88  }
 0x7d0   : > { %v1719_v5 = vpop.permute.xlu0 %1718 }
 0x7d1   : > { %2593 = vmatmul.msk.f32.vlgmr.msrb.gmra.mxu2 %vm919_vm1, %v1719_v5 }
 0x7e1   : > { %v1620_v35 = vpop.f32.mrf.mxu3 }
 0x7e2   : > { %v1627_v36 = vsel %vm1626_vm13, %v1620_v35, -inf }
 0x7e3   : > { %1628 = vmax.xlane.f32.xlu1 %v1627_v36 }
 0x7fd   : > { %v1721_v29 = vpop.permute.xlu0 %1720 }
 0x7fe   : > { %2594 = vmatmul.msk.f32.gmra.mxu2 %vm919_vm1, %v1721_v29 }
 0x80e   : > { %v1623_v38 = vpop.f32.mrf.mxu3 }
 0x80f   : > { %v1631_v39 = vsel %vm1630_vm14, %v1623_v38, -inf }
 0x810   : > { %1632 = vmax.xlane.f32.xlu0 %v1631_v39 }
 0x854   : > { %v1751_v40 = vpop.f32.mrf.mxu2 }
 0x855   : > { %v1757_v6 = vsel %vm1626_vm13, %v1751_v40, -inf }
 0x856   : > { %v1629_v41 = vpop.xlane.xlu1 %1628  ;;  %1758 = vmax.xlane.f32.xlu2 %v1757_v6 }
 0x857   : > { %v1634_v42 = vsub.f32 %v1620_v35, %v1629_v41  ;;  %v2681_v41 = vld [vmem:[%s3457_s13] ss:$0 sm:$0xff] }
 0x859   : > { %v1636_v43 = vmul.f32 1.442695, %v1634_v42 }
 0x85b   : > { %2726 = vpow2.f32 %v1636_v43 }
 0x861   : > { %v2727_v44 = vpop.eup %2726 }
 0x862   : > { %v1640_v45 = vsel %vm1626_vm13, %v2727_v44, 0.0 }
 0x863   : > { %1641 = vadd.xlane.f32.xlu2 %v1640_v45 }
 0x881   : > { %v1754_v46 = vpop.f32.mrf.mxu2 }
 0x882   : > { %v1760_v47 = vsel %vm1630_vm14, %v1754_v46, -inf }
 0x883   : > { %1761 = vmax.xlane.f32.xlu1 %v1760_v47  ;;  %v1633_v48 = vpop.xlane.xlu0 %1632 }
 0x884   : > { %v1635_v49 = vsub.f32 %v1623_v38, %v1633_v48 }
 0x886   : > { %v1638_v50 = vmul.f32 1.442695, %v1635_v49 }
 0x888   : > { %2728 = vpow2.f32 %v1638_v50 }
 0x88e   : > { %v2729_v51 = vpop.eup %2728 }
 0x88f   : > { %v1643_v52 = vsel %vm1630_vm14, %v2729_v51, 0.0 }
 0x890   : > { %1644 = vadd.xlane.f32.xlu2 %v1643_v52 }
 0x89c   : > { %2655 = vrot.lane.b32.xlu1 %v3235_v53, %s3515_s4 }
 0x8a4   : > { %1852 = vrot.lane.b32.xlu1 %v3195_v9, %s3516_s28 }
 0x8ac   : > { %1984 = vrot.lane.b32.xlu1 %v3200_v14, %s3517_s6 }
 0x8b4   : > { %1850 = vrot.lane.b32.xlu1 %v1553_v34, %s3516_s28 }
 0x8c9   : > { %v1759_v54 = vpop.xlane.xlu2 %1758 }
 0x8ca   : > { %v1763_v55 = vsub.f32 %v1751_v40, %v1759_v54 }
 0x8cc   : > { %v1765_v56 = vmul.f32 1.442695, %v1763_v55 }
 0x8ce   : > { %2730 = vpow2.f32 %v1765_v56 }
 0x8d4   : > { %v2731_v57 = vpop.eup %2730 }
 0x8d5   : > { %v1769_v58 = vsel %vm1626_vm13, %v2731_v57, 0.0 }
 0x8d6   : > { %1770 = vadd.xlane.f32.xlu0 %v1769_v58  ;;  %v1642_v18 = vpop.xlane.xlu2 %1641 }
 0x8d7   : > { %2732 = vrcp.f32 %v1642_v18 }
 0x8dd   : > { %v2733_v59 = vpop.eup %2732 }
 0x8de   : > { %v1648_v60 = vmul.f32 %v2733_v59, %v2727_v44 }
 0x8e0   : > { %1650 = vst.msk [vmem:[%s3250_s8] sm:$0xff] %vm1626_vm13, %v1648_v60 }
 0x8ea   : > { %2660 = vrot.lane.b32.xlu0 %v3235_v53, %s3519_s7 }
 0x8f2   : > { %1848 = vrot.lane.b32.xlu0 %v3215_v33, %s3516_s28 }
 0x8f6   : > { %v1762_v61 = vpop.xlane.xlu1 %1761 }
 0x8f7   : > { %v1764_v19 = vsub.f32 %v1754_v46, %v1762_v61 }
 0x8f9   : > { %v1767_v62 = vmul.f32 1.442695, %v1764_v19 }
 0x8fa   : > { %1982 = vrot.lane.b32.xlu0 %v3195_v9, %s3517_s6  ;;  %v1519_v9 = vld [vmem:[%s3456_s12 + $0x8] sm:$0xff] }
 0x8fb   : > { %2734 = vpow2.f32 %v1767_v62 }
 0x901   : > { %v2735_v63 = vpop.eup %2734 }
 0x902   : > { %1980 = vrot.lane.b32.xlu0 %v1553_v34, %s3517_s6  ;;  %v1772_v0 = vsel %vm1630_vm14, %v2735_v63, 0.0 }
 0x903   : > { %1773 = vadd.xlane.f32.xlu2 %v1772_v0  ;;  %v1645_v1 = vpop.xlane.xlu2 %1644 }
 0x904   : > { %2736 = vrcp.f32 %v1645_v1 }
 0x90a   : > { %v2737_v2 = vpop.eup %2736 }
 0x90b   : > { %v1649_v3 = vmul.f32 %v2737_v2, %v2729_v51 }
 0x90d   : > { %1651 = vst.msk [vmem:[%s3250_s8 + $0x8] sm:$0xf] %vm1630_vm14, %v1649_v3 }
 0x90e   : > { %v2656_v7 = vpop.permute.xlu1 %2655 }
 0x90f   : > { %v2657_v8 = vunpack.i.l.bf16 %v2656_v7  ;;  %v2658_v10 = vunpack.i.h.bf16 %v2656_v7 }
 0x911   : > { %1678 = vmatpush.msra.mxu0 %v2657_v8 }
 0x913   : > { %1679 = vmatpush.msra.mxu0 %v2658_v10 }
 0x914   : > { %2587 = vmatmul.msk.f32.vlgmr.msra.gmra.mxu0 %vm1626_vm13, %v1648_v60 }
 0x915   : > { %1838 = vmatpush.msrb.mxu0 %v1519_v9 }
 0x916   : > { %v1853_v11 = vpop.permute.xlu1 %1852 }
 0x91b   : > { %1854 = vrot.lane.b32.xlu2 %v3200_v14, %s3516_s28 }
 0x91c   : > { %2588 = vmatmul.msk.f32.gmra.mxu0 %vm1626_vm13, %v1649_v3 }
 0x91e   : > { %v1985_v12 = vpop.permute.xlu1 %1984 }
 0x91f   : > { %2611 = vmatpush.xpose.msk.msra.mxu0 %vm919_vm1, %v1985_v12 }
 0x923   : > { %1978 = vrot.lane.b32.xlu2 %v3215_v33, %s3517_s6  ;;  %s3520_s6 = smov 80  }
 0x926   : > { %v1851_v22 = vpop.permute.xlu1 %1850 }
 0x949   : > { %v1771_v13 = vpop.xlane.xlu0 %1770 }
 0x94a   : > { %2738 = vrcp.f32 %v1771_v13 }
 0x950   : > { %v2739_v15 = vpop.eup %2738 }
 0x951   : > { %v1777_v16 = vmul.f32 %v2739_v15, %v2731_v57 }
 0x953   : > { %2595 = vst.msk [vmem:[%s3250_s8 + $0x10] sm:$0xff] %vm1626_vm13, %v1777_v16 }
 0x95c   : > { %v2661_v14 = vpop.permute.xlu0 %2660 }
 0x95d   : > { %v2662_v20 = vunpack.i.l.bf16 %v2661_v14  ;;  %v2663_v21 = vunpack.i.h.bf16 %v2661_v14 }
 0x95f   : > { %1808 = vmatpush.msrb.mxu3 %v2662_v20 }
 0x961   : > { %1809 = vmatpush.msrb.mxu3 %v2663_v21 }
 0x962   : > { %2597 = vmatmul.msk.f32.vlgmr.msrb.gmra.mxu3 %vm1626_vm13, %v1777_v16 }
 0x964   : > { %v1849_v24 = vpop.permute.xlu0 %1848 }
 0x96c   : > { %v1983_v26 = vpop.permute.xlu0 %1982 }
 0x96d   : > { %2612 = vmatpush.xpose.msk.msra.mxu0 %vm919_vm1, %v1983_v26 }
 0x974   : > { %v1981_v36 = vpop.permute.xlu0 %1980 }
 0x976   : > { %v1774_v27 = vpop.xlane.xlu2 %1773 }
 0x977   : > { %2740 = vrcp.f32 %v1774_v27  ;;  %v1520_v27 = vld [vmem:[%s3456_s12 + $0x10] sm:$0xff] }
 0x978   : > { %1968 = vmatpush.msra.mxu3 %v1520_v27 }
 0x97d   : > { %v2741_v28 = vpop.eup %2740 }
 0x97e   : > { %v1855_v31 = vpop.permute.xlu2 %1854  ;;  %v1778_v32 = vmul.f32 %v2741_v28, %v2735_v63 }
 0x97f   : > { %2601 = vmatpush.xpose.msk.msra.mxu1 %vm919_vm1, %v1855_v31 }
 0x980   : > { %2596 = vst.msk [vmem:[%s3250_s8 + $0x18] sm:$0xf] %vm1630_vm14, %v1778_v32  ;;  %2598 = vmatmul.msk.f32.gmra.mxu3 %vm1626_vm13, %v1778_v32 }
 0x983   : > { %2602 = vmatpush.xpose.msk.msra.mxu1 %vm919_vm1, %v1853_v11 }
 0x986   : > { %v1979_v5 = vpop.permute.xlu2 %1978 }
 0x991   : > { %v1681_v33 = vpop.f32.mrf.mxu0 }
 0x992   : > { %2589 = vmatmul.msk.f32.vlgmr.msrb.gmra.mxu1 %vm919_vm1, %v1681_v33  ;;  %v1521_v33 = vld [vmem:[%s3456_s12 + $0x18] sm:$0xff] }
 0x999   : > { %v1684_v23 = vpop.f32.mrf.mxu0 }
 0x99a   : > { %2590 = vmatmul.msk.f32.gmra.mxu1 %vm919_vm1, %v1684_v23 }
 0x9a2   : > { %2603 = vmatmul.msk.f32.vlgmr.msra.gmra.mxu1 %vm919_vm1, %v1849_v24 }
 0x9aa   : > { %2604 = vmatmul.msk.f32.gmra.mxu1 %vm919_vm1, %v1851_v22 }
 0x9e5   : > { %v1811_v25 = vpop.f32.mrf.mxu3 }
 0x9e6   : > { %2599 = vmatmul.msk.f32.vlgmr.msrb.gmra.mxu0 %vm919_vm1, %v1811_v25 }
 0xa03   : > { %v1814_v34 = vpop.f32.mrf.mxu3 }
 0xa04   : > { %2600 = vmatmul.msk.f32.gmra.mxu0 %vm919_vm1, %v1814_v34 }
 0xa0c   : > { %2613 = vmatmul.msk.f32.vlgmr.msra.gmra.mxu0 %vm919_vm1, %v1979_v5 }
 0xa0f   : > { %v1710_v35 = vpop.f32.mrf.mxu1 }
 0xa10   : > { %v1716_v42 = vadd.f32 %v2681_v41, %v1710_v35 }
 0xa14   : > { %2614 = vmatmul.msk.f32.gmra.mxu0 %vm919_vm1, %v1981_v36 }
 0xa17   : > { %v1713_v29 = vpop.f32.mrf.mxu1 }
 0xa18   : > { %v1717_v45 = vadd.f32 %v2681_v41, %v1713_v29 }
 0xa1f   : > { %v1881_v38 = vpop.f32.mrf.mxu1 }
 0xa20   : > { %v1887_v39 = vsel %vm1626_vm13, %v1881_v38, -inf }
 0xa21   : > { %1888 = vmax.xlane.f32.xlu1 %v1887_v39 }
 0xa27   : > { %v1884_v40 = vpop.f32.mrf.mxu1 }
 0xa28   : > { %v1890_v6 = vsel %vm1630_vm14, %v1884_v40, -inf }
 0xa29   : > { %1891 = vmax.xlane.f32.xlu2 %v1890_v6 }
 0xa63   : > { %v1840_v43 = vpop.f32.mrf.mxu0 }
 0xa64   : > { %v3299_v44 = vadd.f32 %v1840_v43, %v1716_v42 }
 0xa81   : > { %v1843_v46 = vpop.f32.mrf.mxu0 }
 0xa82   : > { %v3301_v47 = vadd.f32 %v1843_v46, %v1717_v45 }
 0xa89   : > { %v2011_v48 = vpop.f32.mrf.mxu0 }
 0xa8a   : > { %v2017_v49 = vsel %vm1626_vm13, %v2011_v48, -inf }
 0xa8b   : > { %2018 = vmax.xlane.f32.xlu0 %v2017_v49 }
 0xa91   : > { %v2014_v50 = vpop.f32.mrf.mxu0 }
 0xa92   : > { %v2020_v51 = vsel %vm1630_vm14, %v2014_v50, -inf }
 0xa93   : > { %2021 = vmax.xlane.f32.xlu2 %v2020_v51 }
 0xa94   : > { %v1889_v52 = vpop.xlane.xlu1 %1888 }
 0xa95   : > { %v1893_v54 = vsub.f32 %v1881_v38, %v1889_v52 }
 0xa97   : > { %v1895_v55 = vmul.f32 1.442695, %v1893_v54 }
 0xa99   : > { %2742 = vpow2.f32 %v1895_v55 }
 0xa9c   : > { %v1892_v56 = vpop.xlane.xlu2 %1891 }
 0xa9d   : > { %v1894_v57 = vsub.f32 %v1884_v40, %v1892_v56 }
 0xa9f   : > { %v2743_v58 = vpop.eup %2742  ;;  %v1897_v18 = vmul.f32 1.442695, %v1894_v57  ;;  %2665 = vrot.lane.b32.xlu0 %v3235_v53, %s3520_s6  ;;  %v2168_v57 = vld [vmem:[%s3462_s18 + $0x10] sm:$0xff] }
 0xaa0   : > { %v1899_v59 = vsel %vm1626_vm13, %v2743_v58, 0.0 }
 0xaa1   : > { %2744 = vpow2.f32 %v1897_v18  ;;  %1900 = vadd.xlane.f32.xlu1 %v1899_v59  ;;  %v2166_v18 = vld [vmem:[%s3462_s18] sm:$0xff] }
 0xaa7   : > { %v2745_v60 = vpop.eup %2744 }
 0xaa8   : > { %v1902_v61 = vsel %vm1630_vm14, %v2745_v60, 0.0 }
 0xaa9   : > { %1903 = vadd.xlane.f32.xlu2 %v1902_v61 }
 0xac1   : > { %2670 = vrot.lane.b32.xlu2 %v3235_v53, %s3521_s30 }
 0xafe   : > { %v2019_v19 = vpop.xlane.xlu0 %2018 }
 0xaff   : > { %v2023_v62 = vsub.f32 %v2011_v48, %v2019_v19 }
 0xb01   : > { %v2025_v63 = vmul.f32 1.442695, %v2023_v62 }
 0xb03   : > { %2746 = vpow2.f32 %v2025_v63 }
 0xb06   : > { %v2022_v0 = vpop.xlane.xlu2 %2021 }
 0xb07   : > { %v2024_v1 = vsub.f32 %v2014_v50, %v2022_v0 }
 0xb09   : > { %v2747_v2 = vpop.eup %2746  ;;  %v2027_v3 = vmul.f32 1.442695, %v2024_v1 }
 0xb0a   : > { %v2029_v7 = vsel %vm1626_vm13, %v2747_v2, 0.0 }
 0xb0b   : > { %2748 = vpow2.f32 %v2027_v3  ;;  %2030 = vadd.xlane.f32.xlu1 %v2029_v7 }
 0xb11   : > { %v2749_v8 = vpop.eup %2748  ;;  %v2666_v10 = vpop.permute.xlu0 %2665 }
 0xb12   : > { %v2667_v9 = vunpack.i.l.bf16 %v2666_v10  ;;  %v2032_v11 = vsel %vm1630_vm14, %v2749_v8, 0.0  ;;  %v2668_v53 = vunpack.i.h.bf16 %v2666_v10 }
 0xb13   : > { %2033 = vadd.xlane.f32.xlu1 %v2032_v11  ;;  %v2682_v11 = vld [vmem:[%s3460_s16] ss:$0 sm:$0xff] }
 0xb14   : > { %v1901_v12 = vpop.xlane.xlu1 %1900  ;;  %1938 = vmatpush.msra.mxu2 %v2667_v9 }
 0xb15   : > { %2750 = vrcp.f32 %v1901_v12 }
 0xb16   : > { %1939 = vmatpush.msra.mxu2 %v2668_v53 }
 0xb18   : > { %2098 = vmatpush.msrb.mxu2 %v1521_v33 }
 0xb1b   : > { %v2751_v13 = vpop.eup %2750 }
 0xb1c   : > { %v1907_v15 = vmul.f32 %v2751_v13, %v2743_v58  ;;  %v1904_v16 = vpop.xlane.xlu2 %1903  ;;  %v2167_v58 = vld [vmem:[%s3462_s18 + $0x8] sm:$0xff] }
 0xb1d   : > { %2752 = vrcp.f32 %v1904_v16 }
 0xb1e   : > { %2605 = vst.msk [vmem:[%s3250_s8 + $0x20] sm:$0xff] %vm1626_vm13, %v1907_v15  ;;  %2607 = vmatmul.msk.f32.vlgmr.msra.gmra.mxu2 %vm1626_vm13, %v1907_v15  ;;  %v2683_v15 = vld [vmem:[%s3461_s17] ss:$0 sm:$0xff] }
 0xb23   : > { %v2753_v17 = vpop.eup %2752 }
 0xb24   : > { %v2671_v14 = vpop.permute.xlu2 %2670  ;;  %v1908_v20 = vmul.f32 %v2753_v17, %v2745_v60 }
 0xb25   : > { %v2672_v21 = vunpack.i.l.bf16 %v2671_v14  ;;  %v2673_v24 = vunpack.i.h.bf16 %v2671_v14 }
 0xb26   : > { %2606 = vst.msk [vmem:[%s3250_s8 + $0x28] sm:$0xf] %vm1630_vm14, %v1908_v20  ;;  %2608 = vmatmul.msk.f32.gmra.mxu2 %vm1626_vm13, %v1908_v20 }
 0xb27   : > { %2068 = vmatpush.msrb.mxu1 %v2672_v21 }
 0xb29   : > { %2069 = vmatpush.msrb.mxu1 %v2673_v24 }
 0xb7e   : > { %v2031_v26 = vpop.xlane.xlu1 %2030 }
 0xb7f   : > { %2754 = vrcp.f32 %v2031_v26 }
 0xb85   : > { %v2755_v28 = vpop.eup %2754 }
 0xb86   : > { %v2037_v31 = vmul.f32 %v2755_v28, %v2747_v2  ;;  %v2034_v32 = vpop.xlane.xlu1 %2033 }
 0xb87   : > { %2756 = vrcp.f32 %v2034_v32 }
 0xb88   : > { %2615 = vst.msk [vmem:[%s3250_s8 + $0x30] sm:$0xff] %vm1626_vm13, %v2037_v31  ;;  %2617 = vmatmul.msk.f32.vlgmr.msrb.gmra.mxu1 %vm1626_vm13, %v2037_v31  ;;  %v2684_v31 = vld [vmem:[%s3463_s19] ss:$0 sm:$0xff] }
 0xb8d   : > { %v2757_v23 = vpop.eup %2756 }
 0xb8e   : > { %v2038_v22 = vmul.f32 %v2757_v23, %v2749_v8 }
 0xb90   : > { %2616 = vst.msk [vmem:[%s3250_s8 + $0x38] sm:$0xf] %vm1630_vm14, %v2038_v22  ;;  %2618 = vmatmul.msk.f32.gmra.mxu1 %vm1626_vm13, %v2038_v22 }
 0xba1   : > { %v1941_v25 = vpop.f32.mrf.mxu2 }
 0xba2   : > { %2609 = vmatmul.msk.f32.vlgmr.msra.gmra.mxu3 %vm919_vm1, %v1941_v25 }
 0xba9   : > { %v1944_v34 = vpop.f32.mrf.mxu2 }
 0xbaa   : > { %2610 = vmatmul.msk.f32.gmra.mxu3 %vm919_vm1, %v1944_v34 }
 0xc05   : > { %v2071_v5 = vpop.f32.mrf.mxu1 }
 0xc06   : > { %2619 = vmatmul.msk.f32.vlgmr.msrb.gmra.mxu2 %vm919_vm1, %v2071_v5 }
 0xc0d   : > { %v2074_v35 = vpop.f32.mrf.mxu1 }
 0xc0e   : > { %2620 = vmatmul.msk.f32.gmra.mxu2 %vm919_vm1, %v2074_v35 }
 0xc25   : > { %v1970_v36 = vpop.f32.mrf.mxu3 }
 0xc26   : > { %v1976_v29 = vadd.f32 %v1970_v36, %v3299_v44  ;;  %v2290_v36 = vld [vmem:[%s3464_s20 + $0x38] sm:$0xff] }
 0xc27   : > { %2310 = vmatpush.msrb.mxu0 %v2290_v36 }
 0xc2d   : > { %v1973_v6 = vpop.f32.mrf.mxu3 }
 0xc2e   : > { %v1977_v42 = vadd.f32 %v1973_v6, %v3301_v47 }
 0xc89   : > { %v2100_v38 = vpop.f32.mrf.mxu2 }
 0xc8a   : > { %v2106_v39 = vadd.f32 %v2100_v38, %v1976_v29  ;;  %v2289_v38 = vld [vmem:[%s3464_s20 + $0x30] sm:$0xff] }
 0xc8b   : > { %2311 = vmatpush.msrb.mxu0 %v2289_v38 }
 0xc8c   : > { %v2108_v40 = vadd.f32 %v2106_v39, %v3188_v4 }
 0xc8e   : > { %v2112_v41 = vsel %vm859_vm0, %v2108_v40, 0.0 }
 0xc8f   : > { %2113 = vadd.xlane.f32.xlu0 %v2112_v41 }
 0xc91   : > { %v2103_v43 = vpop.f32.mrf.mxu2 }
 0xc92   : > { %v2107_v45 = vadd.f32 %v2103_v43, %v1977_v42  ;;  %v2287_v42 = vld [vmem:[%s3464_s20 + $0x20] sm:$0xff] }
 0xc94   : > { %v2109_v46 = vadd.f32 %v2107_v45, %v3208_v30  ;;  %v2169_v30 = vld [vmem:[%s3462_s18 + $0x18] sm:$0xff] }
 0xc95   : > { %2192 = vmatpush.msrb.mxu3 %v2169_v30 }
 0xc96   : > { %v2115_v48 = vsel %vm1449_vm5, %v2109_v46, 0.0 }
 0xc97   : > { %2116 = vadd.xlane.f32.xlu1 %v2115_v48  ;;  %2193 = vmatpush.msrb.mxu3 %v2168_v57 }
 0xc99   : > { %2194 = vmatpush.msrb.mxu3 %v2167_v58 }
 0xc9b   : > { %2195 = vmatpush.msrb.mxu3 %v2166_v18 }
 0xd02   : > { %v2114_v49 = vpop.xlane.xlu0 %2113 }
 0xd03   : > { %v2118_v44 = vmul.f32 %v2114_v49, %v3145_v37 }
 0xd05   : > { %v2120_v50 = vsub.f32 %v2108_v40, %v2118_v44  ;;  %v2288_v40 = vld [vmem:[%s3464_s20 + $0x28] sm:$0xff]  ;;  %v2285_v44 = vld [vmem:[%s3464_s20 + $0x10] sm:$0xff] }
 0xd06   : > { %2312 = vmatpush.msrb.mxu0 %v2288_v40 }
 0xd07   : > { %v2122_v51 = vmul.f32 %v2120_v50, %v2120_v50 }
 0xd08   : > { %2313 = vmatpush.msrb.mxu0 %v2287_v42 }
 0xd09   : > { %v2124_v4 = vsel %vm859_vm0, %v2122_v51, 0.0 }
 0xd0a   : > { %2125 = vadd.xlane.f32.xlu1 %v2124_v4  ;;  %v2117_v52 = vpop.xlane.xlu1 %2116  ;;  %v2284_v4 = vld [vmem:[%s3464_s20 + $0x8] sm:$0xff] }
 0xd0b   : > { %v2119_v54 = vmul.f32 %v2117_v52, %v3145_v37  ;;  %v2283_v52 = vld [vmem:[%s3464_s20] sm:$0xff] }
 0xd0d   : > { %v2121_v55 = vsub.f32 %v2109_v46, %v2119_v54  ;;  %v2286_v46 = vld [vmem:[%s3464_s20 + $0x18] sm:$0xff] }
 0xd0e   : > { %2314 = vmatpush.msrb.mxu0 %v2286_v46 }
 0xd0f   : > { %v2123_v47 = vmul.f32 %v2121_v55, %v2121_v55 }
 0xd10   : > { %2315 = vmatpush.msrb.mxu0 %v2285_v44 }
 0xd11   : > { %v2127_v56 = vsel %vm1449_vm5, %v2123_v47, 0.0 }
 0xd12   : > { %2128 = vadd.xlane.f32.xlu2 %v2127_v56  ;;  %2316 = vmatpush.msrb.mxu0 %v2284_v4 }
 0xd14   : > { %2317 = vmatpush.msrb.mxu0 %v2283_v52 }
 0xd7d   : > { %v2126_v59 = vpop.xlane.xlu1 %2125 }
 0xd7e   : > { %v2130_v60 = vmul.f32 %v2126_v59, %v3145_v37 }
 0xd80   : > { %v2132_v61 = vadd.f32 1e-05, %v2130_v60 }
 0xd82   : > { %2758 = vrsqrt.f32 %v2132_v61  ;;  %vm2140_vm1 = vweird.f32 %v2132_v61 }
 0xd85   : > { %v2129_v19 = vpop.xlane.xlu2 %2128 }
 0xd86   : > { %v2131_v62 = vmul.f32 %v2129_v19, %v3145_v37 }
 0xd88   : > { %v2759_v63 = vpop.eup %2758  ;;  %v2133_v0 = vadd.f32 1e-05, %v2131_v62 }
 0xd89   : > { %v2135_v1 = vmul.f32 %v2759_v63, %v2132_v61  ;;  %vm2141_vm15 = vweird.f32 %v2759_v63 }
 0xd8a   : > { %2760 = vrsqrt.f32 %v2133_v0  ;;  %vm2142_vm2 = vmor %vm2140_vm1, %vm2141_vm15  ;;  %vm2150_vm4 = vweird.f32 %v2133_v0  ;;  %vm2295_vm1 = vcmask 523264  }
 0xd8b   : > { %v2136_v2 = vmul.f32 %v2759_v63, %v2135_v1 }
 0xd8d   : > { %v2137_v3 = vmul.f32 0.5, %v2136_v2 }
 0xd8f   : > { %v2138_v7 = vsub.f32 1.5, %v2137_v3 }
 0xd90   : > { %v2761_v8 = vpop.eup %2760 }
 0xd91   : > { %v2139_v10 = vmul.f32 %v2759_v63, %v2138_v7  ;;  %v2145_v9 = vmul.f32 %v2761_v8, %v2133_v0  ;;  %vm2151_vm3 = vweird.f32 %v2761_v8 }
 0xd92   : > { %vm2152_vm6 = vmor %vm2150_vm4, %vm2151_vm3 }
 0xd93   : > { %v2143_v53 = vsel %vm2142_vm2, %v2759_v63, %v2139_v10  ;;  %v2146_v12 = vmul.f32 %v2761_v8, %v2145_v9 }
 0xd94   : > { %v2154_v13 = vmul.f32 %v2143_v53, %v2120_v50 }
 0xd95   : > { %v2147_v16 = vmul.f32 0.5, %v2146_v12 }
 0xd96   : > { %v2159_v17 = vmul.f32 %v2682_v11, %v2154_v13 }
 0xd97   : > { %v2148_v14 = vsub.f32 1.5, %v2147_v16 }
 0xd98   : > { %v3365_v20 = vadd.f32 %v2683_v15, %v2159_v17 }
 0xd99   : > { %v2149_v21 = vmul.f32 %v2761_v8, %v2148_v14 }
 0xd9a   : > { %2621 = vmatmul.msk.f32.vlgmr.msrb.gmra.mxu3 %vm859_vm0, %v3365_v20 }
 0xd9b   : > { %v2153_v24 = vsel %vm2152_vm6, %v2761_v8, %v2149_v21 }
 0xd9c   : > { %v2155_v26 = vmul.f32 %v2153_v24, %v2121_v55 }
 0xd9e   : > { %v2160_v27 = vmul.f32 %v2682_v11, %v2155_v26 }
 0xda0   : > { %v3369_v28 = vadd.f32 %v2683_v15, %v2160_v27 }
 0xda2   : > { %2622 = vmatmul.msk.f32.gmra.mxu3 %vm859_vm0, %v3369_v28 }
 0xe1d   : > { %v2197_v32 = vpop.f32.mrf.mxu3 }
 0xe1e   : > { %v3376_v33 = vadd.f32 %v2684_v31, %v2197_v32 }
 0xe20   : > { %v3379_v23 = vmul.f32 0.70710677, %v3376_v33  ;;  %v2203_v40 = vmul.f32 0.5, %v3376_v33  ;;  %v2685_v33 = vld [vmem:[%s3465_s21] ss:$0 sm:$0xff] }
 0xe22   : > { %v2207_v22 = vand.u32 2147483647, %v3379_v23  ;;  %vm2273_vm15 = vcmp.ge.f32.partialorder %v3379_v23, 0.0 }
 0xe24   : > { %v2209_v25 = vmul.f32 0.3275911, %v2207_v22  ;;  %v2261_v57 = vsub.f32 0.0, %v2207_v22 }
 0xe25   : > { %v2200_v34 = vpop.f32.mrf.mxu3 }
 0xe26   : > { %v2211_v5 = vadd.f32 1.0, %v2209_v25  ;;  %v3382_v35 = vadd.f32 %v2684_v31, %v2200_v34  ;;  %v2263_v19 = vmul.f32 %v2261_v57, %v2207_v22 }
 0xe28   : > { %2762 = vrcp.f32 %v2211_v5  ;;  %v3388_v29 = vmul.f32 0.70710677, %v3382_v35  ;;  %v2224_v49 = vand.u32 2147483648, %v2211_v5  ;;  %v2222_v51 = vand.u32 2147483647, %v2211_v5 }
 0xe29   : > { %vm2218_vm8 = vweird.f32 %v2211_v5  ;;  %v2265_v7 = vmul.f32 1.442695, %v2263_v19 }
 0xe2a   : > { %v2208_v39 = vand.u32 2147483647, %v3388_v29  ;;  %v2225_v55 = vor.u32 1.1754944e-38, %v2224_v49  ;;  %vm2223_vm10 = vcmp.eq.f32.partialorder %v2222_v51, 8.507059e+37  ;;  %vm2274_vm2 = vcmp.ge.f32.partialorder %v3388_v29, 0.0 }
 0xe2b   : > { %v2204_v49 = vmul.f32 0.5, %v3382_v35 }
 0xe2c   : > { %v2210_v6 = vmul.f32 0.3275911, %v2208_v39  ;;  %v2262_v9 = vsub.f32 0.0, %v2208_v39 }
 0xe2e   : > { %v2763_v41 = vpop.eup %2762  ;;  %v2212_v45 = vadd.f32 1.0, %v2210_v6  ;;  %v2264_v16 = vmul.f32 %v2262_v9, %v2208_v39 }
 0xe2f   : > { %v2214_v43 = vmul.f32 %v2763_v41, %v2211_v5  ;;  %vm2219_vm7 = vweird.f32 %v2763_v41 }
 0xe30   : > { %2764 = vrcp.f32 %v2212_v45  ;;  %vm2220_vm9 = vmor %vm2218_vm8, %vm2219_vm7  ;;  %v2239_v61 = vand.u32 2147483648, %v2212_v45  ;;  %v2237_v63 = vand.u32 2147483647, %v2212_v45  ;;  %vm2233_vm12 = vweird.f32 %v2212_v45 }
 0xe31   : > { %v2215_v48 = vsub.f32 1.0, %v2214_v43  ;;  %2766 = vpow2.f32 %v2265_v7  ;;  %v2267_v26 = vmul.f32 1.442695, %v2264_v16 }
 0xe32   : > { %v2240_v3 = vor.u32 1.1754944e-38, %v2239_v61  ;;  %vm2238_vm14 = vcmp.eq.f32.partialorder %v2237_v63, 8.507059e+37 }
 0xe33   : > { %v2216_v50 = vmul.f32 %v2763_v41, %v2215_v48  ;;  %2768 = vpow2.f32 %v2267_v26 }
 0xe35   : > { %v2217_v54 = vadd.f32 %v2763_v41, %v2216_v50 }
 0xe36   : > { %v2765_v47 = vpop.eup %2764 }
 0xe37   : > { %v2221_v56 = vsel %vm2220_vm9, %v2763_v41, %v2217_v54  ;;  %v2229_v58 = vmul.f32 %v2765_v47, %v2212_v45  ;;  %vm2234_vm11 = vweird.f32 %v2765_v47  ;;  %v2767_v27 = vpop.eup %2766 }
 0xe38   : > { %v2226_v30 = vsel %vm2223_vm10, %v2225_v55, %v2221_v56  ;;  %vm2235_vm13 = vmor %vm2233_vm12, %vm2234_vm11 }
 0xe39   : > { %v2243_v18 = vmul.f32 1.0614054, %v2226_v30  ;;  %v2230_v59 = vsub.f32 1.0, %v2229_v58  ;;  %v2769_v41 = vpop.eup %2768 }
 0xe3b   : > { %v2245_v60 = vadd.f32 -1.4531521, %v2243_v18  ;;  %v2231_v62 = vmul.f32 %v2765_v47, %v2230_v59 }
 0xe3d   : > { %v2247_v0 = vmul.f32 %v2245_v60, %v2226_v30  ;;  %v2232_v1 = vadd.f32 %v2765_v47, %v2231_v62 }
 0xe3f   : > { %v2249_v2 = vadd.f32 1.4214138, %v2247_v0  ;;  %v2236_v8 = vsel %vm2235_vm13, %v2765_v47, %v2232_v1 }
 0xe40   : > { %v2241_v11 = vsel %vm2238_vm14, %v2240_v3, %v2236_v8 }
 0xe41   : > { %v2251_v10 = vmul.f32 %v2249_v2, %v2226_v30  ;;  %v2244_v53 = vmul.f32 1.0614054, %v2241_v11 }
 0xe43   : > { %v2253_v12 = vadd.f32 -0.28449672, %v2251_v10  ;;  %v2246_v13 = vadd.f32 -1.4531521, %v2244_v53  ;;  %v2686_v53 = vld [vmem:[%s3466_s22] ss:$0 sm:$0xff] }
 0xe45   : > { %v2255_v15 = vmul.f32 %v2253_v12, %v2226_v30  ;;  %v2248_v17 = vmul.f32 %v2246_v13, %v2241_v11 }
 0xe47   : > { %v2257_v14 = vadd.f32 0.2548296, %v2255_v15  ;;  %v2250_v21 = vadd.f32 1.4214138, %v2248_v17 }
 0xe49   : > { %v2259_v24 = vmul.f32 %v2257_v14, %v2226_v30  ;;  %v2252_v31 = vmul.f32 %v2250_v21, %v2241_v11 }
 0xe4b   : > { %v2269_v32 = vmul.f32 %v2767_v27, %v2259_v24  ;;  %v2254_v22 = vadd.f32 -0.28449672, %v2252_v31 }
 0xe4d   : > { %v2271_v25 = vsub.f32 1.0, %v2269_v32  ;;  %v2256_v34 = vmul.f32 %v2254_v22, %v2241_v11 }
 0xe4f   : > { %v2275_v5 = vsub.f32 0.0, %v2271_v25  ;;  %v2258_v36 = vadd.f32 0.2548296, %v2256_v34 }
 0xe51   : > { %v2277_v38 = vsel %vm2273_vm15, %v2271_v25, %v2275_v5  ;;  %v2260_v6 = vmul.f32 %v2258_v36, %v2241_v11 }
 0xe52   : > { %v2279_v39 = vadd.f32 1.0, %v2277_v38 }
 0xe53   : > { %v2270_v43 = vmul.f32 %v2769_v41, %v2260_v6 }
 0xe54   : > { %v2281_v42 = vmul.f32 %v2279_v39, %v2203_v40 }
 0xe55   : > { %v2272_v45 = vsub.f32 1.0, %v2270_v43 }
 0xe56   : > { %2623 = vmatmul.msk.f32.vlgmr.msrb.gmra.mxu0 %vm2295_vm1, %v2281_v42 }
 0xe57   : > { %v2276_v46 = vsub.f32 0.0, %v2272_v45 }
 0xe59   : > { %v2278_v48 = vsel %vm2274_vm2, %v2272_v45, %v2276_v46 }
 0xe5a   : > { %v2280_v44 = vadd.f32 1.0, %v2278_v48 }
 0xe5c   : > { %v2282_v23 = vmul.f32 %v2280_v44, %v2204_v49 }
 0xe5e   : > { %2624 = vmatmul.msk.f32.gmra.mxu0 %vm2295_vm1, %v2282_v23 }
 0xed3   : > { %v2319_v50 = vpop.f32.mrf.mxu0 }
 0xed4   : > { %v2320_v51 = vadd.f32 %v2685_v33, %v2319_v50 }
 0xed6   : > { %v2325_v4 = vadd.f32 %v2320_v51, %v3365_v20 }
 0xed8   : > { %v2329_v52 = vsel %vm859_vm0, %v2325_v4, 0.0 }
 0xed9   : > { %2330 = vadd.xlane.f32.xlu1 %v2329_v52 }
 0xedb   : > { %v2322_v54 = vpop.f32.mrf.mxu0 }
 0xedc   : > { %v2323_v55 = vadd.f32 %v2685_v33, %v2322_v54 }
 0xede   : > { %v2326_v29 = vadd.f32 %v2323_v55, %v3369_v28 }
 0xee0   : > { %v2332_v35 = vsel %vm1449_vm5, %v2326_v29, 0.0 }
 0xee1   : > { %2333 = vadd.xlane.f32.xlu1 %v2332_v35 }
 0xf4c   : > { %v2331_v47 = vpop.xlane.xlu1 %2330 }
 0xf4d   : > { %v2335_v56 = vmul.f32 %v2331_v47, %v3145_v37 }
 0xf4f   : > { %v2337_v30 = vsub.f32 %v2325_v4, %v2335_v56 }
 0xf51   : > { %v2339_v57 = vmul.f32 %v2337_v30, %v2337_v30 }
 0xf53   : > { %v2341_v58 = vsel %vm859_vm0, %v2339_v57, 0.0 }
 0xf54   : > { %2342 = vadd.xlane.f32.xlu1 %v2341_v58  ;;  %v2334_v18 = vpop.xlane.xlu1 %2333 }
 0xf55   : > { %v2336_v20 = vmul.f32 %v2334_v18, %v3145_v37 }
 0xf57   : > { %v2338_v59 = vsub.f32 %v2326_v29, %v2336_v20 }
 0xf59   : > { %v2340_v60 = vmul.f32 %v2338_v59, %v2338_v59 }
 0xf5b   : > { %v2344_v61 = vsel %vm1449_vm5, %v2340_v60, 0.0 }
 0xf5c   : > { %2345 = vadd.xlane.f32.xlu0 %v2344_v61 }
 0xfc7   : > { %v2343_v28 = vpop.xlane.xlu1 %2342 }
 0xfc8   : > { %v2347_v19 = vmul.f32 %v2343_v28, %v3145_v37 }
 0xfca   : > { %v2349_v62 = vadd.f32 1e-05, %v2347_v19 }
 0xfcc   : > { %2770 = vrsqrt.f32 %v2349_v62  ;;  %vm2357_vm4 = vweird.f32 %v2349_v62 }
 0xfcf   : > { %v2346_v63 = vpop.xlane.xlu0 %2345 }
 0xfd0   : > { %v2348_v0 = vmul.f32 %v2346_v63, %v3145_v37  ;;  %v2687_v37 = vld [vmem:[%s3467_s23] ss:$0 sm:$0xff] }
 0xfd2   : > { %v2771_v1 = vpop.eup %2770  ;;  %v2350_v3 = vadd.f32 1e-05, %v2348_v0 }
 0xfd3   : > { %v2352_v2 = vmul.f32 %v2771_v1, %v2349_v62  ;;  %vm2358_vm3 = vweird.f32 %v2771_v1 }
 0xfd4   : > { %2772 = vrsqrt.f32 %v2350_v3  ;;  %vm2359_vm6 = vmor %vm2357_vm4, %vm2358_vm3  ;;  %vm2367_vm8 = vweird.f32 %v2350_v3 }
 0xfd5   : > { %v2353_v7 = vmul.f32 %v2771_v1, %v2352_v2 }
 0xfd7   : > { %v2354_v8 = vmul.f32 0.5, %v2353_v7 }
 0xfd9   : > { %v2355_v10 = vsub.f32 1.5, %v2354_v8 }
 0xfda   : > { %v2773_v9 = vpop.eup %2772 }
 0xfdb   : > { %v2356_v11 = vmul.f32 %v2771_v1, %v2355_v10  ;;  %v2362_v12 = vmul.f32 %v2773_v9, %v2350_v3  ;;  %vm2368_vm7 = vweird.f32 %v2773_v9 }
 0xfdc   : > { %vm2369_vm9 = vmor %vm2367_vm8, %vm2368_vm7 }
 0xfdd   : > { %v2360_v13 = vsel %vm2359_vm6, %v2771_v1, %v2356_v11  ;;  %v2363_v16 = vmul.f32 %v2773_v9, %v2362_v12 }
 0xfde   : > { %v2371_v15 = vmul.f32 %v2360_v13, %v2337_v30 }
 0xfdf   : > { %v2364_v14 = vmul.f32 0.5, %v2363_v16 }
 0xfe0   : > { %v2376_v17 = vmul.f32 %v2686_v53, %v2371_v15 }
 0xfe1   : > { %v2365_v24 = vsub.f32 1.5, %v2364_v14 }
 0xfe2   : > { %v2381_v21 = vadd.f32 %v2687_v37, %v2376_v17 }
 0xfe3   : > { %v2366_v26 = vmul.f32 %v2773_v9, %v2365_v24 }
 0xfe4   : > { %2383 = vst.msk [vmem:[%s826_s0] sm:$0xff] %vm859_vm0, %v2381_v21 }
 0xfe5   : > { %v2370_v27 = vsel %vm2369_vm9, %v2773_v9, %v2366_v26 }
 0xfe6   : > { %v2372_v31 = vmul.f32 %v2370_v27, %v2338_v59 }
 0xfe8   : > { %v2377_v32 = vmul.f32 %v2686_v53, %v2372_v31 }
 0xfea   : > { %v2382_v22 = vadd.f32 %v2687_v37, %v2377_v32 }
 0xfec   : > { %2384 = vst.msk [vmem:[%s826_s0 + $0x8] sm:$0xf] %vm1449_vm5, %v2382_v22 }
 0xfed PF: > { %s37_s27 = sadd.s32 1, %s2780_s27  }
 0xfee   : > { %p34_p4 = scmp.ge.s32.totalorder %s37_s27, 4  }
 0xff0   :  { %36 = sbr.rel (!%p34_p4) target bundleno = 13 (0xd), region = 179 }

</bundles_post_ra>
